<compile_context>
chip_gen: v7x
topology: tpu7x:2x2x1
jax: 0.10.0
libtpu: 0.0.40
codegen_flags: <defaults>
</compile_context>

<pallas_src>
import functools

import jax
import jax.numpy as jnp
import numpy as np
from jax.experimental import pallas as pl
from jax.experimental.pallas import tpu as pltpu

EPS = 1e-5
_LANE = 128   # output-channel (lane) padding


def _round_up(x, m):
    return (x + m - 1) // m * m


# ------------------------------ kernel helpers --------------------------------

def _stack2(a, b):
    """Stack two (1, C) rows into one (2, C) value so the stat update is a single
    2-row accumulate store (avoids sublane concatenation)."""
    c = a.shape[1]
    ri = jax.lax.broadcasted_iota(jnp.int32, (2, c), 0)
    return jnp.where(ri == 0, jnp.broadcast_to(a, (2, c)), jnp.broadcast_to(b, (2, c)))


def _bn_scale_shift(s_ref, g_ref, b_ref, inv_n, nsb):
    """Combine per-superblock partial [sum; sumsq] rows and return BN scale/shift (f32).
    Variance is E[y^2]-E[y]^2 (biased, PyTorch train-mode BN); rsqrt goes to the EUP."""
    s_sum = s_ref[0:1, :]
    s_sq = s_ref[1:2, :]
    for k in range(1, nsb):
        s_sum = s_sum + s_ref[8 * k:8 * k + 1, :]
        s_sq = s_sq + s_ref[8 * k + 1:8 * k + 2, :]
    mean = s_sum * inv_n
    var = s_sq * inv_n - mean * mean
    scale = g_ref[...] * jax.lax.rsqrt(var + EPS)
    shift = b_ref[...] - mean * scale
    return scale, shift


# ----------------------------- Pallas kernels --------------------------------

def _conv1_shortcut_stats_kernel(cp, p_ref, w_ref, y1_ref, ys_ref, s1_ref, ss_ref):
    """Pass A: merged conv1|shortcut matmul (bf16 MXU, f32 acc) for one image slab,
    bf16 writeback, per-channel [sum; sumsq] accumulation (per-superblock partials).
    Guard / spatial-border rows of the patch slab are all-zero, so no mask is needed."""
    @pl.when(pl.program_id(1) == 0)
    def _init():
        s1_ref[...] = jnp.zeros_like(s1_ref)
        ss_ref[...] = jnp.zeros_like(ss_ref)

    y = jnp.dot(p_ref[...], w_ref[...], preferred_element_type=jnp.float32)  # (ppad, 2*cp)
    y1 = y[:, :cp]
    ys = y[:, cp:]
    y1_ref[...] = y1.astype(y1_ref.dtype)
    ys_ref[...] = ys.astype(ys_ref.dtype)
    s1_ref[0:2, :] += _stack2(jnp.sum(y1, axis=0, keepdims=True),
                              jnp.sum(y1 * y1, axis=0, keepdims=True))
    ss_ref[0:2, :] += _stack2(jnp.sum(ys, axis=0, keepdims=True),
                              jnp.sum(ys * ys, axis=0, keepdims=True))


def _bn1_relu_conv2_stats_kernel(cp, ow, rows, guard, inv_n, nsb,
                                 y1_ref, s1_ref, g1_ref, b1_ref, w2_ref,
                                 mask_a_ref, mask_s_ref,
                                 y2_ref, s2_ref, a_scr):
    """Pass B (fused): BN1(batch stats) + ReLU + conv2 via 9 shifted in-VMEM matmuls over the
    flattened, spatially padded + guarded per-image slab, plus BN2 stats accumulation."""
    wrow = ow + 2

    @pl.when(pl.program_id(1) == 0)
    def _init():
        s2_ref[...] = jnp.zeros_like(s2_ref)

    scale1, shift1 = _bn_scale_shift(s1_ref, g1_ref, b1_ref, inv_n, nsb)

    # BN1 + ReLU in f32; mask zeroes border / guard rows => out1 is zero-padded for conv2.
    a = jnp.maximum(y1_ref[...].astype(jnp.float32) * scale1 + shift1, 0.0) * mask_a_ref[...]
    a_scr[...] = a.astype(a_scr.dtype)

    # conv2 (k=3, p=1, s=1) = sum over the 9 taps of a constant row-shifted matmul.
    acc = jnp.zeros((rows, cp), jnp.float32)
    for i in range(3):
        for j in range(3):
            d = (i - 1) * wrow + (j - 1)
            tap = a_scr[guard + d:guard + d + rows, :]
            acc = acc + jnp.dot(tap, w2_ref[(3 * i + j) * cp:(3 * i + j + 1) * cp, :],
                                preferred_element_type=jnp.float32)

    acc = acc * mask_s_ref[...]            # zero non-interior rows (keeps BN2 stats exact)
    y2_ref[...] = jnp.zeros_like(y2_ref)
    y2_ref[guard:guard + rows, :] = acc.astype(y2_ref.dtype)
    s2_ref[0:2, :] += _stack2(jnp.sum(acc, axis=0, keepdims=True),
                              jnp.sum(acc * acc, axis=0, keepdims=True))


def _bn2_add_relu_kernel(inv_n, nsb, y2_ref, s2_ref, g2_ref, b2_ref,
                         ys_ref, ss_ref, gs_ref, bs_ref, o_ref):
    """Pass C: BN2 + shortcut-BN + residual add + ReLU (pure elementwise, f32 math)."""
    sc2, sh2 = _bn_scale_shift(s2_ref, g2_ref, b2_ref, inv_n, nsb)
    scs, shs = _bn_scale_shift(ss_ref, gs_ref, bs_ref, inv_n, nsb)
    out = (y2_ref[...].astype(jnp.float32) * sc2 + sh2) \
        + (ys_ref[...].astype(jnp.float32) * scs + shs)
    o_ref[...] = jnp.maximum(out, 0.0)


# ------------------------------ glue helpers ---------------------------------

def _im2col_compact(x_nhwc, kh, kw, stride, pad):
    """(N,H,W,C) -> (N,OH,OW,kh*kw*C), tap-major / channel-minor columns."""
    N, H, W, C = x_nhwc.shape
    xp = jnp.pad(x_nhwc, ((0, 0), (pad, pad), (pad, pad), (0, 0)))
    OH = (H + 2 * pad - kh) // stride + 1
    OW = (W + 2 * pad - kw) // stride + 1
    cols = [xp[:, i:i + stride * (OH - 1) + 1:stride,
               j:j + stride * (OW - 1) + 1:stride, :]
            for i in range(kh) for j in range(kw)]
    return jnp.concatenate(cols, axis=-1), OH, OW


def _embed_padded_rows(p_nohwk, guard, ppad):
    """(N,OH,OW,K) -> (N*ppad, K): 1-px zero spatial border (conv2 padding) + zero guard rows."""
    N, OH, OW, K = p_nohwk.shape
    p = jnp.pad(p_nohwk, ((0, 0), (1, 1), (1, 1), (0, 0)))
    p = p.reshape(N, (OH + 2) * (OW + 2), K)
    p = jnp.pad(p, ((0, 0), (guard, ppad - (OH + 2) * (OW + 2) - guard), (0, 0)))
    return p.reshape(N * ppad, K)


def _vec(p, cp):
    v = p.reshape(1, -1).astype(jnp.float32)
    return jnp.pad(v, ((0, 0), (0, cp - v.shape[1])))


# ------------------------------ forward pass ---------------------------------

def basic_block_forward(x_nchw, params, stride):
    N, cin, H, W = x_nchw.shape
    planes = params["w1"].shape[0]
    cp = _round_up(planes, _LANE)

    if stride == 1 and cin == planes:
        # TODO(synk): identity shortcut — shape-inconsistent in the original module.
        raise NotImplementedError("identity-shortcut configuration not supported")

    oh = (H + 2 - 2) // stride + 1
    ow = (W + 2 - 2) // stride + 1
    assert ((H - 1) // stride + 1, (W - 1) // stride + 1) == (oh, ow), \
        "conv1 / 1x1-shortcut output grids differ; the PyTorch module itself would fail"

    wrow = ow + 2
    p_rows = (oh + 2) * wrow              # spatially padded output grid, flattened per image
    guard = ow + 3                        # zero guard rows so every conv2 tap slice is in-bounds
    rows_b = _round_up(p_rows, 8)         # rows computed by the fused conv2 pass
    ppad = _round_up(2 * guard + rows_b, 16)
    nsb = 2 if (N % 2 == 0 and N >= 2) else 1   # megacore superblocks (v7x); harmless elsewhere
    n_per = N // nsb
    inv_n = 1.0 / float(N * oh * ow)

    x = jnp.transpose(x_nchw, (0, 2, 3, 1)).astype(jnp.bfloat16)

    # conv1 im2col (k=2, p=1, stride) embedded on the padded/guarded per-image grid.
    p1, _, _ = _im2col_compact(x, 2, 2, stride, 1)          # (N, oh, ow, 4*cin)
    k1 = p1.shape[-1]
    k1p = _round_up(k1, 16)                                  # bf16 sublane padding only
    p1 = jnp.pad(p1, ((0, 0), (0, 0), (0, 0), (0, k1p - k1)))
    p1 = _embed_padded_rows(p1, guard, ppad)                 # (N*ppad, k1p) bf16

    # Merged conv1 | shortcut-1x1 weight: shortcut samples == conv1 tap (1,1) columns.
    w1m = jnp.zeros((k1p, cp), jnp.float32)
    w1m = w1m.at[:k1, :planes].set(
        jnp.transpose(params["w1"], (2, 3, 1, 0)).reshape(k1, planes))
    wsm = jnp.zeros((k1p, cp), jnp.float32)
    wsm = wsm.at[3 * cin:4 * cin, :planes].set(params["ws"][:, :, 0, 0].T)
    w_comb = jnp.concatenate([w1m, wsm], axis=1).astype(jnp.bfloat16)   # (k1p, 2*cp)

    # conv2 weight: 9 per-tap (cp, cp) blocks stacked along rows (tap order == kernel loop).
    w2m = jnp.zeros((9 * cp, cp), jnp.float32)
    for i in range(3):
        for j in range(3):
            w2m = w2m.at[(3 * i + j) * cp:(3 * i + j) * cp + planes, :planes].set(
                params["w2"][:, :, i, j].T)
    w2m = w2m.astype(jnp.bfloat16)

    # Interior masks (host-built, tiny, resident): avoid vector int div/mod in-kernel.
    qa = np.arange(ppad) - guard
    ra, ca = qa // wrow, qa % wrow
    mask_a = jnp.asarray(((ra >= 1) & (ra <= oh) & (ca >= 1) & (ca <= ow))
                         .astype(np.float32).reshape(ppad, 1))
    qs = np.arange(rows_b)
    rs, cs = qs // wrow, qs % wrow
    mask_s = jnp.asarray(((rs >= 1) & (rs <= oh) & (cs >= 1) & (cs <= ow))
                         .astype(np.float32).reshape(rows_b, 1))

    img_spec = pl.BlockSpec((ppad, cp), lambda sb, t: (sb * n_per + t, 0))
    patch_spec = pl.BlockSpec((ppad, k1p), lambda sb, t: (sb * n_per + t, 0))
    stat_out_spec = pl.BlockSpec((8, cp), lambda sb, t: (sb, 0))
    stat_in_spec = pl.BlockSpec((nsb * 8, cp), lambda sb, t: (0, 0))
    vec_spec = pl.BlockSpec((1, cp), lambda sb, t: (0, 0))
    sem_ab = pltpu.CompilerParams(dimension_semantics=("parallel", "arbitrary"))

    # ---- pass A: conv1 + shortcut conv (one 2*cp-wide MXU matmul) + BN1/BNs stats ----
    y1, ys, s1, ss = pl.pallas_call(
        functools.partial(_conv1_shortcut_stats_kernel, cp),
        grid=(nsb, n_per),
        in_specs=[patch_spec,
                  pl.BlockSpec((k1p, 2 * cp), lambda sb, t: (0, 0))],
        out_specs=[img_spec, img_spec, stat_out_spec, stat_out_spec],
        out_shape=[jax.ShapeDtypeStruct((N * ppad, cp), jnp.bfloat16),
                   jax.ShapeDtypeStruct((N * ppad, cp), jnp.bfloat16),
                   jax.ShapeDtypeStruct((nsb * 8, cp), jnp.float32),
                   jax.ShapeDtypeStruct((nsb * 8, cp), jnp.float32)],
        compiler_params=sem_ab,
    )(p1, w_comb)

    # ---- pass B: BN1 + ReLU + conv2 (in-kernel halo taps, no HBM im2col) + BN2 stats ----
    y2, s2 = pl.pallas_call(
        functools.partial(_bn1_relu_conv2_stats_kernel,
                          cp, ow, rows_b, guard, inv_n, nsb),
        grid=(nsb, n_per),
        in_specs=[img_spec, stat_in_spec, vec_spec, vec_spec,
                  pl.BlockSpec((9 * cp, cp), lambda sb, t: (0, 0)),
                  pl.BlockSpec((ppad, 1), lambda sb, t: (0, 0)),
                  pl.BlockSpec((rows_b, 1), lambda sb, t: (0, 0))],
        out_specs=[img_spec, stat_out_spec],
        out_shape=[jax.ShapeDtypeStruct((N * ppad, cp), jnp.bfloat16),
                   jax.ShapeDtypeStruct((nsb * 8, cp), jnp.float32)],
        scratch_shapes=[pltpu.VMEM((ppad, cp), jnp.bfloat16)],
        compiler_params=sem_ab,
    )(y1, s1, _vec(params["g1"], cp), _vec(params["b1"], cp), w2m, mask_a, mask_s)

    # ---- pass C: BN2 + shortcut-BN + residual add + ReLU (elementwise, parallel) ----
    img_spec_c = pl.BlockSpec((ppad, cp), lambda n: (n, 0))
    stat_in_c = pl.BlockSpec((nsb * 8, cp), lambda n: (0, 0))
    vec_c = pl.BlockSpec((1, cp), lambda n: (0, 0))
    out_flat = pl.pallas_call(
        functools.partial(_bn2_add_relu_kernel, inv_n, nsb),
        grid=(N,),
        in_specs=[img_spec_c, stat_in_c, vec_c, vec_c,
                  img_spec_c, stat_in_c, vec_c, vec_c],
        out_specs=img_spec_c,
        out_shape=jax.ShapeDtypeStruct((N * ppad, cp), jnp.float32),
        compiler_params=pltpu.CompilerParams(dimension_semantics=("parallel",)),
    )(y2, s2, _vec(params["g2"], cp), _vec(params["b2"], cp),
      ys, ss, _vec(params["gs"], cp), _vec(params["bs"], cp))

    out = out_flat.reshape(N, ppad, cp)[:, guard:guard + p_rows, :]
    out = out.reshape(N, oh + 2, ow + 2, cp)[:, 1:oh + 1, 1:ow + 1, :planes]
    return jnp.transpose(out, (0, 3, 1, 2))   # NHWC -> NCHW


# ---------------------------- pure-JAX reference ------------------------------

def _ref_forward(x_nchw, params, stride):
    x = jnp.transpose(x_nchw, (0, 2, 3, 1))

    def conv(inp, w, s, p):
        wj = jnp.transpose(w, (2, 3, 1, 0))
        return jax.lax.conv_general_dilated(inp, wj, (s, s), [(p, p), (p, p)],
                                            dimension_numbers=("NHWC", "HWIO", "NHWC"))

    def bn(y, g, b):
        m = y.mean(axis=(0, 1, 2))
        v = ((y - m) ** 2).mean(axis=(0, 1, 2))
        return (y - m) / jnp.sqrt(v + EPS) * g + b

    out = jax.nn.relu(bn(conv(x, params["w1"], stride, 1), params["g1"], params["b1"]))
    out = bn(conv(out, params["w2"], 1, 1), params["g2"], params["b2"])
    sc = bn(conv(x, params["ws"], stride, 0), params["gs"], params["bs"])
    return jnp.transpose(jax.nn.relu(out + sc), (0, 3, 1, 2))


if __name__ == "__main__":
    key = jax.random.PRNGKey(0)
    in_planes, planes, stride = 4, 8, 2
    # Odd spatial (15) so conv1(k=2,p=1,s=2) and shortcut(1x1,s=2) both give 8x8 — the only
    # configuration in which the original PyTorch module's residual add is shape-consistent.
    N, H, W = 2, 15, 15
    k0, k1, k2, k3 = jax.random.split(key, 4)

    x = jax.random.normal(k0, (N, in_planes, H, W), jnp.float32)
    params = {
        "w1": jax.random.normal(k1, (planes, in_planes, 2, 2), jnp.float32) * 0.2,
        "g1": jnp.ones((planes,), jnp.float32), "b1": jnp.zeros((planes,), jnp.float32),
        "w2": jax.random.normal(k2, (planes, planes, 3, 3), jnp.float32) * 0.2,
        "g2": jnp.ones((planes,), jnp.float32), "b2": jnp.zeros((planes,), jnp.float32),
        "ws": jax.random.normal(k3, (planes, in_planes, 1, 1), jnp.float32) * 0.2,
        "gs": jnp.ones((planes,), jnp.float32), "bs": jnp.zeros((planes,), jnp.float32),
    }

    fwd = jax.jit(lambda xx, pp: basic_block_forward(xx, pp, stride))
    out = jax.block_until_ready(fwd(x, params))
    ref = jax.block_until_ready(_ref_forward(x, params, stride))

    assert out.shape == (N, planes, 8, 8), out.shape
    # Tolerance covers bf16 MXU operands and bf16 HBM intermediates (y1/ys/y2, out1 scratch);
    # all accumulation and BN statistics/math remain f32 inside the kernels.
    np.testing.assert_allclose(np.asarray(out), np.asarray(ref), rtol=2e-2, atol=2e-2)
    print("KERNEL_OK")
</pallas_src>

<mosaic_0001>
module attributes {stable_mosaic.version = 11 : i64} {
  func.func @_bn2_add_relu_kernel(%arg0: i32, %arg1: memref<128x128xbf16, #tpu.memory_space<vmem>>, %arg2: memref<16x128xf32, #tpu.memory_space<vmem>>, %arg3: memref<1x128xf32, #tpu.memory_space<vmem>>, %arg4: memref<1x128xf32, #tpu.memory_space<vmem>>, %arg5: memref<128x128xbf16, #tpu.memory_space<vmem>>, %arg6: memref<16x128xf32, #tpu.memory_space<vmem>>, %arg7: memref<1x128xf32, #tpu.memory_space<vmem>>, %arg8: memref<1x128xf32, #tpu.memory_space<vmem>>, %arg9: memref<128x128xf32, #tpu.memory_space<vmem>>) attributes {dimension_semantics = [#tpu.dimension_semantics<parallel>], iteration_bounds = array<i64: 2>, scalar_prefetch = 0 : i64, scratch_operands = 0 : i64, tpu.core_type = #tpu.core_type<tc>, window_params = [{transform_indices = @transform_0, window_bounds = array<i64: 128, 128>}, {pipeline_mode = #tpu.pipeline_mode<synchronous>, transform_indices = @transform_1, window_bounds = array<i64: 16, 128>}, {pipeline_mode = #tpu.pipeline_mode<synchronous>, transform_indices = @transform_2, window_bounds = array<i64: 1, 128>}, {pipeline_mode = #tpu.pipeline_mode<synchronous>, transform_indices = @transform_3, window_bounds = array<i64: 1, 128>}, {transform_indices = @transform_4, window_bounds = array<i64: 128, 128>}, {pipeline_mode = #tpu.pipeline_mode<synchronous>, transform_indices = @transform_5, window_bounds = array<i64: 16, 128>}, {pipeline_mode = #tpu.pipeline_mode<synchronous>, transform_indices = @transform_6, window_bounds = array<i64: 1, 128>}, {pipeline_mode = #tpu.pipeline_mode<synchronous>, transform_indices = @transform_7, window_bounds = array<i64: 1, 128>}, {transform_indices = @transform_8, window_bounds = array<i64: 128, 128>}]} {
    %c0 = arith.constant 0 : index
    %c0_0 = arith.constant 0 : index
    %0 = vector.load %arg2[%c0, %c0_0] : memref<16x128xf32, #tpu.memory_space<vmem>>, vector<1x128xf32>
    %c1 = arith.constant 1 : index
    %c0_1 = arith.constant 0 : index
    %1 = vector.load %arg2[%c1, %c0_1] : memref<16x128xf32, #tpu.memory_space<vmem>>, vector<1x128xf32>
    %c8 = arith.constant 8 : index
    %c0_2 = arith.constant 0 : index
    %2 = vector.load %arg2[%c8, %c0_2] : memref<16x128xf32, #tpu.memory_space<vmem>>, vector<1x128xf32>
    %3 = arith.addf %0, %2 : vector<1x128xf32>
    %c9 = arith.constant 9 : index
    %c0_3 = arith.constant 0 : index
    %4 = vector.load %arg2[%c9, %c0_3] : memref<16x128xf32, #tpu.memory_space<vmem>>, vector<1x128xf32>
    %5 = arith.addf %1, %4 : vector<1x128xf32>
    %cst = arith.constant 7.812500e-03 : f32
    %6 = vector.broadcast %cst : f32 to vector<1x128xf32>
    %7 = arith.mulf %3, %6 : vector<1x128xf32>
    %cst_4 = arith.constant 7.812500e-03 : f32
    %8 = vector.broadcast %cst_4 : f32 to vector<1x128xf32>
    %9 = arith.mulf %5, %8 : vector<1x128xf32>
    %10 = arith.mulf %7, %7 : vector<1x128xf32>
    %11 = arith.subf %9, %10 : vector<1x128xf32>
    %c0_5 = arith.constant 0 : index
    %c0_6 = arith.constant 0 : index
    %12 = vector.load %arg3[%c0_5, %c0_6] : memref<1x128xf32, #tpu.memory_space<vmem>>, vector<1x128xf32>
    %cst_7 = arith.constant 9.99999974E-6 : f32
    %13 = vector.broadcast %cst_7 : f32 to vector<1x128xf32>
    %14 = arith.addf %11, %13 : vector<1x128xf32>
    %15 = math.rsqrt %14 : vector<1x128xf32>
    %16 = arith.mulf %12, %15 : vector<1x128xf32>
    %c0_8 = arith.constant 0 : index
    %c0_9 = arith.constant 0 : index
    %17 = vector.load %arg4[%c0_8, %c0_9] : memref<1x128xf32, #tpu.memory_space<vmem>>, vector<1x128xf32>
    %18 = arith.mulf %7, %16 : vector<1x128xf32>
    %19 = arith.subf %17, %18 : vector<1x128xf32>
    %c0_10 = arith.constant 0 : index
    %c0_11 = arith.constant 0 : index
    %20 = vector.load %arg6[%c0_10, %c0_11] : memref<16x128xf32, #tpu.memory_space<vmem>>, vector<1x128xf32>
    %c1_12 = arith.constant 1 : index
    %c0_13 = arith.constant 0 : index
    %21 = vector.load %arg6[%c1_12, %c0_13] : memref<16x128xf32, #tpu.memory_space<vmem>>, vector<1x128xf32>
    %c8_14 = arith.constant 8 : index
    %c0_15 = arith.constant 0 : index
    %22 = vector.load %arg6[%c8_14, %c0_15] : memref<16x128xf32, #tpu.memory_space<vmem>>, vector<1x128xf32>
    %23 = arith.addf %20, %22 : vector<1x128xf32>
    %c9_16 = arith.constant 9 : index
    %c0_17 = arith.constant 0 : index
    %24 = vector.load %arg6[%c9_16, %c0_17] : memref<16x128xf32, #tpu.memory_space<vmem>>, vector<1x128xf32>
    %25 = arith.addf %21, %24 : vector<1x128xf32>
    %cst_18 = arith.constant 7.812500e-03 : f32
    %26 = vector.broadcast %cst_18 : f32 to vector<1x128xf32>
    %27 = arith.mulf %23, %26 : vector<1x128xf32>
    %cst_19 = arith.constant 7.812500e-03 : f32
    %28 = vector.broadcast %cst_19 : f32 to vector<1x128xf32>
    %29 = arith.mulf %25, %28 : vector<1x128xf32>
    %30 = arith.mulf %27, %27 : vector<1x128xf32>
    %31 = arith.subf %29, %30 : vector<1x128xf32>
    %c0_20 = arith.constant 0 : index
    %c0_21 = arith.constant 0 : index
    %32 = vector.load %arg7[%c0_20, %c0_21] : memref<1x128xf32, #tpu.memory_space<vmem>>, vector<1x128xf32>
    %cst_22 = arith.constant 9.99999974E-6 : f32
    %33 = vector.broadcast %cst_22 : f32 to vector<1x128xf32>
    %34 = arith.addf %31, %33 : vector<1x128xf32>
    %35 = math.rsqrt %34 : vector<1x128xf32>
    %36 = arith.mulf %32, %35 : vector<1x128xf32>
    %c0_23 = arith.constant 0 : index
    %c0_24 = arith.constant 0 : index
    %37 = vector.load %arg8[%c0_23, %c0_24] : memref<1x128xf32, #tpu.memory_space<vmem>>, vector<1x128xf32>
    %38 = arith.mulf %27, %36 : vector<1x128xf32>
    %39 = arith.subf %37, %38 : vector<1x128xf32>
    %c0_25 = arith.constant 0 : index
    %c0_26 = arith.constant 0 : index
    %40 = vector.load %arg1[%c0_25, %c0_26] : memref<128x128xbf16, #tpu.memory_space<vmem>>, vector<128x128xbf16>
    %41 = arith.extf %40 : vector<128x128xbf16> to vector<128x128xf32>
    %42 = vector.broadcast %16 : vector<1x128xf32> to vector<128x128xf32>
    %43 = arith.mulf %41, %42 : vector<128x128xf32>
    %44 = vector.broadcast %19 : vector<1x128xf32> to vector<128x128xf32>
    %45 = arith.addf %43, %44 : vector<128x128xf32>
    %c0_27 = arith.constant 0 : index
    %c0_28 = arith.constant 0 : index
    %46 = vector.load %arg5[%c0_27, %c0_28] : memref<128x128xbf16, #tpu.memory_space<vmem>>, vector<128x128xbf16>
    %47 = arith.extf %46 : vector<128x128xbf16> to vector<128x128xf32>
    %48 = vector.broadcast %36 : vector<1x128xf32> to vector<128x128xf32>
    %49 = arith.mulf %47, %48 : vector<128x128xf32>
    %50 = vector.broadcast %39 : vector<1x128xf32> to vector<128x128xf32>
    %51 = arith.addf %49, %50 : vector<128x128xf32>
    %52 = arith.addf %45, %51 : vector<128x128xf32>
    %cst_29 = arith.constant 0.000000e+00 : f32
    %53 = vector.broadcast %cst_29 : f32 to vector<128x128xf32>
    %54 = arith.maximumf %52, %53 : vector<128x128xf32>
    %c0_30 = arith.constant 0 : index
    %c0_31 = arith.constant 0 : index
    %55 = vector.load %arg9[%c0_30, %c0_31] : memref<128x128xf32, #tpu.memory_space<vmem>>, vector<128x128xf32>
    tpu.vector_store %arg9[%c0_30, %c0_31], %54 {strides = array<i32>} : memref<128x128xf32, #tpu.memory_space<vmem>>, vector<128x128xf32>,
    return
  }
  func.func @transform_0(%arg0: i32) -> (i32, i32) {
    %c0_i32 = arith.constant 0 : i32
    %c0_i32_0 = arith.constant 0 : i32
    return %arg0, %c0_i32 : i32, i32
  }
  func.func @transform_1(%arg0: i32) -> (i32, i32) {
    %c0_i32 = arith.constant 0 : i32
    %c0_i32_0 = arith.constant 0 : i32
    %c0_i32_1 = arith.constant 0 : i32
    return %c0_i32, %c0_i32_0 : i32, i32
  }
  func.func @transform_2(%arg0: i32) -> (i32, i32) {
    %c0_i32 = arith.constant 0 : i32
    %c0_i32_0 = arith.constant 0 : i32
    %c0_i32_1 = arith.constant 0 : i32
    return %c0_i32, %c0_i32_0 : i32, i32
  }
  func.func @transform_3(%arg0: i32) -> (i32, i32) {
    %c0_i32 = arith.constant 0 : i32
    %c0_i32_0 = arith.constant 0 : i32
    %c0_i32_1 = arith.constant 0 : i32
    return %c0_i32, %c0_i32_0 : i32, i32
  }
  func.func @transform_4(%arg0: i32) -> (i32, i32) {
    %c0_i32 = arith.constant 0 : i32
    %c0_i32_0 = arith.constant 0 : i32
    return %arg0, %c0_i32 : i32, i32
  }
  func.func @transform_5(%arg0: i32) -> (i32, i32) {
    %c0_i32 = arith.constant 0 : i32
    %c0_i32_0 = arith.constant 0 : i32
    %c0_i32_1 = arith.constant 0 : i32
    return %c0_i32, %c0_i32_0 : i32, i32
  }
  func.func @transform_6(%arg0: i32) -> (i32, i32) {
    %c0_i32 = arith.constant 0 : i32
    %c0_i32_0 = arith.constant 0 : i32
    %c0_i32_1 = arith.constant 0 : i32
    return %c0_i32, %c0_i32_0 : i32, i32
  }
  func.func @transform_7(%arg0: i32) -> (i32, i32) {
    %c0_i32 = arith.constant 0 : i32
    %c0_i32_0 = arith.constant 0 : i32
    %c0_i32_1 = arith.constant 0 : i32
    return %c0_i32, %c0_i32_0 : i32, i32
  }
  func.func @transform_8(%arg0: i32) -> (i32, i32) {
    %c0_i32 = arith.constant 0 : i32
    %c0_i32_0 = arith.constant 0 : i32
    return %arg0, %c0_i32 : i32, i32
  }
}

module attributes {stable_mosaic.version = 11 : i64} {
  func.func @_conv1_shortcut_stats_kernel(%arg0: i32, %arg1: i32, %arg2: memref<128x16xbf16, #tpu.memory_space<vmem>>, %arg3: memref<16x256xbf16, #tpu.memory_space<vmem>>, %arg4: memref<128x128xbf16, #tpu.memory_space<vmem>>, %arg5: memref<128x128xbf16, #tpu.memory_space<vmem>>, %arg6: memref<8x128xf32, #tpu.memory_space<vmem>>, %arg7: memref<8x128xf32, #tpu.memory_space<vmem>>) attributes {dimension_semantics = [#tpu.dimension_semantics<parallel>, #tpu.dimension_semantics<arbitrary>], iteration_bounds = array<i64: 2, 1>, scalar_prefetch = 0 : i64, scratch_operands = 0 : i64, tpu.core_type = #tpu.core_type<tc>, window_params = [{transform_indices = @transform_0, window_bounds = array<i64: 128, 16>}, {pipeline_mode = #tpu.pipeline_mode<synchronous>, transform_indices = @transform_1, window_bounds = array<i64: 16, 256>}, {transform_indices = @transform_2, window_bounds = array<i64: 128, 128>}, {transform_indices = @transform_3, window_bounds = array<i64: 128, 128>}, {transform_indices = @transform_4, window_bounds = array<i64: 8, 128>}, {transform_indices = @transform_5, window_bounds = array<i64: 8, 128>}]} {
    %c0_i32 = arith.constant 0 : i32
    %0 = arith.cmpi eq, %arg1, %c0_i32 : i32
    %1 = arith.extui %0 : i1 to i32
    %c0_i32_0 = arith.constant 0 : i32
    %2 = arith.cmpi ne, %1, %c0_i32_0 : i32
    scf.if %2 {
      %cst_22 = arith.constant 0.000000e+00 : f32
      %44 = vector.broadcast %cst_22 : f32 to vector<8x128xf32>
      %c0_23 = arith.constant 0 : index
      %c0_24 = arith.constant 0 : index
      %45 = vector.load %arg6[%c0_23, %c0_24] : memref<8x128xf32, #tpu.memory_space<vmem>>, vector<8x128xf32>
      tpu.vector_store %arg6[%c0_23, %c0_24], %44 {strides = array<i32>} : memref<8x128xf32, #tpu.memory_space<vmem>>, vector<8x128xf32>,
      %cst_25 = arith.constant 0.000000e+00 : f32
      %46 = vector.broadcast %cst_25 : f32 to vector<8x128xf32>
      %c0_26 = arith.constant 0 : index
      %c0_27 = arith.constant 0 : index
      %47 = vector.load %arg7[%c0_26, %c0_27] : memref<8x128xf32, #tpu.memory_space<vmem>>, vector<8x128xf32>
      tpu.vector_store %arg7[%c0_26, %c0_27], %46 {strides = array<i32>} : memref<8x128xf32, #tpu.memory_space<vmem>>, vector<8x128xf32>,
    } else {
    }
    %c0 = arith.constant 0 : index
    %c0_1 = arith.constant 0 : index
    %3 = vector.load %arg2[%c0, %c0_1] : memref<128x16xbf16, #tpu.memory_space<vmem>>, vector<128x16xbf16>
    %c0_2 = arith.constant 0 : index
    %c0_3 = arith.constant 0 : index
    %4 = vector.load %arg3[%c0_2, %c0_3] : memref<16x256xbf16, #tpu.memory_space<vmem>>, vector<16x256xbf16>
    %cst = arith.constant dense<0.000000e+00> : vector<128x256xf32>
    %5 = tpu.matmul %3, %4, %cst {dimension_numbers = #tpu.dot_dimension_numbers<[1], [0], [0], [1], [0, 0, 1, 1], [], []>} : vector<128x16xbf16>, vector<16x256xbf16>, vector<128x256xf32> -> vector<128x256xf32>
    %6 = vector.extract_strided_slice %5 {offsets = [0, 0], sizes = [128, 128], strides = [1, 1]} : vector<128x256xf32> to vector<128x128xf32>
    %7 = vector.extract_strided_slice %5 {offsets = [0, 128], sizes = [128, 128], strides = [1, 1]} : vector<128x256xf32> to vector<128x128xf32>
    %8 = arith.truncf %6 : vector<128x128xf32> to vector<128x128xbf16>
    %c0_4 = arith.constant 0 : index
    %c0_5 = arith.constant 0 : index
    %9 = vector.load %arg4[%c0_4, %c0_5] : memref<128x128xbf16, #tpu.memory_space<vmem>>, vector<128x128xbf16>
    tpu.vector_store %arg4[%c0_4, %c0_5], %8 {strides = array<i32>} : memref<128x128xbf16, #tpu.memory_space<vmem>>, vector<128x128xbf16>,
    %10 = arith.truncf %7 : vector<128x128xf32> to vector<128x128xbf16>
    %c0_6 = arith.constant 0 : index
    %c0_7 = arith.constant 0 : index
    %11 = vector.load %arg5[%c0_6, %c0_7] : memref<128x128xbf16, #tpu.memory_space<vmem>>, vector<128x128xbf16>
    tpu.vector_store %arg5[%c0_6, %c0_7], %10 {strides = array<i32>} : memref<128x128xbf16, #tpu.memory_space<vmem>>, vector<128x128xbf16>,
    %c0_8 = arith.constant 0 : index
    %c0_9 = arith.constant 0 : index
    %12 = vector.load %arg6[%c0_8, %c0_9] : memref<8x128xf32, #tpu.memory_space<vmem>>, vector<2x128xf32>
    %cst_10 = arith.constant dense<0.000000e+00> : vector<128xf32>
    %13 = vector.multi_reduction <add>, %6, %cst_10 [0] : vector<128x128xf32> to vector<128xf32>
    %14 = vector.shape_cast %13 : vector<128xf32> to vector<1x128xf32>
    %15 = arith.mulf %6, %6 : vector<128x128xf32>
    %cst_11 = arith.constant dense<0.000000e+00> : vector<128xf32>
    %16 = vector.multi_reduction <add>, %15, %cst_11 [0] : vector<128x128xf32> to vector<128xf32>
    %17 = vector.shape_cast %16 : vector<128xf32> to vector<1x128xf32>
    %18 = tpu.iota {dimensions = array<i32: 0>} : vector<2x128xi32>
    %c0_i32_12 = arith.constant 0 : i32
    %19 = vector.broadcast %c0_i32_12 : i32 to vector<2x128xi32>
    %20 = arith.cmpi eq, %18, %19 : vector<2x128xi32>
    %21 = vector.shape_cast %14 : vector<1x128xf32> to vector<1x128xf32>
    %22 = vector.broadcast %21 : vector<1x128xf32> to vector<2x128xf32>
    %23 = vector.shape_cast %17 : vector<1x128xf32> to vector<1x128xf32>
    %24 = vector.broadcast %23 : vector<1x128xf32> to vector<2x128xf32>
    %25 = arith.select %20, %22, %24 : vector<2x128xi1>, vector<2x128xf32>
    %26 = arith.addf %12, %25 : vector<2x128xf32>
    %c0_13 = arith.constant 0 : index
    %c0_14 = arith.constant 0 : index
    %27 = vector.load %arg6[%c0_13, %c0_14] : memref<8x128xf32, #tpu.memory_space<vmem>>, vector<2x128xf32>
    tpu.vector_store %arg6[%c0_13, %c0_14], %26 {strides = array<i32>} : memref<8x128xf32, #tpu.memory_space<vmem>>, vector<2x128xf32>,
    %c0_15 = arith.constant 0 : index
    %c0_16 = arith.constant 0 : index
    %28 = vector.load %arg7[%c0_15, %c0_16] : memref<8x128xf32, #tpu.memory_space<vmem>>, vector<2x128xf32>
    %cst_17 = arith.constant dense<0.000000e+00> : vector<128xf32>
    %29 = vector.multi_reduction <add>, %7, %cst_17 [0] : vector<128x128xf32> to vector<128xf32>
    %30 = vector.shape_cast %29 : vector<128xf32> to vector<1x128xf32>
    %31 = arith.mulf %7, %7 : vector<128x128xf32>
    %cst_18 = arith.constant dense<0.000000e+00> : vector<128xf32>
    %32 = vector.multi_reduction <add>, %31, %cst_18 [0] : vector<128x128xf32> to vector<128xf32>
    %33 = vector.shape_cast %32 : vector<128xf32> to vector<1x128xf32>
    %34 = tpu.iota {dimensions = array<i32: 0>} : vector<2x128xi32>
    %c0_i32_19 = arith.constant 0 : i32
    %35 = vector.broadcast %c0_i32_19 : i32 to vector<2x128xi32>
    %36 = arith.cmpi eq, %34, %35 : vector<2x128xi32>
    %37 = vector.shape_cast %30 : vector<1x128xf32> to vector<1x128xf32>
    %38 = vector.broadcast %37 : vector<1x128xf32> to vector<2x128xf32>
    %39 = vector.shape_cast %33 : vector<1x128xf32> to vector<1x128xf32>
    %40 = vector.broadcast %39 : vector<1x128xf32> to vector<2x128xf32>
    %41 = arith.select %36, %38, %40 : vector<2x128xi1>, vector<2x128xf32>
    %42 = arith.addf %28, %41 : vector<2x128xf32>
    %c0_20 = arith.constant 0 : index
    %c0_21 = arith.constant 0 : index
    %43 = vector.load %arg7[%c0_20, %c0_21] : memref<8x128xf32, #tpu.memory_space<vmem>>, vector<2x128xf32>
    tpu.vector_store %arg7[%c0_20, %c0_21], %42 {strides = array<i32>} : memref<8x128xf32, #tpu.memory_space<vmem>>, vector<2x128xf32>,
    return
  }
  func.func @transform_0(%arg0: i32, %arg1: i32) -> (i32, i32) {
    %c1_i32 = arith.constant 1 : i32
    %0 = arith.muli %arg0, %c1_i32 : i32
    %1 = arith.addi %0, %arg1 : i32
    %c0_i32 = arith.constant 0 : i32
    %c0_i32_0 = arith.constant 0 : i32
    return %1, %c0_i32 : i32, i32
  }
  func.func @transform_1(%arg0: i32, %arg1: i32) -> (i32, i32) {
    %c0_i32 = arith.constant 0 : i32
    %c0_i32_0 = arith.constant 0 : i32
    %c0_i32_1 = arith.constant 0 : i32
    return %c0_i32, %c0_i32_0 : i32, i32
  }
  func.func @transform_2(%arg0: i32, %arg1: i32) -> (i32, i32) {
    %c1_i32 = arith.constant 1 : i32
    %0 = arith.muli %arg0, %c1_i32 : i32
    %1 = arith.addi %0, %arg1 : i32
    %c0_i32 = arith.constant 0 : i32
    %c0_i32_0 = arith.constant 0 : i32
    return %1, %c0_i32 : i32, i32
  }
  func.func @transform_3(%arg0: i32, %arg1: i32) -> (i32, i32) {
    %c1_i32 = arith.constant 1 : i32
    %0 = arith.muli %arg0, %c1_i32 : i32
    %1 = arith.addi %0, %arg1 : i32
    %c0_i32 = arith.constant 0 : i32
    %c0_i32_0 = arith.constant 0 : i32
    return %1, %c0_i32 : i32, i32
  }
  func.func @transform_4(%arg0: i32, %arg1: i32) -> (i32, i32) {
    %c0_i32 = arith.constant 0 : i32
    %c0_i32_0 = arith.constant 0 : i32
    return %arg0, %c0_i32 : i32, i32
  }
  func.func @transform_5(%arg0: i32, %arg1: i32) -> (i32, i32) {
    %c0_i32 = arith.constant 0 : i32
    %c0_i32_0 = arith.constant 0 : i32
    return %arg0, %c0_i32 : i32, i32
  }
}

module attributes {stable_mosaic.version = 11 : i64} {
  func.func @_bn1_relu_conv2_stats_kernel(%arg0: i32, %arg1: i32, %arg2: memref<128x128xbf16, #tpu.memory_space<vmem>>, %arg3: memref<16x128xf32, #tpu.memory_space<vmem>>, %arg4: memref<1x128xf32, #tpu.memory_space<vmem>>, %arg5: memref<1x128xf32, #tpu.memory_space<vmem>>, %arg6: memref<1152x128xbf16, #tpu.memory_space<vmem>>, %arg7: memref<128x1xf32, #tpu.memory_space<vmem>>, %arg8: memref<104x1xf32, #tpu.memory_space<vmem>>, %arg9: memref<128x128xbf16, #tpu.memory_space<vmem>>, %arg10: memref<8x128xf32, #tpu.memory_space<vmem>>, %arg11: memref<128x128xbf16, #tpu.memory_space<vmem>>) attributes {dimension_semantics = [#tpu.dimension_semantics<parallel>, #tpu.dimension_semantics<arbitrary>], iteration_bounds = array<i64: 2, 1>, scalar_prefetch = 0 : i64, scratch_operands = 1 : i64, tpu.core_type = #tpu.core_type<tc>, window_params = [{transform_indices = @transform_0, window_bounds = array<i64: 128, 128>}, {pipeline_mode = #tpu.pipeline_mode<synchronous>, transform_indices = @transform_1, window_bounds = array<i64: 16, 128>}, {pipeline_mode = #tpu.pipeline_mode<synchronous>, transform_indices = @transform_2, window_bounds = array<i64: 1, 128>}, {pipeline_mode = #tpu.pipeline_mode<synchronous>, transform_indices = @transform_3, window_bounds = array<i64: 1, 128>}, {pipeline_mode = #tpu.pipeline_mode<synchronous>, transform_indices = @transform_4, window_bounds = array<i64: 1152, 128>}, {pipeline_mode = #tpu.pipeline_mode<synchronous>, transform_indices = @transform_5, window_bounds = array<i64: 128, 1>}, {pipeline_mode = #tpu.pipeline_mode<synchronous>, transform_indices = @transform_6, window_bounds = array<i64: 104, 1>}, {transform_indices = @transform_7, window_bounds = array<i64: 128, 128>}, {transform_indices = @transform_8, window_bounds = array<i64: 8, 128>}]} {
    %c0_i32 = arith.constant 0 : i32
    %0 = arith.cmpi eq, %arg1, %c0_i32 : i32
    %1 = arith.extui %0 : i1 to i32
    %c0_i32_0 = arith.constant 0 : i32
    %2 = arith.cmpi ne, %1, %c0_i32_0 : i32
    scf.if %2 {
      %cst_63 = arith.constant 0.000000e+00 : f32
      %96 = vector.broadcast %cst_63 : f32 to vector<8x128xf32>
      %c0_64 = arith.constant 0 : index
      %c0_65 = arith.constant 0 : index
      %97 = vector.load %arg10[%c0_64, %c0_65] : memref<8x128xf32, #tpu.memory_space<vmem>>, vector<8x128xf32>
      tpu.vector_store %arg10[%c0_64, %c0_65], %96 {strides = array<i32>} : memref<8x128xf32, #tpu.memory_space<vmem>>, vector<8x128xf32>,
    } else {
    }
    %c0 = arith.constant 0 : index
    %c0_1 = arith.constant 0 : index
    %3 = vector.load %arg3[%c0, %c0_1] : memref<16x128xf32, #tpu.memory_space<vmem>>, vector<1x128xf32>
    %c1 = arith.constant 1 : index
    %c0_2 = arith.constant 0 : index
    %4 = vector.load %arg3[%c1, %c0_2] : memref<16x128xf32, #tpu.memory_space<vmem>>, vector<1x128xf32>
    %c8 = arith.constant 8 : index
    %c0_3 = arith.constant 0 : index
    %5 = vector.load %arg3[%c8, %c0_3] : memref<16x128xf32, #tpu.memory_space<vmem>>, vector<1x128xf32>
    %6 = arith.addf %3, %5 : vector<1x128xf32>
    %c9 = arith.constant 9 : index
    %c0_4 = arith.constant 0 : index
    %7 = vector.load %arg3[%c9, %c0_4] : memref<16x128xf32, #tpu.memory_space<vmem>>, vector<1x128xf32>
    %8 = arith.addf %4, %7 : vector<1x128xf32>
    %cst = arith.constant 7.812500e-03 : f32
    %9 = vector.broadcast %cst : f32 to vector<1x128xf32>
    %10 = arith.mulf %6, %9 : vector<1x128xf32>
    %cst_5 = arith.constant 7.812500e-03 : f32
    %11 = vector.broadcast %cst_5 : f32 to vector<1x128xf32>
    %12 = arith.mulf %8, %11 : vector<1x128xf32>
    %13 = arith.mulf %10, %10 : vector<1x128xf32>
    %14 = arith.subf %12, %13 : vector<1x128xf32>
    %c0_6 = arith.constant 0 : index
    %c0_7 = arith.constant 0 : index
    %15 = vector.load %arg4[%c0_6, %c0_7] : memref<1x128xf32, #tpu.memory_space<vmem>>, vector<1x128xf32>
    %cst_8 = arith.constant 9.99999974E-6 : f32
    %16 = vector.broadcast %cst_8 : f32 to vector<1x128xf32>
    %17 = arith.addf %14, %16 : vector<1x128xf32>
    %18 = math.rsqrt %17 : vector<1x128xf32>
    %19 = arith.mulf %15, %18 : vector<1x128xf32>
    %c0_9 = arith.constant 0 : index
    %c0_10 = arith.constant 0 : index
    %20 = vector.load %arg5[%c0_9, %c0_10] : memref<1x128xf32, #tpu.memory_space<vmem>>, vector<1x128xf32>
    %21 = arith.mulf %10, %19 : vector<1x128xf32>
    %22 = arith.subf %20, %21 : vector<1x128xf32>
    %c0_11 = arith.constant 0 : index
    %c0_12 = arith.constant 0 : index
    %23 = vector.load %arg2[%c0_11, %c0_12] : memref<128x128xbf16, #tpu.memory_space<vmem>>, vector<128x128xbf16>
    %24 = arith.extf %23 : vector<128x128xbf16> to vector<128x128xf32>
    %25 = vector.broadcast %19 : vector<1x128xf32> to vector<128x128xf32>
    %26 = arith.mulf %24, %25 : vector<128x128xf32>
    %27 = vector.broadcast %22 : vector<1x128xf32> to vector<128x128xf32>
    %28 = arith.addf %26, %27 : vector<128x128xf32>
    %cst_13 = arith.constant 0.000000e+00 : f32
    %29 = vector.broadcast %cst_13 : f32 to vector<128x128xf32>
    %30 = arith.maximumf %28, %29 : vector<128x128xf32>
    %c0_14 = arith.constant 0 : index
    %c0_15 = arith.constant 0 : index
    %31 = vector.load %arg7[%c0_14, %c0_15] : memref<128x1xf32, #tpu.memory_space<vmem>>, vector<128x1xf32>
    %32 = vector.broadcast %31 : vector<128x1xf32> to vector<128x128xf32>
    %33 = arith.mulf %30, %32 : vector<128x128xf32>
    %34 = arith.truncf %33 : vector<128x128xf32> to vector<128x128xbf16>
    %c0_16 = arith.constant 0 : index
    %c0_17 = arith.constant 0 : index
    %35 = vector.load %arg11[%c0_16, %c0_17] : memref<128x128xbf16, #tpu.memory_space<vmem>>, vector<128x128xbf16>
    tpu.vector_store %arg11[%c0_16, %c0_17], %34 {strides = array<i32>} : memref<128x128xbf16, #tpu.memory_space<vmem>>, vector<128x128xbf16>,
    %cst_18 = arith.constant 0.000000e+00 : f32
    %36 = vector.broadcast %cst_18 : f32 to vector<104x128xf32>
    %c0_19 = arith.constant 0 : index
    %c0_20 = arith.constant 0 : index
    %37 = vector.load %arg11[%c0_19, %c0_20] : memref<128x128xbf16, #tpu.memory_space<vmem>>, vector<104x128xbf16>
    %c0_21 = arith.constant 0 : index
    %c0_22 = arith.constant 0 : index
    %38 = vector.load %arg6[%c0_21, %c0_22] : memref<1152x128xbf16, #tpu.memory_space<vmem>>, vector<128x128xbf16>
    %cst_23 = arith.constant dense<0.000000e+00> : vector<104x128xf32>
    %39 = tpu.matmul %37, %38, %cst_23 {dimension_numbers = #tpu.dot_dimension_numbers<[1], [0], [0], [1], [0, 0, 1, 1], [], []>} : vector<104x128xbf16>, vector<128x128xbf16>, vector<104x128xf32> -> vector<104x128xf32>
    %40 = arith.addf %36, %39 : vector<104x128xf32>
    %c1_24 = arith.constant 1 : index
    %c0_25 = arith.constant 0 : index
    %41 = vector.load %arg11[%c1_24, %c0_25] : memref<128x128xbf16, #tpu.memory_space<vmem>>, vector<104x128xbf16>
    %c128 = arith.constant 128 : index
    %c0_26 = arith.constant 0 : index
    %42 = vector.load %arg6[%c128, %c0_26] : memref<1152x128xbf16, #tpu.memory_space<vmem>>, vector<128x128xbf16>
    %cst_27 = arith.constant dense<0.000000e+00> : vector<104x128xf32>
    %43 = tpu.matmul %41, %42, %cst_27 {dimension_numbers = #tpu.dot_dimension_numbers<[1], [0], [0], [1], [0, 0, 1, 1], [], []>} : vector<104x128xbf16>, vector<128x128xbf16>, vector<104x128xf32> -> vector<104x128xf32>
    %44 = arith.addf %40, %43 : vector<104x128xf32>
    %c2 = arith.constant 2 : index
    %c0_28 = arith.constant 0 : index
    %45 = vector.load %arg11[%c2, %c0_28] : memref<128x128xbf16, #tpu.memory_space<vmem>>, vector<104x128xbf16>
    %c256 = arith.constant 256 : index
    %c0_29 = arith.constant 0 : index
    %46 = vector.load %arg6[%c256, %c0_29] : memref<1152x128xbf16, #tpu.memory_space<vmem>>, vector<128x128xbf16>
    %cst_30 = arith.constant dense<0.000000e+00> : vector<104x128xf32>
    %47 = tpu.matmul %45, %46, %cst_30 {dimension_numbers = #tpu.dot_dimension_numbers<[1], [0], [0], [1], [0, 0, 1, 1], [], []>} : vector<104x128xbf16>, vector<128x128xbf16>, vector<104x128xf32> -> vector<104x128xf32>
    %48 = arith.addf %44, %47 : vector<104x128xf32>
    %c10 = arith.constant 10 : index
    %c0_31 = arith.constant 0 : index
    %49 = vector.load %arg11[%c10, %c0_31] : memref<128x128xbf16, #tpu.memory_space<vmem>>, vector<104x128xbf16>
    %c384 = arith.constant 384 : index
    %c0_32 = arith.constant 0 : index
    %50 = vector.load %arg6[%c384, %c0_32] : memref<1152x128xbf16, #tpu.memory_space<vmem>>, vector<128x128xbf16>
    %cst_33 = arith.constant dense<0.000000e+00> : vector<104x128xf32>
    %51 = tpu.matmul %49, %50, %cst_33 {dimension_numbers = #tpu.dot_dimension_numbers<[1], [0], [0], [1], [0, 0, 1, 1], [], []>} : vector<104x128xbf16>, vector<128x128xbf16>, vector<104x128xf32> -> vector<104x128xf32>
    %52 = arith.addf %48, %51 : vector<104x128xf32>
    %c11 = arith.constant 11 : index
    %c0_34 = arith.constant 0 : index
    %53 = vector.load %arg11[%c11, %c0_34] : memref<128x128xbf16, #tpu.memory_space<vmem>>, vector<104x128xbf16>
    %c512 = arith.constant 512 : index
    %c0_35 = arith.constant 0 : index
    %54 = vector.load %arg6[%c512, %c0_35] : memref<1152x128xbf16, #tpu.memory_space<vmem>>, vector<128x128xbf16>
    %cst_36 = arith.constant dense<0.000000e+00> : vector<104x128xf32>
    %55 = tpu.matmul %53, %54, %cst_36 {dimension_numbers = #tpu.dot_dimension_numbers<[1], [0], [0], [1], [0, 0, 1, 1], [], []>} : vector<104x128xbf16>, vector<128x128xbf16>, vector<104x128xf32> -> vector<104x128xf32>
    %56 = arith.addf %52, %55 : vector<104x128xf32>
    %c12 = arith.constant 12 : index
    %c0_37 = arith.constant 0 : index
    %57 = vector.load %arg11[%c12, %c0_37] : memref<128x128xbf16, #tpu.memory_space<vmem>>, vector<104x128xbf16>
    %c640 = arith.constant 640 : index
    %c0_38 = arith.constant 0 : index
    %58 = vector.load %arg6[%c640, %c0_38] : memref<1152x128xbf16, #tpu.memory_space<vmem>>, vector<128x128xbf16>
    %cst_39 = arith.constant dense<0.000000e+00> : vector<104x128xf32>
    %59 = tpu.matmul %57, %58, %cst_39 {dimension_numbers = #tpu.dot_dimension_numbers<[1], [0], [0], [1], [0, 0, 1, 1], [], []>} : vector<104x128xbf16>, vector<128x128xbf16>, vector<104x128xf32> -> vector<104x128xf32>
    %60 = arith.addf %56, %59 : vector<104x128xf32>
    %c20 = arith.constant 20 : index
    %c0_40 = arith.constant 0 : index
    %61 = vector.load %arg11[%c20, %c0_40] : memref<128x128xbf16, #tpu.memory_space<vmem>>, vector<104x128xbf16>
    %c768 = arith.constant 768 : index
    %c0_41 = arith.constant 0 : index
    %62 = vector.load %arg6[%c768, %c0_41] : memref<1152x128xbf16, #tpu.memory_space<vmem>>, vector<128x128xbf16>
    %cst_42 = arith.constant dense<0.000000e+00> : vector<104x128xf32>
    %63 = tpu.matmul %61, %62, %cst_42 {dimension_numbers = #tpu.dot_dimension_numbers<[1], [0], [0], [1], [0, 0, 1, 1], [], []>} : vector<104x128xbf16>, vector<128x128xbf16>, vector<104x128xf32> -> vector<104x128xf32>
    %64 = arith.addf %60, %63 : vector<104x128xf32>
    %c21 = arith.constant 21 : index
    %c0_43 = arith.constant 0 : index
    %65 = vector.load %arg11[%c21, %c0_43] : memref<128x128xbf16, #tpu.memory_space<vmem>>, vector<104x128xbf16>
    %c896 = arith.constant 896 : index
    %c0_44 = arith.constant 0 : index
    %66 = vector.load %arg6[%c896, %c0_44] : memref<1152x128xbf16, #tpu.memory_space<vmem>>, vector<128x128xbf16>
    %cst_45 = arith.constant dense<0.000000e+00> : vector<104x128xf32>
    %67 = tpu.matmul %65, %66, %cst_45 {dimension_numbers = #tpu.dot_dimension_numbers<[1], [0], [0], [1], [0, 0, 1, 1], [], []>} : vector<104x128xbf16>, vector<128x128xbf16>, vector<104x128xf32> -> vector<104x128xf32>
    %68 = arith.addf %64, %67 : vector<104x128xf32>
    %c22 = arith.constant 22 : index
    %c0_46 = arith.constant 0 : index
    %69 = vector.load %arg11[%c22, %c0_46] : memref<128x128xbf16, #tpu.memory_space<vmem>>, vector<104x128xbf16>
    %c1024 = arith.constant 1024 : index
    %c0_47 = arith.constant 0 : index
    %70 = vector.load %arg6[%c1024, %c0_47] : memref<1152x128xbf16, #tpu.memory_space<vmem>>, vector<128x128xbf16>
    %cst_48 = arith.constant dense<0.000000e+00> : vector<104x128xf32>
    %71 = tpu.matmul %69, %70, %cst_48 {dimension_numbers = #tpu.dot_dimension_numbers<[1], [0], [0], [1], [0, 0, 1, 1], [], []>} : vector<104x128xbf16>, vector<128x128xbf16>, vector<104x128xf32> -> vector<104x128xf32>
    %72 = arith.addf %68, %71 : vector<104x128xf32>
    %c0_49 = arith.constant 0 : index
    %c0_50 = arith.constant 0 : index
    %73 = vector.load %arg8[%c0_49, %c0_50] : memref<104x1xf32, #tpu.memory_space<vmem>>, vector<104x1xf32>
    %74 = vector.broadcast %73 : vector<104x1xf32> to vector<104x128xf32>
    %75 = arith.mulf %72, %74 : vector<104x128xf32>
    %cst_51 = arith.constant 0.000000e+00 : bf16
    %76 = vector.broadcast %cst_51 : bf16 to vector<128x128xbf16>
    %c0_52 = arith.constant 0 : index
    %c0_53 = arith.constant 0 : index
    %77 = vector.load %arg9[%c0_52, %c0_53] : memref<128x128xbf16, #tpu.memory_space<vmem>>, vector<128x128xbf16>
    tpu.vector_store %arg9[%c0_52, %c0_53], %76 {strides = array<i32>} : memref<128x128xbf16, #tpu.memory_space<vmem>>, vector<128x128xbf16>,
    %78 = arith.truncf %75 : vector<104x128xf32> to vector<104x128xbf16>
    %c11_54 = arith.constant 11 : index
    %c0_55 = arith.constant 0 : index
    %79 = vector.load %arg9[%c11_54, %c0_55] : memref<128x128xbf16, #tpu.memory_space<vmem>>, vector<104x128xbf16>
    tpu.vector_store %arg9[%c11_54, %c0_55], %78 {strides = array<i32>} : memref<128x128xbf16, #tpu.memory_space<vmem>>, vector<104x128xbf16>,
    %c0_56 = arith.constant 0 : index
    %c0_57 = arith.constant 0 : index
    %80 = vector.load %arg10[%c0_56, %c0_57] : memref<8x128xf32, #tpu.memory_space<vmem>>, vector<2x128xf32>
    %cst_58 = arith.constant dense<0.000000e+00> : vector<128xf32>
    %81 = vector.multi_reduction <add>, %75, %cst_58 [0] : vector<104x128xf32> to vector<128xf32>
    %82 = vector.shape_cast %81 : vector<128xf32> to vector<1x128xf32>
    %83 = arith.mulf %75, %75 : vector<104x128xf32>
    %cst_59 = arith.constant dense<0.000000e+00> : vector<128xf32>
    %84 = vector.multi_reduction <add>, %83, %cst_59 [0] : vector<104x128xf32> to vector<128xf32>
    %85 = vector.shape_cast %84 : vector<128xf32> to vector<1x128xf32>
    %86 = tpu.iota {dimensions = array<i32: 0>} : vector<2x128xi32>
    %c0_i32_60 = arith.constant 0 : i32
    %87 = vector.broadcast %c0_i32_60 : i32 to vector<2x128xi32>
    %88 = arith.cmpi eq, %86, %87 : vector<2x128xi32>
    %89 = vector.shape_cast %82 : vector<1x128xf32> to vector<1x128xf32>
    %90 = vector.broadcast %89 : vector<1x128xf32> to vector<2x128xf32>
    %91 = vector.shape_cast %85 : vector<1x128xf32> to vector<1x128xf32>
    %92 = vector.broadcast %91 : vector<1x128xf32> to vector<2x128xf32>
    %93 = arith.select %88, %90, %92 : vector<2x128xi1>, vector<2x128xf32>
    %94 = arith.addf %80, %93 : vector<2x128xf32>
    %c0_61 = arith.constant 0 : index
    %c0_62 = arith.constant 0 : index
    %95 = vector.load %arg10[%c0_61, %c0_62] : memref<8x128xf32, #tpu.memory_space<vmem>>, vector<2x128xf32>
    tpu.vector_store %arg10[%c0_61, %c0_62], %94 {strides = array<i32>} : memref<8x128xf32, #tpu.memory_space<vmem>>, vector<2x128xf32>,
    return
  }
  func.func @transform_0(%arg0: i32, %arg1: i32) -> (i32, i32) {
    %c1_i32 = arith.constant 1 : i32
    %0 = arith.muli %arg0, %c1_i32 : i32
    %1 = arith.addi %0, %arg1 : i32
    %c0_i32 = arith.constant 0 : i32
    %c0_i32_0 = arith.constant 0 : i32
    return %1, %c0_i32 : i32, i32
  }
  func.func @transform_1(%arg0: i32, %arg1: i32) -> (i32, i32) {
    %c0_i32 = arith.constant 0 : i32
    %c0_i32_0 = arith.constant 0 : i32
    %c0_i32_1 = arith.constant 0 : i32
    return %c0_i32, %c0_i32_0 : i32, i32
  }
  func.func @transform_2(%arg0: i32, %arg1: i32) -> (i32, i32) {
    %c0_i32 = arith.constant 0 : i32
    %c0_i32_0 = arith.constant 0 : i32
    %c0_i32_1 = arith.constant 0 : i32
    return %c0_i32, %c0_i32_0 : i32, i32
  }
  func.func @transform_3(%arg0: i32, %arg1: i32) -> (i32, i32) {
    %c0_i32 = arith.constant 0 : i32
    %c0_i32_0 = arith.constant 0 : i32
    %c0_i32_1 = arith.constant 0 : i32
    return %c0_i32, %c0_i32_0 : i32, i32
  }
  func.func @transform_4(%arg0: i32, %arg1: i32) -> (i32, i32) {
    %c0_i32 = arith.constant 0 : i32
    %c0_i32_0 = arith.constant 0 : i32
    %c0_i32_1 = arith.constant 0 : i32
    return %c0_i32, %c0_i32_0 : i32, i32
  }
  func.func @transform_5(%arg0: i32, %arg1: i32) -> (i32, i32) {
    %c0_i32 = arith.constant 0 : i32
    %c0_i32_0 = arith.constant 0 : i32
    %c0_i32_1 = arith.constant 0 : i32
    return %c0_i32, %c0_i32_0 : i32, i32
  }
  func.func @transform_6(%arg0: i32, %arg1: i32) -> (i32, i32) {
    %c0_i32 = arith.constant 0 : i32
    %c0_i32_0 = arith.constant 0 : i32
    %c0_i32_1 = arith.constant 0 : i32
    return %c0_i32, %c0_i32_0 : i32, i32
  }
  func.func @transform_7(%arg0: i32, %arg1: i32) -> (i32, i32) {
    %c1_i32 = arith.constant 1 : i32
    %0 = arith.muli %arg0, %c1_i32 : i32
    %1 = arith.addi %0, %arg1 : i32
    %c0_i32 = arith.constant 0 : i32
    %c0_i32_0 = arith.constant 0 : i32
    return %1, %c0_i32 : i32, i32
  }
  func.func @transform_8(%arg0: i32, %arg1: i32) -> (i32, i32) {
    %c0_i32 = arith.constant 0 : i32
    %c0_i32_0 = arith.constant 0 : i32
    return %arg0, %c0_i32 : i32, i32
  }
}

</mosaic_0001>

<bundles_post_ra>
// kernel: _lambda_.3
= control target key start
LH: loop header
LB: loop body
LE: loop exit
PB: predicated region body
PF: predicated region fallthrough
CT: control target
= control target key end

     0   :  { %s1244_s18 = smov 0   ;;  %s1246_s19 = smov 0   ;;  %s1412_s0 = inlined_call_operand.vmem [shape: bf16[256,16], index: 0, kind: input, shape index: {}]   ;;  %s1413_s1 = inlined_call_operand.vmem [shape: bf16[16,256], index: 1, kind: input, shape index: {}]   ;;  %s1414_s2 = inlined_call_operand.vmem [shape: bf16[256,128], index: 2, kind: output, shape index: {0}]   ;;  %s1415_s3 = inlined_call_operand.vmem [shape: bf16[256,128], index: 3, kind: output, shape index: {1}]   ;;  %s1416_s4 = inlined_call_operand.vmem [shape: f32[16,128], index: 4, kind: output, shape index: {2}]   ;;  %s1417_s5 = inlined_call_operand.vmem [shape: f32[16,128], index: 5, kind: output, shape index: {3}]  }
   0x1   :  { %s1248_s20 = smov 0  }
   0x2 LB: > { %s28_s21 = sadd.s32 1, %s1206_s19  ;;  %p962_p0 = scmp.ge.s32.totalorder %s1210_s20, 1  ;;  %s1210_s20 = sphi %s1248_s20, %s16_s20   ;;  %s1206_s19 = sphi %s1246_s19, %s1419_s19   ;;  %s1202_s18 = sphi %s1244_s18, %s1418_s18  }
   0x3   : > { %p30_p1 = scmp.ge.s32.totalorder %s28_s21, 2  ;;  %p215_p2 = scmp.lt.s32.totalorder %s1210_s20, 3 }
   0x5   : > { %s1421_s21 = smov (%p30_p1, %s28_s21), 0  ;;  %p216_p3 = pnand %p962_p0, %p215_p2 }
   0x6   : > { %v1177_v0 = vld [vmem:[%s1413_s1 + $0x4] ss:$8 sps:$4 sm:$0xff] (!%p216_p3)   ;;  %s963_s24 = sshll.u32 (!%p216_p3), %s1202_s18, 4  ;;  %v1179_v1 = vld [vmem:[%s1413_s1] ss:$8 sps:$4 sm:$0xff] (!%p216_p3)   ;;  %v1212_v2 = vmov (!%p216_p3), 0  }
   0x7   : > { %219 = sbr.rel (%p216_p3) target bundleno = 293 (0x125), region = 28  ;;  %423 = vmatprep.mubr.bf16.mxu0 (!%p216_p3), %v1212_v2  ;;  %p261_p4 = scmp.lt.s32.totalorder (!%p216_p3), %s963_s24, 31  ;;  %463 = vmatprep.mubr.bf16.mxu1 (!%p216_p3), %v1212_v2  ;;  %vm366_vm0 = vcmask (!%p216_p3), 130048   ;;  %v1213_v11 = vmov (!%p216_p3), 0.0  }
   0x8   : > { %391 = vmatprep.subr.bf16.mxu0 (!%p216_p3), %v1177_v0  ;;  %1149 = vmatprep.subr.bf16.mxu1 (!%p216_p3), %v1177_v0  ;;  %p283_p5 = scmp.lt.s32.totalorder (!%p216_p3), %s1202_s18, 1 }
   0x9   : > { %392 = vmatpush1.bf16.msra.mxu0 (!%p216_p3), %v1179_v1  ;;  %1150 = vmatpush1.bf16.msra.mxu1 (!%p216_p3), %v1179_v1 }
   0xe   : > { %s1423_s24 = smov (!%p261_p4, %s963_s24), 31  ;;  %s1425_s18 = smov (!%p283_p5, %s1202_s18), 1 }
   0xf   : > { %s1271_s27 = sshll.u32 %s1423_s24, 2  ;;  %s969_s6 = sshll.u32 %s1425_s18, 3 }
  0x10   : > { %s264_s30 = scalar_lea.vmem %s1412_s0, %s1271_s27  ;;  %s1290_s9 = scalar_lea.vmem %s1416_s4, %s969_s6 }
  0x11   : > { %v1180_v3 = vld [vmem:[%s264_s30] sm:$0xff]   ;;  %v1181_v5 = vld [vmem:[%s264_s30 + $0x8] sm:$0xff]   ;;  %v1183_v7 = vld [vmem:[%s264_s30 + $0x10] sm:$0xff]   ;;  %296 = vst [vmem:[%s1290_s9] sm:$0xff] %v1213_v11  ;;  %s1296_s12 = scalar_lea.vmem %s1417_s5, %s969_s6  ;;  %s1303_s15 = scalar_lea.vmem %s1414_s2, %s1271_s27 }
  0x12   : > { %981 = vmatmul.mubr.msk.bf16.vlgmr.msra.gmra.mrb[0].mxu0 %vm366_vm0, %v1180_v3  ;;  %v1182_v4 = vld [vmem:[%s264_s30 + $0x20] sm:$0xff]   ;;  %v1184_v6 = vld [vmem:[%s264_s30 + $0x28] sm:$0xff]   ;;  %v1186_v8 = vld [vmem:[%s264_s30 + $0x30] sm:$0xff]   ;;  %297 = vst [vmem:[%s1296_s12] sm:$0xff] %v1213_v11  ;;  %s1311_s18 = scalar_lea.vmem %s1415_s3, %s1271_s27 }
  0x13   : > { %433 = vmatprep.mubr.bf16.mxu0 %v1212_v2  ;;  %985 = vmatmul.mubr.msk.bf16.vlgmr.msra.gmra.mrb[0].mxu1 %vm366_vm0, %v1182_v4  ;;  %v1185_v9 = vld [vmem:[%s264_s30 + $0x18] sm:$0xff]  }
  0x14   : > { %473 = vmatprep.mubr.bf16.mxu1 %v1212_v2  ;;  %v1187_v10 = vld [vmem:[%s264_s30 + $0x38] sm:$0xff]  }
  0x1a   : > { %982 = vmatmul.mubr.msk.bf16.gmra.mrb[4].mxu0 %vm366_vm0, %v1181_v5 }
  0x1b   : > { %443 = vmatprep.mubr.bf16.mxu0 %v1212_v2  ;;  %986 = vmatmul.mubr.msk.bf16.gmra.mrb[4].mxu1 %vm366_vm0, %v1184_v6 }
  0x1c   : > { %483 = vmatprep.mubr.bf16.mxu1 %v1212_v2 }
  0x22   : > { %983 = vmatmul.mubr.msk.bf16.gmra.mrb[8].mxu0 %vm366_vm0, %v1183_v7 }
  0x23   : > { %453 = vmatprep.mubr.bf16.mxu0 %v1212_v2  ;;  %987 = vmatmul.mubr.msk.bf16.gmra.mrb[8].mxu1 %vm366_vm0, %v1186_v8 }
  0x24   : > { %493 = vmatprep.mubr.bf16.mxu1 %v1212_v2 }
  0x2a   : > { %984 = vmatmul.mubr.msk.bf16.gmra.mrb[12].mxu0 %vm366_vm0, %v1185_v9 }
  0x2b   : > { %988 = vmatmul.mubr.msk.bf16.gmra.mrb[12].mxu1 %vm366_vm0, %v1187_v10 }
  0xe5   : > { %v425_v12 = vpop.f32.mrb[0].mxu0 }
  0xe6   : > { %v427_v13 = vpop.f32.mrb[1].mxu0  ;;  %v1305_v15 = vpop.f32.mrb[0].mxu1  ;;  %v686_v16 = vmul.f32 %v425_v12, %v425_v12 }
  0xe7   : > { %v429_v14 = vpop.f32.mrb[2].mxu0  ;;  %v1313_v21 = vpop.f32.mrb[1].mxu1  ;;  %v751_v22 = vmul.f32 %v427_v13, %v427_v13 }
  0xe8   : > { %v1058_v17 = vpack.c.bf16 %v429_v14, %v425_v12  ;;  %v665_v18 = vadd.f32 %v429_v14, %v425_v12  ;;  %v687_v19 = vmul.f32 %v429_v14, %v429_v14  ;;  %v431_v20 = vpop.f32.mrb[3].mxu0  ;;  %v1315_v26 = vpop.f32.mrb[2].mxu1 }
  0xe9   : > { %v1098_v23 = vpack.c.bf16 %v431_v20, %v427_v13  ;;  %v730_v24 = vadd.f32 %v431_v20, %v427_v13  ;;  %v752_v25 = vmul.f32 %v431_v20, %v431_v20  ;;  %v1078_v28 = vpack.c.bf16 %v1315_v26, %v1305_v15  ;;  %v1320_v29 = vpop.f32.mrb[3].mxu1 }
  0xea   : > { %1059 = vst [vmem:[%s1303_s15] sm:$0xff] %v1058_v17   ;;  %v702_v27 = vadd.f32 %v687_v19, %v686_v16  ;;  %v1118_v31 = vpack.c.bf16 %v1320_v29, %v1313_v21 }
  0xeb   : > { %1099 = vst [vmem:[%s1311_s18] sm:$0xff] %v1098_v23   ;;  %v767_v30 = vadd.f32 %v752_v25, %v751_v22  ;;  %1138 = vst [vmem:[%s1303_s15 + $0x20] sm:$0xff] %v1078_v28  }
  0xec   : > { %1145 = vst [vmem:[%s1311_s18 + $0x20] sm:$0xff] %v1118_v31  }
  0xed   : > { %v435_v32 = vpop.f32.mrb[4].mxu0 }
  0xee   : > { %v666_v33 = vadd.f32 %v665_v18, %v435_v32  ;;  %v688_v34 = vmul.f32 %v435_v32, %v435_v32  ;;  %v437_v35 = vpop.f32.mrb[5].mxu0  ;;  %v1327_v39 = vpop.f32.mrb[4].mxu1 }
  0xef   : > { %v731_v36 = vadd.f32 %v730_v24, %v437_v35  ;;  %v753_v37 = vmul.f32 %v437_v35, %v437_v35  ;;  %v439_v38 = vpop.f32.mrb[6].mxu0  ;;  %v1329_v45 = vpop.f32.mrb[5].mxu1 }
  0xf0   : > { %v703_v40 = vadd.f32 %v702_v27, %v688_v34  ;;  %v1063_v41 = vpack.c.bf16 %v439_v38, %v435_v32  ;;  %v667_v42 = vadd.f32 %v666_v33, %v439_v38  ;;  %v689_v43 = vmul.f32 %v439_v38, %v439_v38  ;;  %v441_v44 = vpop.f32.mrb[7].mxu0  ;;  %v1331_v50 = vpop.f32.mrb[6].mxu1 }
  0xf1   : > { %v768_v46 = vadd.f32 %v767_v30, %v753_v37  ;;  %v1103_v47 = vpack.c.bf16 %v441_v44, %v437_v35  ;;  %v732_v48 = vadd.f32 %v731_v36, %v441_v44  ;;  %v754_v49 = vmul.f32 %v441_v44, %v441_v44  ;;  %v1336_v53 = vpop.f32.mrb[7].mxu1 }
  0xf2   : > { %1135 = vst [vmem:[%s1303_s15 + $0x8] sm:$0xff] %v1063_v41   ;;  %v704_v51 = vadd.f32 %v703_v40, %v689_v43  ;;  %v1083_v52 = vpack.c.bf16 %v1331_v50, %v1327_v39  ;;  %v1123_v55 = vpack.c.bf16 %v1336_v53, %v1329_v45  ;;  %v694_v40 = vmul.f32 %v1305_v15, %v1305_v15 }
  0xf3   : > { %1142 = vst [vmem:[%s1311_s18 + $0x8] sm:$0xff] %v1103_v47   ;;  %v769_v54 = vadd.f32 %v768_v46, %v754_v49  ;;  %v759_v44 = vmul.f32 %v1313_v21, %v1313_v21  ;;  %v695_v49 = vmul.f32 %v1315_v26, %v1315_v26 }
  0xf4   : > { %1139 = vst [vmem:[%s1303_s15 + $0x28] sm:$0xff] %v1083_v52   ;;  %1146 = vst [vmem:[%s1311_s18 + $0x28] sm:$0xff] %v1123_v55  }
  0xf5   : > { %v445_v56 = vpop.f32.mrb[8].mxu0 }
  0xf6   : > { %v668_v57 = vadd.f32 %v667_v42, %v445_v56  ;;  %v690_v58 = vmul.f32 %v445_v56, %v445_v56  ;;  %v447_v59 = vpop.f32.mrb[9].mxu0  ;;  %v1343_v63 = vpop.f32.mrb[8].mxu1 }
  0xf7   : > { %v733_v60 = vadd.f32 %v732_v48, %v447_v59  ;;  %v755_v61 = vmul.f32 %v447_v59, %v447_v59  ;;  %v449_v62 = vpop.f32.mrb[10].mxu0  ;;  %v1345_v5 = vpop.f32.mrb[9].mxu1 }
  0xf8   : > { %v705_v0 = vadd.f32 %v704_v51, %v690_v58  ;;  %v1068_v1 = vpack.c.bf16 %v449_v62, %v445_v56  ;;  %v669_v2 = vadd.f32 %v668_v57, %v449_v62  ;;  %v691_v3 = vmul.f32 %v449_v62, %v449_v62  ;;  %v451_v4 = vpop.f32.mrb[11].mxu0  ;;  %v1347_v10 = vpop.f32.mrb[10].mxu1 }
  0xf9   : > { %v770_v6 = vadd.f32 %v769_v54, %v755_v61  ;;  %v1108_v7 = vpack.c.bf16 %v451_v4, %v447_v59  ;;  %v734_v8 = vadd.f32 %v733_v60, %v451_v4  ;;  %v756_v9 = vmul.f32 %v451_v4, %v451_v4  ;;  %v1352_v13 = vpop.f32.mrb[11].mxu1 }
  0xfa   : > { %1136 = vst [vmem:[%s1303_s15 + $0x10] sm:$0xff] %v1068_v1   ;;  %v706_v11 = vadd.f32 %v705_v0, %v691_v3  ;;  %v1088_v12 = vpack.c.bf16 %v1347_v10, %v1343_v63  ;;  %v1128_v16 = vpack.c.bf16 %v1352_v13, %v1345_v5  ;;  %v696_v57 = vmul.f32 %v1327_v39, %v1327_v39 }
  0xfb   : > { %1143 = vst [vmem:[%s1311_s18 + $0x10] sm:$0xff] %v1108_v7   ;;  %v771_v14 = vadd.f32 %v770_v6, %v756_v9  ;;  %v761_v59 = vmul.f32 %v1329_v45, %v1329_v45  ;;  %v697_v61 = vmul.f32 %v1331_v50, %v1331_v50  ;;  %v762_v0 = vmul.f32 %v1336_v53, %v1336_v53 }
  0xfc   : > { %1140 = vst [vmem:[%s1303_s15 + $0x30] sm:$0xff] %v1088_v12   ;;  %1147 = vst [vmem:[%s1311_s18 + $0x30] sm:$0xff] %v1128_v16   ;;  %v698_v3 = vmul.f32 %v1343_v63, %v1343_v63  ;;  %v763_v6 = vmul.f32 %v1345_v5, %v1345_v5  ;;  %v699_v9 = vmul.f32 %v1347_v10, %v1347_v10 }
  0xfd   : > { %v455_v17 = vpop.f32.mrb[12].mxu0 }
  0xfe   : > { %v670_v18 = vadd.f32 %v669_v2, %v455_v17  ;;  %v692_v19 = vmul.f32 %v455_v17, %v455_v17  ;;  %v457_v20 = vpop.f32.mrb[13].mxu0  ;;  %v495_v25 = vpop.f32.mrb[12].mxu1 }
  0xff   : > { %v735_v22 = vadd.f32 %v734_v8, %v457_v20  ;;  %v757_v23 = vmul.f32 %v457_v20, %v457_v20  ;;  %v459_v24 = vpop.f32.mrb[14].mxu0  ;;  %v497_v33 = vpop.f32.mrb[13].mxu1 }
 0x100   : > { %v707_v27 = vadd.f32 %v706_v11, %v692_v19  ;;  %v1073_v28 = vpack.c.bf16 %v459_v24, %v455_v17  ;;  %v671_v30 = vadd.f32 %v670_v18, %v459_v24  ;;  %v693_v31 = vmul.f32 %v459_v24, %v459_v24  ;;  %v461_v32 = vpop.f32.mrb[15].mxu0  ;;  %v499_v38 = vpop.f32.mrb[14].mxu1 }
 0x101   : > { %v772_v34 = vadd.f32 %v771_v14, %v757_v23  ;;  %v1113_v35 = vpack.c.bf16 %v461_v32, %v457_v20  ;;  %v736_v36 = vadd.f32 %v735_v22, %v461_v32  ;;  %v758_v37 = vmul.f32 %v461_v32, %v461_v32  ;;  %v501_v43 = vpop.f32.mrb[15].mxu1 }
 0x102   : > { %1137 = vst [vmem:[%s1303_s15 + $0x18] sm:$0xff] %v1073_v28   ;;  %v672_v41 = vadd.f32 %v671_v30, %v1305_v15  ;;  %v708_v42 = vadd.f32 %v707_v27, %v693_v31  ;;  %v1093_v48 = vpack.c.bf16 %v499_v38, %v495_v25  ;;  %v1133_v54 = vpack.c.bf16 %v501_v43, %v497_v33 }
 0x103   : > { %1144 = vst [vmem:[%s1311_s18 + $0x18] sm:$0xff] %v1113_v35   ;;  %v737_v46 = vadd.f32 %v736_v36, %v1313_v21  ;;  %v773_v47 = vadd.f32 %v772_v34, %v758_v37  ;;  %v760_v15 = vmul.f32 %v1320_v29, %v1320_v29  ;;  %v765_v14 = vmul.f32 %v497_v33, %v497_v33 }
 0x104   : > { %v673_v51 = vadd.f32 %v672_v41, %v1315_v26  ;;  %v709_v52 = vadd.f32 %v708_v42, %v694_v40  ;;  %1141 = vst [vmem:[%s1303_s15 + $0x38] sm:$0xff] %v1093_v48   ;;  %1148 = vst [vmem:[%s1311_s18 + $0x38] sm:$0xff] %v1133_v54   ;;  %v701_v22 = vmul.f32 %v499_v38, %v499_v38  ;;  %v723_v35 = vlaneseq  ;;  %v664_v54 = vld [vmem:[%s1290_s9] sm:$0x3] }
 0x105   : > { %v738_v55 = vadd.f32 %v737_v46, %v1320_v29  ;;  %v774_v56 = vadd.f32 %v773_v47, %v759_v44  ;;  %v766_v27 = vmul.f32 %v501_v43, %v501_v43 }
 0x106   : > { %v710_v21 = vadd.f32 %v709_v52, %v695_v49  ;;  %v674_v58 = vadd.f32 %v673_v51, %v1327_v39  ;;  %v724_v42 = vshrl.u32 %v723_v35, 7 }
 0x107   : > { %v775_v26 = vadd.f32 %v774_v56, %v760_v15  ;;  %v739_v60 = vadd.f32 %v738_v55, %v1329_v45  ;;  %v729_v56 = vld [vmem:[%s1296_s12] sm:$0x3] }
 0x108   : > { %v675_v29 = vadd.f32 %v674_v58, %v1331_v50  ;;  %v711_v62 = vadd.f32 %v710_v21, %v696_v57  ;;  %vm725_vm1 = vcmp.eq.s32.totalorder %v724_v42, 0 }
 0x109   : > { %v740_v1 = vadd.f32 %v739_v60, %v1336_v53  ;;  %v776_v2 = vadd.f32 %v775_v26, %v761_v59  ;;  %v700_v53 = vmul.f32 %v495_v25, %v495_v25 }
 0x10a   : > { %v676_v39 = vadd.f32 %v675_v29, %v1343_v63  ;;  %v712_v4 = vadd.f32 %v711_v62, %v697_v61  ;;  %v764_v63 = vmul.f32 %v1352_v13, %v1352_v13 }
 0x10b   : > { %v741_v45 = vadd.f32 %v740_v1, %v1345_v5  ;;  %v777_v7 = vadd.f32 %v776_v2, %v762_v0 }
 0x10c   : > { %v713_v50 = vadd.f32 %v712_v4, %v698_v3  ;;  %v677_v8 = vadd.f32 %v676_v39, %v1347_v10 }
 0x10d   : > { %v778_v11 = vadd.f32 %v777_v7, %v763_v6  ;;  %v742_v12 = vadd.f32 %v741_v45, %v1352_v13 }
 0x10e   : > { %v714_v16 = vadd.f32 %v713_v50, %v699_v9  ;;  %v678_v17 = vadd.f32 %v677_v8, %v495_v25 }
 0x10f   : > { %v779_v18 = vadd.f32 %v778_v11, %v764_v63  ;;  %v743_v19 = vadd.f32 %v742_v12, %v497_v33 }
 0x110   : > { %v715_v5 = vadd.f32 %v714_v16, %v700_v53  ;;  %v679_v20 = vadd.f32 %v678_v17, %v499_v38 }
 0x111   : > { %v780_v23 = vadd.f32 %v779_v18, %v765_v14  ;;  %v744_v24 = vadd.f32 %v743_v19, %v501_v43 }
 0x112   : > { %v680_v28 = vrot.slane %v679_v20, 4  ;;  %v716_v10 = vadd.f32 %v715_v5, %v701_v22 }
 0x113   : > { %v745_v30 = vrot.slane %v744_v24, 4  ;;  %v781_v31 = vadd.f32 %v780_v23, %v766_v27 }
 0x114   : > { %v681_v32 = vadd.f32 %v680_v28, %v679_v20  ;;  %v717_v34 = vrot.slane %v716_v10, 4 }
 0x115   : > { %v746_v36 = vadd.f32 %v745_v30, %v744_v24  ;;  %v782_v13 = vrot.slane %v781_v31, 4 }
 0x116   : > { %v682_v37 = vrot.slane %v681_v32, 2  ;;  %v718_v25 = vadd.f32 %v717_v34, %v716_v10 }
 0x117   : > { %v747_v40 = vrot.slane %v746_v36, 2  ;;  %v783_v33 = vadd.f32 %v782_v13, %v781_v31 }
 0x118   : > { %v683_v41 = vadd.f32 %v682_v37, %v681_v32  ;;  %v719_v38 = vrot.slane %v718_v25, 2 }
 0x119   : > { %v748_v44 = vadd.f32 %v747_v40, %v746_v36  ;;  %v784_v43 = vrot.slane %v783_v33, 2 }
 0x11a   : > { %v684_v46 = vrot.slane %v683_v41, 1  ;;  %v720_v47 = vadd.f32 %v719_v38, %v718_v25 }
 0x11b   : > { %v749_v48 = vrot.slane %v748_v44, 1  ;;  %v785_v49 = vadd.f32 %v784_v43, %v783_v33 }
 0x11c   : > { %v721_v51 = vrot.slane %v720_v47, 1  ;;  %v685_v15 = vadd.f32 %v684_v46, %v683_v41 }
 0x11d   : > { %v786_v52 = vrot.slane %v785_v49, 1  ;;  %v750_v57 = vadd.f32 %v749_v48, %v748_v44 }
 0x11e   : > { %v722_v55 = vadd.f32 %v721_v51, %v720_v47 }
 0x11f   : > { %v787_v21 = vadd.f32 %v786_v52, %v785_v49 }
 0x120   : > { %v726_v58 = vsel %vm725_vm1, %v685_v15, %v722_v55 }
 0x121   : > { %v727_v59 = vadd.f32 %v726_v58, %v664_v54  ;;  %v788_v26 = vsel %vm725_vm1, %v750_v57, %v787_v21 }
 0x122   : > { %v789_v60 = vadd.f32 %v788_v26, %v729_v56 }
 0x123   : > { %728 = vst [vmem:[%s1290_s9] sm:$0x3] %v727_v59 }
 0x124   : > { %790 = vst [vmem:[%s1296_s12] sm:$0x3] %v789_v60 }
 0x125 PF: > { %s16_s20 = sadd.s32 1, %s1210_s20   ;;  %s1418_s18 = smov %s1206_s19 }
 0x126   : > { %p13_p6 = scmp.ge.s32.totalorder %s16_s20, 4   ;;  %s1419_s19 = smov %s1421_s21 }
 0x128   :  { %15 = sbr.rel (!%p13_p6) target bundleno = 2 (0x2), region = 98 }

// kernel: _lambda_.5
= control target key start
LH: loop header
LB: loop body
LE: loop exit
PB: predicated region body
PF: predicated region fallthrough
CT: control target
= control target key end

     0   :  { %s789_s27 = smov 0   ;;  %s1079_s0 = inlined_call_operand.vmem [shape: bf16[256,128], index: 0, kind: input, shape index: {}]   ;;  %s1080_s1 = inlined_call_operand.vmem [shape: f32[16,128], index: 1, kind: input, shape index: {}]   ;;  %s1081_s2 = inlined_call_operand.vmem [shape: f32[1,128], index: 2, kind: input, shape index: {}]   ;;  %s1082_s3 = inlined_call_operand.vmem [shape: f32[1,128], index: 3, kind: input, shape index: {}]   ;;  %s1083_s4 = inlined_call_operand.vmem [shape: bf16[256,128], index: 4, kind: input, shape index: {}]   ;;  %s1084_s5 = inlined_call_operand.vmem [shape: f32[16,128], index: 5, kind: input, shape index: {}]   ;;  %s1085_s6 = inlined_call_operand.vmem [shape: f32[1,128], index: 6, kind: input, shape index: {}]   ;;  %s1086_s7 = inlined_call_operand.vmem [shape: f32[1,128], index: 7, kind: input, shape index: {}]   ;;  %s1087_s8 = inlined_call_operand.vmem [shape: f32[256,128], index: 8, kind: output, shape index: {}]  }
   0x1 LB: > { %s633_s28 = sadd.s32 4294967295, %s742_s27   ;;  %p637_p0 = scmp.ge.s32.totalorder %s742_s27, 1  ;;  %s742_s27 = sphi %s789_s27, %s18_s27  }
   0x2   : > { %p274_p1 = scmp.lt.s32.totalorder %s742_s27, 3 }
   0x4   : > { %p275_p2 = pnand %p637_p0, %p274_p1 }
   0x5   : > { %s638_s29 = sshll.u32 (!%p275_p2), %s633_s28, 4  ;;  %v331_v0 = vld [vmem:[%s1080_s1] sm:$0x1] (!%p275_p2)  ;;  %v332_v1 = vld [vmem:[%s1080_s1 + $0x1] sm:$0x1] (!%p275_p2)  ;;  %v398_v19 = vlaneseq (!%p275_p2) }
   0x6   : > { %278 = sbr.rel (%p275_p2) target bundleno = 64 (0x40), region = 52  ;;  %p314_p3 = scmp.lt.s32.totalorder (!%p275_p2), %s638_s29, 31  ;;  %v333_v2 = vld [vmem:[%s1080_s1 + $0x8] sm:$0x1] (!%p275_p2)  ;;  %v335_v3 = vld [vmem:[%s1080_s1 + $0x9] sm:$0x1] (!%p275_p2) }
   0x7   : > { %v334_v4 = vadd.f32 (!%p275_p2), %v333_v2, %v331_v0  ;;  %v336_v5 = vadd.f32 (!%p275_p2), %v335_v3, %v332_v1  ;;  %v348_v6 = vld [vmem:[%s1084_s5] sm:$0x1] (!%p275_p2)  ;;  %v349_v7 = vld [vmem:[%s1084_s5 + $0x1] sm:$0x1] (!%p275_p2)  ;;  %v350_v8 = vld [vmem:[%s1084_s5 + $0x8] sm:$0x1] (!%p275_p2) }
   0x8   : > { %v351_v11 = vadd.f32 (!%p275_p2), %v350_v8, %v348_v6  ;;  %v352_v12 = vld [vmem:[%s1084_s5 + $0x9] sm:$0x1] (!%p275_p2)  ;;  %v399_v23 = vshrl.u32 (!%p275_p2), %v398_v19, 7  ;;  %v341_v43 = vld [vmem:[%s1081_s2] sm:$0x1] (!%p275_p2) }
   0x9   : > { %v818_v9 = vmul.f32 (!%p275_p2), 0.0078125, %v334_v4  ;;  %v338_v10 = vmul.f32 (!%p275_p2), 0.0078125, %v336_v5  ;;  %v353_v13 = vadd.f32 (!%p275_p2), %v352_v12, %v349_v7  ;;  %v358_v57 = vld [vmem:[%s1085_s6] sm:$0x1] (!%p275_p2) }
   0xa   : > { %v827_v15 = vmul.f32 (!%p275_p2), 0.0078125, %v351_v11  ;;  %v854_v28 = vsub.s32 (!%p275_p2), 0, %v399_v23  ;;  %v345_v5 = vld [vmem:[%s1082_s3] sm:$0x1] (!%p275_p2) }
   0xb   : > { %v339_v14 = vmul.f32 (!%p275_p2), %v818_v9, %v818_v9  ;;  %v355_v16 = vmul.f32 (!%p275_p2), 0.0078125, %v353_v13 }
   0xc   : > { %v356_v18 = vmul.f32 (!%p275_p2), %v827_v15, %v827_v15 }
   0xd   : > { %s1089_s29 = smov (!%p314_p3, %s638_s29), 31  ;;  %v340_v17 = vsub.f32 %v338_v10, %v339_v14 }
   0xe   : > { %s639_s24 = sshll.u32 %s1089_s29, 2  ;;  %v357_v21 = vsub.f32 %v355_v16, %v356_v18  ;;  %v362_v16 = vld [vmem:[%s1086_s7] sm:$0x1]  ;;  %s643_s19 = sshll.u32 %s1089_s29, 3 }
   0xf   : > { %v342_v20 = vadd.f32 1e-05, %v340_v17  ;;  %s835_s28 = scalar_lea.vmem %s1079_s0, %s639_s24  ;;  %s840_s10 = scalar_lea.vmem %s1083_s4, %s639_s24 }
  0x10   : > { %v359_v22 = vadd.f32 1e-05, %v357_v21  ;;  %v843_v24 = vld [vmem:[%s835_s28] sm:$0xff]   ;;  %v849_v26 = vld [vmem:[%s835_s28 + $0x8] sm:$0xff]   ;;  %v857_v29 = vld [vmem:[%s835_s28 + $0x10] sm:$0xff]   ;;  %s984_s21 = scalar_lea.vmem %s1087_s8, %s643_s19 }
  0x11   : > { %732 = vrsqrt.f32 %v342_v20  ;;  %v846_v25 = vld [vmem:[%s840_s10] sm:$0xff]   ;;  %v852_v27 = vld [vmem:[%s840_s10 + $0x8] sm:$0xff]   ;;  %v860_v30 = vld [vmem:[%s840_s10 + $0x10] sm:$0xff]   ;;  %v648_v31 = vunpack.c.l.bf16 %v843_v24  ;;  %v649_v33 = vunpack.c.h.bf16 %v843_v24  ;;  %v652_v37 = vunpack.c.l.bf16 %v849_v26 }
  0x12   : > { %734 = vrsqrt.f32 %v359_v22  ;;  %v680_v32 = vunpack.c.l.bf16 %v846_v25  ;;  %v681_v34 = vunpack.c.h.bf16 %v846_v25  ;;  %v867_v35 = vld [vmem:[%s835_s28 + $0x18] sm:$0xff]   ;;  %v684_v38 = vunpack.c.l.bf16 %v852_v27  ;;  %v877_v41 = vld [vmem:[%s835_s28 + $0x20] sm:$0xff]   ;;  %v890_v48 = vld [vmem:[%s835_s28 + $0x28] sm:$0xff]  }
  0x13   : > { %v870_v36 = vld [vmem:[%s840_s10 + $0x18] sm:$0xff]   ;;  %v653_v39 = vunpack.c.h.bf16 %v849_v26  ;;  %v685_v40 = vunpack.c.h.bf16 %v852_v27  ;;  %v880_v42 = vld [vmem:[%s840_s10 + $0x20] sm:$0xff]   ;;  %v656_v44 = vunpack.c.l.bf16 %v857_v29  ;;  %v688_v45 = vunpack.c.l.bf16 %v860_v30  ;;  %v893_v49 = vld [vmem:[%s840_s10 + $0x28] sm:$0xff]  }
  0x14   : > { %v657_v46 = vunpack.c.h.bf16 %v857_v29  ;;  %v689_v47 = vunpack.c.h.bf16 %v860_v30  ;;  %v660_v50 = vunpack.c.l.bf16 %v867_v35  ;;  %v692_v51 = vunpack.c.l.bf16 %v870_v36  ;;  %v900_v54 = vld [vmem:[%s835_s28 + $0x30] sm:$0xff]   ;;  %v916_v2 = vld [vmem:[%s835_s28 + $0x38] sm:$0xff]  }
  0x15   : > { %v661_v52 = vunpack.c.h.bf16 %v867_v35  ;;  %v693_v53 = vunpack.c.h.bf16 %v870_v36  ;;  %v903_v55 = vld [vmem:[%s840_s10 + $0x30] sm:$0xff]   ;;  %v664_v58 = vunpack.c.l.bf16 %v877_v41  ;;  %v696_v59 = vunpack.c.l.bf16 %v880_v42  ;;  %v919_v3 = vld [vmem:[%s840_s10 + $0x38] sm:$0xff]  }
  0x16   : > { %v665_v60 = vunpack.c.h.bf16 %v877_v41  ;;  %v697_v61 = vunpack.c.h.bf16 %v880_v42  ;;  %v668_v63 = vunpack.c.l.bf16 %v890_v48  ;;  %v700_v0 = vunpack.c.l.bf16 %v893_v49 }
  0x17   : > { %v669_v1 = vunpack.c.h.bf16 %v890_v48  ;;  %v701_v6 = vunpack.c.h.bf16 %v893_v49  ;;  %v672_v7 = vunpack.c.l.bf16 %v900_v54  ;;  %v704_v8 = vunpack.c.l.bf16 %v903_v55 }
  0x18   : > { %v673_v10 = vunpack.c.h.bf16 %v900_v54  ;;  %v705_v14 = vunpack.c.h.bf16 %v903_v55  ;;  %v676_v17 = vunpack.c.l.bf16 %v916_v2  ;;  %v708_v18 = vunpack.c.l.bf16 %v919_v3 }
  0x19   : > { %v677_v19 = vunpack.c.h.bf16 %v916_v2  ;;  %v709_v20 = vunpack.c.h.bf16 %v919_v3 }
  0x1b   : > { %v733_v56 = vpop.eup %732 }
  0x1c   : > { %v344_v62 = vmul.f32 %v733_v56, %v341_v43  ;;  %v735_v4 = vpop.eup %734 }
  0x1d   : > { %v361_v12 = vmul.f32 %v735_v4, %v358_v57 }
  0x1e   : > { %v346_v11 = vmul.f32 %v344_v62, %v818_v9  ;;  %v930_v13 = vrot.slane %v344_v62, %v854_v28 }
  0x1f   : > { %v363_v9 = vmul.f32 %v361_v12, %v827_v15  ;;  %v943_v23 = vrot.slane %v361_v12, %v854_v28 }
  0x20   : > { %v347_v21 = vsub.f32 %v345_v5, %v346_v11  ;;  %v403_v22 = vmul.f32 %v648_v31, %v930_v13  ;;  %v404_v24 = vmul.f32 %v649_v33, %v930_v13  ;;  %v405_v25 = vmul.f32 %v652_v37, %v930_v13 }
  0x21   : > { %v406_v26 = vmul.f32 %v653_v39, %v930_v13  ;;  %v407_v27 = vmul.f32 %v656_v44, %v930_v13  ;;  %v364_v29 = vsub.f32 %v362_v16, %v363_v9  ;;  %v479_v15 = vmul.f32 %v680_v32, %v943_v23 }
  0x22   : > { %v950_v30 = vrot.slane %v347_v21, %v854_v28  ;;  %v480_v31 = vmul.f32 %v681_v34, %v943_v23  ;;  %v481_v43 = vmul.f32 %v684_v38, %v943_v23  ;;  %v482_v56 = vmul.f32 %v685_v40, %v943_v23 }
  0x23   : > { %v483_v33 = vmul.f32 %v688_v45, %v943_v23  ;;  %v408_v37 = vmul.f32 %v657_v46, %v930_v13  ;;  %v960_v44 = vrot.slane %v364_v29, %v854_v28  ;;  %v484_v40 = vmul.f32 %v689_v47, %v943_v23 }
  0x24   : > { %v425_v39 = vadd.f32 %v950_v30, %v403_v22  ;;  %v426_v57 = vadd.f32 %v950_v30, %v404_v24  ;;  %v427_v62 = vadd.f32 %v950_v30, %v405_v25  ;;  %v428_v32 = vadd.f32 %v950_v30, %v406_v26 }
  0x25   : > { %v429_v34 = vadd.f32 %v950_v30, %v407_v27  ;;  %v430_v38 = vadd.f32 %v950_v30, %v408_v37  ;;  %v501_v45 = vadd.f32 %v960_v44, %v479_v15  ;;  %v502_v46 = vadd.f32 %v960_v44, %v480_v31 }
  0x26   : > { %v503_v28 = vadd.f32 %v960_v44, %v481_v43  ;;  %v504_v4 = vadd.f32 %v960_v44, %v482_v56  ;;  %v505_v5 = vadd.f32 %v960_v44, %v483_v33  ;;  %v506_v11 = vadd.f32 %v960_v44, %v484_v40 }
  0x27   : > { %v409_v12 = vmul.f32 %v660_v50, %v930_v13  ;;  %v485_v47 = vmul.f32 %v692_v51, %v943_v23  ;;  %v517_v16 = vadd.f32 %v501_v45, %v425_v39  ;;  %v518_v21 = vadd.f32 %v502_v46, %v426_v57 }
  0x28   : > { %v519_v9 = vadd.f32 %v503_v28, %v427_v62  ;;  %v520_v22 = vadd.f32 %v504_v4, %v428_v32  ;;  %v521_v24 = vadd.f32 %v505_v5, %v429_v34  ;;  %v522_v25 = vadd.f32 %v506_v11, %v430_v38 }
  0x29   : > { %v431_v50 = vadd.f32 %v950_v30, %v409_v12  ;;  %v507_v26 = vadd.f32 %v960_v44, %v485_v47  ;;  %v533_v51 = vmax.f32 %v517_v16, 0.0  ;;  %v534_v27 = vmax.f32 %v518_v21, 0.0 }
  0x2a   : > { %v535_v29 = vmax.f32 %v519_v9, 0.0  ;;  %v536_v15 = vmax.f32 %v520_v22, 0.0  ;;  %v537_v31 = vmax.f32 %v521_v24, 0.0  ;;  %v538_v43 = vmax.f32 %v522_v25, 0.0 }
  0x2b   : > { %v523_v56 = vadd.f32 %v507_v26, %v431_v50  ;;  %v410_v33 = vmul.f32 %v661_v52, %v930_v13  ;;  %549 = vst [vmem:[%s984_s21] sm:$0xff] %v533_v51  ;;  %550 = vst [vmem:[%s984_s21 + $0x8] sm:$0xff] %v534_v27  ;;  %v486_v37 = vmul.f32 %v693_v53, %v943_v23 }
  0x2c   : > { %551 = vst [vmem:[%s984_s21 + $0x10] sm:$0xff] %v535_v29  ;;  %552 = vst [vmem:[%s984_s21 + $0x18] sm:$0xff] %v536_v15  ;;  %v411_v39 = vmul.f32 %v664_v58, %v930_v13  ;;  %v487_v57 = vmul.f32 %v696_v59, %v943_v23  ;;  %v412_v35 = vmul.f32 %v665_v60, %v930_v13 }
  0x2d   : > { %553 = vst [vmem:[%s984_s21 + $0x20] sm:$0xff] %v537_v31  ;;  %554 = vst [vmem:[%s984_s21 + $0x28] sm:$0xff] %v538_v43  ;;  %v539_v52 = vmax.f32 %v523_v56, 0.0  ;;  %v432_v62 = vadd.f32 %v950_v30, %v410_v33  ;;  %v488_v36 = vmul.f32 %v697_v61, %v943_v23  ;;  %v413_v53 = vmul.f32 %v668_v63, %v930_v13 }
  0x2e   : > { %v508_v58 = vadd.f32 %v960_v44, %v486_v37  ;;  %v433_v59 = vadd.f32 %v950_v30, %v411_v39  ;;  %v509_v41 = vadd.f32 %v960_v44, %v487_v57  ;;  %v434_v60 = vadd.f32 %v950_v30, %v412_v35 }
  0x2f   : > { %555 = vst [vmem:[%s984_s21 + $0x30] sm:$0xff] %v539_v52  ;;  %v510_v32 = vadd.f32 %v960_v44, %v488_v36  ;;  %v435_v34 = vadd.f32 %v950_v30, %v413_v53  ;;  %v489_v42 = vmul.f32 %v700_v0, %v943_v23  ;;  %v414_v61 = vmul.f32 %v669_v1, %v930_v13 }
  0x30   : > { %v524_v63 = vadd.f32 %v508_v58, %v432_v62  ;;  %v525_v38 = vadd.f32 %v509_v41, %v433_v59  ;;  %v490_v40 = vmul.f32 %v701_v6, %v943_v23  ;;  %v415_v45 = vmul.f32 %v672_v7, %v930_v13 }
  0x31   : > { %v526_v46 = vadd.f32 %v510_v32, %v434_v60  ;;  %v511_v28 = vadd.f32 %v960_v44, %v489_v42  ;;  %v436_v0 = vadd.f32 %v950_v30, %v414_v61  ;;  %v491_v48 = vmul.f32 %v704_v8, %v943_v23 }
  0x32   : > { %v540_v1 = vmax.f32 %v524_v63, 0.0  ;;  %v541_v4 = vmax.f32 %v525_v38, 0.0  ;;  %v512_v49 = vadd.f32 %v960_v44, %v490_v40  ;;  %v437_v6 = vadd.f32 %v950_v30, %v415_v45 }
  0x33   : > { %v542_v5 = vmax.f32 %v526_v46, 0.0  ;;  %v527_v11 = vadd.f32 %v511_v28, %v435_v34  ;;  %v513_v7 = vadd.f32 %v960_v44, %v491_v48  ;;  %v416_v12 = vmul.f32 %v673_v10, %v930_v13 }
  0x34   : > { %556 = vst [vmem:[%s984_s21 + $0x38] sm:$0xff] %v540_v1  ;;  %557 = vst [vmem:[%s984_s21 + $0x40] sm:$0xff] %v541_v4  ;;  %v528_v47 = vadd.f32 %v512_v49, %v436_v0  ;;  %v492_v8 = vmul.f32 %v705_v14, %v943_v23  ;;  %v417_v16 = vmul.f32 %v676_v17, %v930_v13 }
  0x35   : > { %v493_v21 = vmul.f32 %v708_v18, %v943_v23  ;;  %558 = vst [vmem:[%s984_s21 + $0x48] sm:$0xff] %v542_v5  ;;  %v543_v54 = vmax.f32 %v527_v11, 0.0  ;;  %v529_v10 = vadd.f32 %v513_v7, %v437_v6  ;;  %v438_v9 = vadd.f32 %v950_v30, %v416_v12 }
  0x36   : > { %v418_v55 = vmul.f32 %v677_v19, %v930_v13  ;;  %v544_v14 = vmax.f32 %v528_v47, 0.0  ;;  %v514_v22 = vadd.f32 %v960_v44, %v492_v8  ;;  %v439_v17 = vadd.f32 %v950_v30, %v417_v16 }
  0x37   : > { %v515_v24 = vadd.f32 %v960_v44, %v493_v21  ;;  %559 = vst [vmem:[%s984_s21 + $0x50] sm:$0xff] %v543_v54  ;;  %v545_v18 = vmax.f32 %v529_v10, 0.0  ;;  %v494_v50 = vmul.f32 %v709_v20, %v943_v23 }
  0x38   : > { %v440_v25 = vadd.f32 %v950_v30, %v418_v55  ;;  %560 = vst [vmem:[%s984_s21 + $0x58] sm:$0xff] %v544_v14  ;;  %v530_v2 = vadd.f32 %v514_v22, %v438_v9 }
  0x39   : > { %v531_v13 = vadd.f32 %v515_v24, %v439_v17  ;;  %561 = vst [vmem:[%s984_s21 + $0x60] sm:$0xff] %v545_v18  ;;  %v516_v19 = vadd.f32 %v960_v44, %v494_v50 }
  0x3a   : > { %v546_v26 = vmax.f32 %v530_v2, 0.0 }
  0x3b   : > { %v547_v51 = vmax.f32 %v531_v13, 0.0  ;;  %v532_v27 = vadd.f32 %v516_v19, %v440_v25 }
  0x3c   : > { %562 = vst [vmem:[%s984_s21 + $0x68] sm:$0xff] %v546_v26 }
  0x3d   : > { %563 = vst [vmem:[%s984_s21 + $0x70] sm:$0xff] %v547_v51  ;;  %v548_v29 = vmax.f32 %v532_v27, 0.0 }
  0x3f   : > { %564 = vst [vmem:[%s984_s21 + $0x78] sm:$0xff] %v548_v29 }
  0x40 PF: > { %s18_s27 = sadd.s32 1, %s742_s27  }
  0x41   : > { %p15_p4 = scmp.ge.s32.totalorder %s18_s27, 4  }
  0x43   :  { %17 = sbr.rel (!%p15_p4) target bundleno = 1 (0x1), region = 85 }

// kernel: _lambda_.4
= control target key start
LH: loop header
LB: loop body
LE: loop exit
PB: predicated region body
PF: predicated region fallthrough
CT: control target
= control target key end

     0   :  { %s3944_s27 = smov 0   ;;  %s3946_s28 = smov 0   ;;  %s4894_s0 = inlined_call_operand.vmem [shape: bf16[256,128], index: 0, kind: input, shape index: {}]   ;;  %s4895_s1 = inlined_call_operand.vmem [shape: f32[16,128], index: 1, kind: input, shape index: {}]   ;;  %s4896_s2 = inlined_call_operand.vmem [shape: f32[1,128], index: 2, kind: input, shape index: {}]   ;;  %s4897_s3 = inlined_call_operand.vmem [shape: f32[1,128], index: 3, kind: input, shape index: {}]   ;;  %s4898_s4 = inlined_call_operand.vmem [shape: bf16[1152,128], index: 4, kind: input, shape index: {}]   ;;  %s4899_s5 = inlined_call_operand.vmem [shape: f32[128,1], index: 5, kind: input, shape index: {}]   ;;  %s4900_s6 = inlined_call_operand.vmem [shape: f32[104,1], index: 6, kind: input, shape index: {}]   ;;  %s4901_s7 = inlined_call_operand.vmem [shape: bf16[256,128], index: 7, kind: output, shape index: {0}]   ;;  %s4902_s8 = inlined_call_operand.vmem [shape: f32[16,128], index: 8, kind: output, shape index: {1}]  }
   0x1   :  { %s3948_s29 = smov 0  }
   0x2 LB: > { %s31_s30 = sadd.s32 1, %s3890_s28  ;;  %p2860_p0 = scmp.ge.s32.totalorder %s3894_s29, 1  ;;  %s3894_s29 = sphi %s3948_s29, %s19_s29   ;;  %s3890_s28 = sphi %s3946_s28, %s4908_s28   ;;  %s3886_s27 = sphi %s3944_s27, %s4907_s27  }
   0x3   : > { %p33_p1 = scmp.ge.s32.totalorder %s31_s30, 2  ;;  %p284_p2 = scmp.lt.s32.totalorder %s3894_s29, 3 }
   0x5   : > { %s4910_s30 = smov (%p33_p1, %s31_s30), 0  ;;  %p285_p3 = pnand %p2860_p0, %p284_p2 }
   0x6   : > { %s2861_s9 = sshll.u32 (!%p285_p3), %s3886_s27, 4  ;;  %v461_v0 = vld [vmem:[%s4899_s5 + $0x10] sm:$0xff] (!%p285_p3)  ;;  %v459_v1 = vld [vmem:[%s4899_s5] sm:$0xff] (!%p285_p3)  ;;  %v3896_v2 = vmov (!%p285_p3), 0   ;;  %v462_v3 = vld [vmem:[%s4899_s5 + $0x18] sm:$0xff] (!%p285_p3)  ;;  %v3897_v5 = vmov (!%p285_p3), 0.0   ;;  %v400_v58 = vlaneseq (!%p285_p3) }
   0x7   : > { %288 = sbr.rel (%p285_p3) target bundleno = 643 (0x283), region = 48  ;;  %3789 = vset.pattern.permute.xlu1 (!%p285_p3), %v3896_v2  ;;  %p326_p4 = scmp.lt.s32.totalorder (!%p285_p3), %s2861_s9, 31  ;;  %3788 = vset.pattern.permute.xlu0 (!%p285_p3), %v3896_v2  ;;  %v460_v4 = vld [vmem:[%s4899_s5 + $0x8] sm:$0xff] (!%p285_p3)  ;;  %v463_v7 = vld [vmem:[%s4899_s5 + $0x20] sm:$0xff] (!%p285_p3)  ;;  %v466_v8 = vld [vmem:[%s4899_s5 + $0x38] sm:$0xff] (!%p285_p3)  ;;  %vm3898_vm0 = vmmov (!%p285_p3), 0  }
   0x8   : > { %487 = vperm.xlu1 (!%p285_p3), %3789, %v461_v0   ;;  %477 = vperm.xlu0 (!%p285_p3), %3788, %v459_v1   ;;  %v464_v6 = vld [vmem:[%s4899_s5 + $0x28] sm:$0xff] (!%p285_p3)  ;;  %v465_v9 = vld [vmem:[%s4899_s5 + $0x30] sm:$0xff] (!%p285_p3)  ;;  %v3790_v10 = vld [vmem:[%s4898_s4 + $0x100] sm:$0xff] (!%p285_p3)   ;;  %v4163_v62 = vshrl.u32 (!%p285_p3), %v400_v58, 7  ;;  %vm627_vm1 = vsmask.f32 (!%p285_p3), 7424 }
   0x9   : > { %3316 = vmatprep.subr.bf16.mxu0 (!%p285_p3), %v3897_v5  ;;  %3140 = vmatprep.subr.bf16.mxu1 (!%p285_p3), %v3897_v5  ;;  %v3791_v11 = vld [vmem:[%s4898_s4 + $0x40] sm:$0xff] (!%p285_p3)   ;;  %v3792_v12 = vld [vmem:[%s4898_s4 + $0x108] sm:$0xff] (!%p285_p3)   ;;  %v470_v16 = vld [vmem:[%s4899_s5 + $0x58] sm:$0xff] (!%p285_p3)  ;;  %vm1377_vm2 = vsmask.f32 (!%p285_p3), 2304  ;;  %vm1624_vm4 = vcmask (!%p285_p3), 1041408  }
   0xa   : > { %3317 = vmatpush3.bf16.msra.mxu0 (!%p285_p3), %v3790_v10  ;;  %3141 = vmatpush3.bf16.msra.mxu1 (!%p285_p3), %v3791_v11  ;;  %v3793_v13 = vld [vmem:[%s4898_s4 + $0x48] sm:$0xff] (!%p285_p3)   ;;  %v467_v15 = vld [vmem:[%s4899_s5 + $0x40] sm:$0xff] (!%p285_p3)  ;;  %v3794_v17 = vld [vmem:[%s4898_s4 + $0x110] sm:$0xff] (!%p285_p3)   ;;  %v402_v1 = vsub.s32 (!%p285_p3), 0, %v4163_v62  ;;  %vm2003_vm3 = vsmask.f32 (!%p285_p3), 5376 }
   0xb   : > { %3318 = vmatprep.subr.bf16.mxu0 (!%p285_p3), %v3897_v5  ;;  %v468_v14 = vld [vmem:[%s4899_s5 + $0x48] sm:$0xff] (!%p285_p3)  ;;  %3142 = vmatprep.subr.bf16.mxu1 (!%p285_p3), %v3897_v5  ;;  %v3795_v18 = vld [vmem:[%s4898_s4 + $0x50] sm:$0xff] (!%p285_p3)   ;;  %v3796_v20 = vld [vmem:[%s4898_s4 + $0x118] sm:$0xff] (!%p285_p3)   ;;  %vm1816_vm5 = vcmask (!%p285_p3), 1045504   ;;  %vm986_vm6 = vcmask (!%p285_p3), 1046528   ;;  %vm1188_vm7 = vcmask (!%p285_p3), 1042432  }
   0xc   : > { %492 = vperm.xlu1 (!%p285_p3), %3789, %v462_v3   ;;  %482 = vperm.xlu0 (!%p285_p3), %3788, %v460_v4   ;;  %v469_v19 = vld [vmem:[%s4899_s5 + $0x50] sm:$0xff] (!%p285_p3)  ;;  %v3797_v21 = vld [vmem:[%s4898_s4 + $0x58] sm:$0xff] (!%p285_p3)   ;;  %v472_v22 = vld [vmem:[%s4899_s5 + $0x68] sm:$0xff] (!%p285_p3)  ;;  %vm2216_vm8 = vcmask (!%p285_p3), 1044480   ;;  %p340_p5 = scmp.lt.s32.totalorder (!%p285_p3), %s3886_s27, 1  ;;  %vm2679_vm9 = vcmask (!%p285_p3), 1043457  }
   0xd   : > { %3156 = vmatprep.mubr.msk.bf16.mxu1 (!%p285_p3), %vm3898_vm0, %v3897_v5  ;;  %3332 = vmatprep.mubr.msk.bf16.mxu0 (!%p285_p3), %vm3898_vm0, %v3897_v5  ;;  %v471_v23 = vld [vmem:[%s4899_s5 + $0x60] sm:$0xff] (!%p285_p3)  ;;  %v474_v26 = vld [vmem:[%s4899_s5 + $0x78] sm:$0xff] (!%p285_p3)  ;;  %v473_v27 = vld [vmem:[%s4899_s5 + $0x70] sm:$0xff] (!%p285_p3)  ;;  %vm2680_vm10 = vsmask.f32 (!%p285_p3), 7942 }
   0xe   : > { %s4912_s9 = smov (!%p326_p4, %s2861_s9), 31  ;;  %3319 = vmatpush3.bf16.msra.mxu0 %v3792_v12  ;;  %3143 = vmatpush3.bf16.msra.mxu1 %v3793_v13  ;;  %v3798_v24 = vld [vmem:[%s4898_s4 + $0x120] sm:$0xff]   ;;  %v3800_v28 = vld [vmem:[%s4898_s4 + $0x128] sm:$0xff]   ;;  %v3802_v32 = vld [vmem:[%s4898_s4 + $0x130] sm:$0xff]   ;;  %s4914_s27 = smov (!%p340_p5, %s3886_s27), 1 }
   0xf   : > { %s2862_s18 = sshll.u32 %s4912_s9, 2  ;;  %3320 = vmatprep.subr.bf16.mxu0 %v3897_v5  ;;  %3144 = vmatprep.subr.bf16.mxu1 %v3897_v5  ;;  %v3799_v25 = vld [vmem:[%s4898_s4 + $0x60] sm:$0xff]   ;;  %v3801_v29 = vld [vmem:[%s4898_s4 + $0x68] sm:$0xff]   ;;  %v3803_v33 = vld [vmem:[%s4898_s4 + $0x70] sm:$0xff]   ;;  %s2865_s20 = sshll.u32 %s4914_s27, 3 }
  0x10   : > { %s3987_s21 = scalar_lea.vmem %s4901_s7, %s2862_s18  ;;  %502 = vperm.xlu1 %3789, %v464_v6   ;;  %497 = vperm.xlu0 %3788, %v463_v7   ;;  %v2387_v30 = vld [vmem:[%s4900_s6 + $0x8] sm:$0xff]  ;;  %v2386_v31 = vld [vmem:[%s4900_s6] sm:$0xff]  ;;  %v2389_v34 = vld [vmem:[%s4900_s6 + $0x18] sm:$0xff]  ;;  %s4170_s26 = scalar_lea.vmem %s4894_s0, %s2862_s18  ;;  %vm2533_vm11 = vsmask.f32 1280 }
  0x11   : > { %2477 = vst [vmem:[%s3987_s21] sm:$0xf] %v3896_v2  ;;  %2492 = vst [vmem:[%s3987_s21 + $0x3c] sm:$0xf] %v3896_v2  ;;  %v2388_v35 = vld [vmem:[%s4900_s6 + $0x10] sm:$0xff]  ;;  %v3804_v36 = vld [vmem:[%s4898_s4 + $0x138] sm:$0xff]   ;;  %s4795_s24 = scalar_lea.vmem %s4902_s8, %s2865_s20 }
  0x12   : > { %2478 = vst [vmem:[%s3987_s21 + $0x4] sm:$0xf] %v3896_v2  ;;  %2479 = vst [vmem:[%s3987_s21 + $0x8] sm:$0xf] %v3896_v2  ;;  %3321 = vmatpush3.bf16.msra.mxu0 %v3794_v17  ;;  %3145 = vmatpush3.bf16.msra.mxu1 %v3795_v18  ;;  %v2391_v37 = vld [vmem:[%s4900_s6 + $0x28] sm:$0xff]  ;;  %v3805_v38 = vld [vmem:[%s4898_s4 + $0x78] sm:$0xff]  }
  0x13   : > { %2480 = vst [vmem:[%s3987_s21 + $0xc] sm:$0xf] %v3896_v2  ;;  %2481 = vst [vmem:[%s3987_s21 + $0x10] sm:$0xf] %v3896_v2  ;;  %3322 = vmatprep.subr.bf16.mxu0 %v3897_v5  ;;  %3146 = vmatprep.subr.bf16.mxu1 %v3897_v5  ;;  %v2390_v39 = vld [vmem:[%s4900_s6 + $0x20] sm:$0xff]  ;;  %v2393_v40 = vld [vmem:[%s4900_s6 + $0x38] sm:$0xff] }
  0x14   : > { %2482 = vst [vmem:[%s3987_s21 + $0x14] sm:$0xf] %v3896_v2  ;;  %2483 = vst [vmem:[%s3987_s21 + $0x18] sm:$0xf] %v3896_v2  ;;  %512 = vperm.xlu1 %3789, %v466_v8   ;;  %507 = vperm.xlu0 %3788, %v465_v9   ;;  %v2392_v41 = vld [vmem:[%s4900_s6 + $0x30] sm:$0xff]  ;;  %v2395_v42 = vld [vmem:[%s4900_s6 + $0x48] sm:$0xff] }
  0x15   : > { %2484 = vst [vmem:[%s3987_s21 + $0x1c] sm:$0xf] %v3896_v2  ;;  %2485 = vst [vmem:[%s3987_s21 + $0x20] sm:$0xf] %v3896_v2  ;;  %v2394_v43 = vld [vmem:[%s4900_s6 + $0x40] sm:$0xff]  ;;  %v2397_v44 = vld [vmem:[%s4900_s6 + $0x58] sm:$0xff] }
  0x16   : > { %2486 = vst [vmem:[%s3987_s21 + $0x24] sm:$0xf] %v3896_v2  ;;  %2487 = vst [vmem:[%s3987_s21 + $0x28] sm:$0xf] %v3896_v2  ;;  %3323 = vmatpush3.bf16.msra.mxu0 %v3796_v20  ;;  %3147 = vmatpush3.bf16.msra.mxu1 %v3797_v21  ;;  %v2396_v45 = vld [vmem:[%s4900_s6 + $0x50] sm:$0xff]  ;;  %v2398_v46 = vld [vmem:[%s4900_s6 + $0x60] sm:$0xff] }
  0x17   : > { %2488 = vst [vmem:[%s3987_s21 + $0x2c] sm:$0xf] %v3896_v2  ;;  %2489 = vst [vmem:[%s3987_s21 + $0x30] sm:$0xf] %v3896_v2  ;;  %3324 = vmatprep.subr.bf16.mxu0 %v3897_v5  ;;  %3148 = vmatprep.subr.bf16.mxu1 %v3897_v5  ;;  %v350_v47 = vld [vmem:[%s4895_s1] sm:$0x1] }
  0x18   : > { %2490 = vst [vmem:[%s3987_s21 + $0x34] sm:$0xf] %v3896_v2  ;;  %2491 = vst [vmem:[%s3987_s21 + $0x38] sm:$0xf] %v3896_v2  ;;  %522 = vperm.xlu1 %3789, %v468_v14   ;;  %517 = vperm.xlu0 %3788, %v467_v15   ;;  %v352_v48 = vld [vmem:[%s4895_s1 + $0x8] sm:$0x1] }
  0x19   : > { %v353_v49 = vadd.f32 %v352_v48, %v350_v47  ;;  %v351_v50 = vld [vmem:[%s4895_s1 + $0x1] sm:$0x1]  ;;  %v354_v51 = vld [vmem:[%s4895_s1 + $0x9] sm:$0x1]  ;;  %v360_v60 = vld [vmem:[%s4896_s2] sm:$0x1]  ;;  %349 = vst [vmem:[%s4795_s24] sm:$0xff] %v3897_v5 }
  0x1a   : > { %3325 = vmatpush3.bf16.msra.mxu0 %v3798_v24  ;;  %3149 = vmatpush3.bf16.msra.mxu1 %v3799_v25  ;;  %v355_v52 = vadd.f32 %v354_v51, %v351_v50  ;;  %v2998_v63 = vld [vmem:[%s4170_s26 + $0x8] sm:$0xff]   ;;  %v364_v2 = vld [vmem:[%s4897_s3] sm:$0x1]  ;;  %v2999_v11 = vld [vmem:[%s4170_s26 + $0x10] sm:$0xff]   ;;  %vm2534_vm12 = vsmask.f32 5392 }
  0x1b   : > { %3326 = vmatprep.subr.bf16.mxu0 %v3897_v5  ;;  %3150 = vmatprep.subr.bf16.mxu1 %v3897_v5  ;;  %v356_v53 = vmul.f32 0.0078125, %v353_v49  ;;  %v2967_v3 = vld [vmem:[%s4170_s26] sm:$0xff]   ;;  %v2972_v4 = vunpack.c.l.bf16 %v2998_v63  ;;  %v2973_v6 = vunpack.c.h.bf16 %v2998_v63  ;;  %v2977_v13 = vunpack.c.h.bf16 %v2999_v11  ;;  %vm4809_vm13 = vmand %vm2679_vm9, %vm2680_vm10 }
  0x1c   : > { %532 = vperm.xlu1 %3789, %v470_v16   ;;  %527 = vperm.xlu0 %3788, %v469_v19   ;;  %v357_v54 = vmul.f32 0.0078125, %v355_v52  ;;  %v2968_v9 = vunpack.c.l.bf16 %v2967_v3  ;;  %v2969_v10 = vunpack.c.h.bf16 %v2967_v3  ;;  %v2976_v14 = vunpack.c.l.bf16 %v2999_v11  ;;  %v3000_v19 = vld [vmem:[%s4170_s26 + $0x18] sm:$0xff]   ;;  %v3001_v24 = vld [vmem:[%s4170_s26 + $0x20] sm:$0xff]   ;;  %vm4816_vm14 = vmor %vm2533_vm11, %vm2534_vm12 }
  0x1d   : > { %v358_v55 = vmul.f32 %v356_v53, %v356_v53  ;;  %vm2697_vm15 = vmand %vm1624_vm4, %vm2533_vm11 }
  0x1e   : > { %3327 = vmatpush3.bf16.msra.mxu0 %v3800_v28  ;;  %3151 = vmatpush3.bf16.msra.mxu1 %v3801_v29 }
  0x1f   : > { %3328 = vmatprep.subr.bf16.mxu0 %v3897_v5  ;;  %3152 = vmatprep.subr.bf16.mxu1 %v3897_v5  ;;  %v359_v56 = vsub.f32 %v357_v54, %v358_v55 }
  0x20   : > { %542 = vperm.xlu1 %3789, %v472_v22   ;;  %537 = vperm.xlu0 %3788, %v471_v23   ;;  %v2981_v22 = vunpack.c.h.bf16 %v3000_v19  ;;  %v2980_v23 = vunpack.c.l.bf16 %v3000_v19 }
  0x21   : > { %v361_v57 = vadd.f32 1e-05, %v359_v56 }
  0x22   : > { %3329 = vmatpush3.bf16.msra.mxu0 %v3802_v32  ;;  %3153 = vmatpush3.bf16.msra.mxu1 %v3803_v33 }
  0x23   : > { %3330 = vmatprep.subr.bf16.mxu0 %v3897_v5  ;;  %3154 = vmatprep.subr.bf16.mxu1 %v3897_v5  ;;  %3862 = vrsqrt.f32 %v361_v57  ;;  %v3004_v57 = vld [vmem:[%s4170_s26 + $0x38] sm:$0xff]  }
  0x24   : > { %552 = vperm.xlu1 %3789, %v474_v26   ;;  %547 = vperm.xlu0 %3788, %v473_v27  }
  0x26   : > { %3331 = vmatpush3.bf16.msra.mxu0 %v3804_v36  ;;  %3155 = vmatpush3.bf16.msra.mxu1 %v3805_v38 }
  0x27   : > { %3360 = vmatprep.subr.bf16.mxu0 %v3897_v5  ;;  %3184 = vmatprep.subr.bf16.mxu1 %v3897_v5 }
  0x28   : > { %2406 = vperm.xlu1 %3789, %v2387_v30   ;;  %2401 = vperm.xlu0 %3788, %v2386_v31   ;;  %v2985_v30 = vunpack.c.h.bf16 %v3001_v24  ;;  %v3002_v31 = vld [vmem:[%s4170_s26 + $0x28] sm:$0xff]  }
  0x2c   : > { %2416 = vperm.xlu1 %3789, %v2389_v34   ;;  %2411 = vperm.xlu0 %3788, %v2388_v35  }
  0x2d   : > { %v3863_v59 = vpop.eup %3862 }
  0x2e   : > { %v363_v61 = vmul.f32 %v3863_v59, %v360_v60 }
  0x30   : > { %2426 = vperm.xlu1 %3789, %v2391_v37   ;;  %2421 = vperm.xlu0 %3788, %v2390_v39   ;;  %v365_v0 = vmul.f32 %v363_v61, %v356_v53  ;;  %v4178_v8 = vrot.slane %v363_v61, %v402_v1  ;;  %v2984_v37 = vunpack.c.l.bf16 %v3001_v24 }
  0x32   : > { %v366_v7 = vsub.f32 %v364_v2, %v365_v0  ;;  %v407_v12 = vmul.f32 %v2972_v4, %v4178_v8  ;;  %v405_v16 = vmul.f32 %v2968_v9, %v4178_v8  ;;  %v408_v17 = vmul.f32 %v2973_v6, %v4178_v8 }
  0x33   : > { %v406_v18 = vmul.f32 %v2969_v10, %v4178_v8  ;;  %v410_v21 = vmul.f32 %v2977_v13, %v4178_v8  ;;  %v409_v28 = vmul.f32 %v2976_v14, %v4178_v8  ;;  %v412_v35 = vmul.f32 %v2981_v22, %v4178_v8 }
  0x34   : > { %2436 = vperm.xlu1 %3789, %v2393_v40   ;;  %2431 = vperm.xlu0 %3788, %v2392_v41   ;;  %v4182_v15 = vrot.slane %v366_v7, %v402_v1  ;;  %v411_v36 = vmul.f32 %v2980_v23, %v4178_v8  ;;  %v413_v52 = vmul.f32 %v2984_v37, %v4178_v8  ;;  %v2997_v7 = vunpack.c.h.bf16 %v3004_v57 }
  0x36   : > { %v429_v20 = vadd.f32 %v4182_v15, %v407_v12  ;;  %v427_v25 = vadd.f32 %v4182_v15, %v405_v16  ;;  %v430_v26 = vadd.f32 %v4182_v15, %v408_v17  ;;  %v428_v27 = vadd.f32 %v4182_v15, %v406_v18 }
  0x37   : > { %v432_v34 = vadd.f32 %v4182_v15, %v410_v21  ;;  %v431_v41 = vadd.f32 %v4182_v15, %v409_v28  ;;  %v434_v50 = vadd.f32 %v4182_v15, %v412_v35  ;;  %v433_v51 = vadd.f32 %v4182_v15, %v411_v36 }
  0x38   : > { %2446 = vperm.xlu1 %3789, %v2395_v42   ;;  %2441 = vperm.xlu0 %3788, %v2394_v43   ;;  %v445_v29 = vmax.f32 %v429_v20, 0.0  ;;  %v443_v38 = vmax.f32 %v427_v25, 0.0  ;;  %v446_v39 = vmax.f32 %v430_v26, 0.0  ;;  %v444_v40 = vmax.f32 %v428_v27, 0.0 }
  0x39   : > { %v2989_v42 = vunpack.c.h.bf16 %v3002_v31  ;;  %v448_v49 = vmax.f32 %v432_v34, 0.0  ;;  %v447_v56 = vmax.f32 %v431_v41, 0.0  ;;  %v450_v3 = vmax.f32 %v434_v50, 0.0  ;;  %v3811_v50 = vld [vmem:[%s4898_s4 + $0x8] sm:$0xff]  }
  0x3a   : > { %v449_v4 = vmax.f32 %v433_v51, 0.0  ;;  %v435_v11 = vadd.f32 %v4182_v15, %v413_v52  ;;  %v2996_v17 = vunpack.c.l.bf16 %v3004_v57  ;;  %v420_v34 = vmul.f32 %v2997_v7, %v4178_v8  ;;  %v3806_v7 = vld [vmem:[%s4898_s4 + $0x140] sm:$0xff]  }
  0x3b   : > { %v416_v58 = vmul.f32 %v2989_v42, %v4178_v8 }
  0x3c   : > { %2456 = vperm.xlu1 %3789, %v2397_v44   ;;  %2451 = vperm.xlu0 %3788, %v2396_v45   ;;  %v414_v44 = vmul.f32 %v2985_v30, %v4178_v8  ;;  %v2988_v45 = vunpack.c.l.bf16 %v3002_v31  ;;  %v451_v30 = vmax.f32 %v435_v11, 0.0  ;;  %v419_v35 = vmul.f32 %v2996_v17, %v4178_v8 }
  0x3d   : > { %v438_v13 = vadd.f32 %v4182_v15, %v416_v58 }
  0x3e   : > { %v415_v63 = vmul.f32 %v2988_v45, %v4178_v8  ;;  %v436_v6 = vadd.f32 %v4182_v15, %v414_v44 }
  0x3f   : > { %v454_v37 = vmax.f32 %v438_v13, 0.0 }
  0x40   : > { %2461 = vperm.xlu0 %3788, %v2398_v46   ;;  %v3003_v46 = vld [vmem:[%s4170_s26 + $0x30] sm:$0xff]   ;;  %v437_v19 = vadd.f32 %v4182_v15, %v415_v63  ;;  %v452_v24 = vmax.f32 %v436_v6, 0.0 }
  0x41   : > { %v2993_v59 = vunpack.c.h.bf16 %v3003_v46  ;;  %v2992_v0 = vunpack.c.l.bf16 %v3003_v46 }
  0x42   : > { %v453_v42 = vmax.f32 %v437_v19, 0.0 }
  0x43   : > { %v418_v14 = vmul.f32 %v2993_v59, %v4178_v8  ;;  %v417_v25 = vmul.f32 %v2992_v0, %v4178_v8  ;;  %v442_v0 = vadd.f32 %v4182_v15, %v420_v34  ;;  %v3809_v34 = vld [vmem:[%s4898_s4 + $0x150] sm:$0xff]  }
  0x45   : > { %v458_v19 = vmax.f32 %v442_v0, 0.0  ;;  %v3821_v0 = vld [vmem:[%s4898_s4 + $0x28] sm:$0xff]  }
  0x87   : > { %v488_v32 = vpop.permute.xlu1 %487  ;;  %v478_v33 = vpop.permute.xlu0 %477 }
  0x88   : > { %v557_v43 = vmul.f32 %v488_v32, %v445_v29  ;;  %v555_v53 = vmul.f32 %v478_v33, %v443_v38  ;;  %v3808_v32 = vld [vmem:[%s4898_s4] sm:$0xff]   ;;  %v440_v33 = vadd.f32 %v4182_v15, %v418_v14  ;;  %v3814_v14 = vld [vmem:[%s4898_s4 + $0x10] sm:$0xff]  }
  0x8a   : > { %v456_v59 = vmax.f32 %v440_v33, 0.0 }
  0x8b   : > { %v493_v47 = vpop.permute.xlu1 %492  ;;  %v483_v48 = vpop.permute.xlu0 %482 }
  0x8c   : > { %v558_v54 = vmul.f32 %v493_v47, %v446_v39  ;;  %v556_v55 = vmul.f32 %v483_v48, %v444_v40 }
  0x8e   : > { %v4207_v60 = vpack.c.bf16 %v558_v54, %v557_v43  ;;  %v4209_v61 = vpack.c.bf16 %v556_v55, %v555_v53  ;;  %v439_v43 = vadd.f32 %v4182_v15, %v417_v25 }
  0x8f   : > { %v503_v1 = vpop.permute.xlu1 %502  ;;  %v498_v2 = vpop.permute.xlu0 %497 }
  0x90   : > { %580 = vst [vmem:[#allocation2 + $0x8] sm:$0xff] %v4207_v60  ;;  %579 = vst [vmem:[#allocation2] sm:$0xff] %v4209_v61  ;;  %v560_v9 = vmul.f32 %v503_v1, %v448_v49  ;;  %v559_v10 = vmul.f32 %v498_v2, %v447_v56  ;;  %v631_v12 = vshll.u32 %v4209_v61, 16  ;;  %v636_v16 = vshll.u32 %v4207_v60, 16 }
  0x91   : > { %v629_v20 = vshrl.u32 %v4209_v61, 16  ;;  %v1387_v27 = vshrl.u32 %v4207_v60, 16  ;;  %v455_v63 = vmax.f32 %v439_v43, 0.0  ;;  %v441_v1 = vadd.f32 %v4182_v15, %v419_v35  ;;  %v3819_v43 = vld [vmem:[%s4898_s4 + $0x20] sm:$0xff]  }
  0x92   : > { %v4220_v18 = vpack.c.bf16 %v560_v9, %v559_v10  ;;  %v633_v21 = vrot.slane %v631_v12, 1  ;;  %v638_v26 = vrot.slane %v636_v16, 1  ;;  %v1392_v46 = vrot.slane %v636_v16, 6 }
  0x93   : > { %v513_v22 = vpop.permute.xlu1 %512  ;;  %v508_v23 = vpop.permute.xlu0 %507  ;;  %v1389_v45 = vrot.slane %v1387_v27, 5 }
  0x94   : > { %v562_v28 = vmul.f32 %v513_v22, %v450_v3  ;;  %v561_v29 = vmul.f32 %v508_v23, %v449_v4  ;;  %v634_v31 = vor.u32 %v633_v21, %v629_v20  ;;  %v4236_v39 = vshll.u32 %v4220_v18, 16  ;;  %v3807_v23 = vld [vmem:[%s4898_s4 + $0x148] sm:$0xff]  }
  0x95   : > { %v642_v51 = vor.u32 %v1387_v27, %v638_v26  ;;  %v4249_v52 = vshrl.u32 %v4220_v18, 16  ;;  %v1393_v6 = vor.u32 %v1392_v46, %v1389_v45  ;;  %v457_v22 = vmax.f32 %v441_v1, 0.0  ;;  %v3810_v45 = vld [vmem:[%s4898_s4 + $0x158] sm:$0xff]  }
  0x96   : > { %v4232_v36 = vpack.c.bf16 %v562_v28, %v561_v29  ;;  %v639_v38 = vsel %vm627_vm1, %v634_v31, %v638_v26  ;;  %v646_v56 = vrot.slane %v4236_v39, 1  ;;  %v1401_v10 = vrot.slane %v4236_v39, 6  ;;  %v3817_v28 = vld [vmem:[%s4898_s4 + $0x18] sm:$0xff]  }
  0x97   : > { %v523_v40 = vpop.permute.xlu1 %522  ;;  %v518_v41 = vpop.permute.xlu0 %517  ;;  %3157 = vmatmul.mubr.bf16.vlgmr.msra.gmra.mrb[0].mxu1 %v639_v38  ;;  %v4239_v44 = vld [vmem:[#allocation2] sm:$0xe0]  ;;  %v1398_v9 = vrot.slane %v4249_v52, 5 }
  0x98   : > { %v564_v47 = vmul.f32 %v523_v40, %v452_v24  ;;  %v563_v8 = vmul.f32 %v518_v41, %v451_v30  ;;  %v1379_v48 = vshrl.u32 %v4239_v44, 16  ;;  %v1382_v49 = vshll.u32 %v4239_v44, 16  ;;  %3160 = vmatprep.mubr.msk.bf16.mxu1 %vm3898_vm0, %v3897_v5  ;;  %3185 = vmatpush3.bf16.msra.mxu1 %v3808_v32 }
  0x99   : > { %3186 = vmatprep.subr.bf16.mxu1 %v3897_v5  ;;  %v647_v12 = vsel %vm627_vm1, %v642_v51, %v646_v56  ;;  %v4268_v13 = vshll.u32 %v4232_v36, 16  ;;  %v1405_v24 = vshrl.u32 %v4232_v36, 16  ;;  %v1402_v26 = vor.u32 %v1401_v10, %v1398_v9  ;;  %v3812_v51 = vld [vmem:[%s4898_s4 + $0x160] sm:$0xff]  }
  0x9a   : > { %v4252_v53 = vpack.c.bf16 %v564_v47, %v563_v8  ;;  %v1381_v54 = vrot.slane %v1379_v48, 5  ;;  %v1384_v55 = vrot.slane %v1382_v49, 6  ;;  %v650_v31 = vor.u32 %v4249_v52, %v646_v56 }
  0x9b   : > { %v533_v57 = vpop.permute.xlu1 %532  ;;  %v528_v58 = vpop.permute.xlu0 %527  ;;  %v654_v27 = vrot.slane %v4268_v13, 1  ;;  %v1407_v35 = vrot.slane %v1405_v24, 5  ;;  %v1403_v40 = vsel %vm1377_vm2, %v1393_v6, %v1402_v26  ;;  %v2012_v48 = vrot.slane %v4249_v52, 2 }
  0x9c   : > { %v566_v2 = vmul.f32 %v533_v57, %v454_v37  ;;  %v565_v3 = vmul.f32 %v528_v58, %v453_v42  ;;  %v1385_v4 = vor.u32 %v1384_v55, %v1381_v54  ;;  %3187 = vmatpush3.bf16.msra.mxu1 %v3811_v50  ;;  %v1410_v37 = vrot.slane %v4268_v13, 6 }
  0x9d   : > { %3188 = vmatprep.subr.bf16.mxu1 %v3897_v5  ;;  %v655_v41 = vsel %vm627_vm1, %v650_v31, %v654_v27  ;;  %v660_v42 = vshll.u32 %v4252_v53, 16  ;;  %v1414_v47 = vshrl.u32 %v4252_v53, 16  ;;  %v2013_v49 = vrot.slane %v4236_v39, 3  ;;  %v3824_v31 = vld [vmem:[%s4898_s4 + $0x38] sm:$0xff]  }
  0x9e   : > { %v4263_v11 = vpack.c.bf16 %v566_v2, %v565_v3  ;;  %v1394_v15 = vsel %vm1377_vm2, %v1385_v4, %v1393_v6  ;;  %v1411_v46 = vor.u32 %v1410_v37, %v1407_v35  ;;  %v658_v54 = vor.u32 %v1405_v24, %v654_v27  ;;  %v3813_v4 = vld [vmem:[%s4898_s4 + $0x168] sm:$0xff]  }
  0x9f   : > { %v543_v16 = vpop.permute.xlu1 %542  ;;  %v538_v17 = vpop.permute.xlu0 %537  ;;  %3333 = vmatmul.mubr.bf16.vlgmr.msra.gmra.mrb[0].mxu0 %v1394_v15  ;;  %3161 = vmatmul.mubr.bf16.gmra.mrb[4].mxu1 %v647_v12  ;;  %v662_v8 = vrot.slane %v660_v42, 1  ;;  %v1416_v55 = vrot.slane %v1414_v47, 5  ;;  %v1419_v56 = vrot.slane %v660_v42, 6  ;;  %v4323_v52 = vor.u32 %v2013_v49, %v2012_v48  ;;  %v3823_v12 = vld [vmem:[%s4898_s4 + $0x30] sm:$0xff]  }
  0xa0   : > { %v568_v20 = vmul.f32 %v543_v16, %v456_v59  ;;  %v567_v21 = vmul.f32 %v538_v17, %v455_v63  ;;  %3361 = vmatpush3.bf16.msra.mxu0 %v3806_v7  ;;  %3336 = vmatprep.mubr.msk.bf16.mxu0 %vm3898_vm0, %v3897_v5  ;;  %v1412_v50 = vsel %vm1377_vm2, %v1402_v26, %v1411_v46  ;;  %v4321_v57 = vshrl.u32 %v4263_v11, 16 }
  0xa1   : > { %3362 = vmatprep.subr.bf16.mxu0 %v3897_v5  ;;  %3164 = vmatprep.mubr.msk.bf16.mxu1 %vm3898_vm0, %v3897_v5  ;;  %v2016_v39 = vrot.slane %v1405_v24, 2  ;;  %v2017_v58 = vrot.slane %v4268_v13, 3  ;;  %v663_v59 = vsel %vm627_vm1, %v658_v54, %v662_v8  ;;  %v4328_v63 = vshll.u32 %v4263_v11, 16 }
  0xa2   : > { %v4282_v25 = vpack.c.bf16 %v568_v20, %v567_v21  ;;  %3189 = vmatpush3.bf16.msra.mxu1 %v3814_v14  ;;  %v2020_v1 = vrot.slane %v1414_v47, 2  ;;  %v2021_v2 = vrot.slane %v660_v42, 3  ;;  %v2024_v9 = vrot.slane %v4321_v57, 2  ;;  %v3815_v20 = vld [vmem:[%s4898_s4 + $0x170] sm:$0xff]  }
  0xa3   : > { %v553_v29 = vpop.permute.xlu1 %552  ;;  %v548_v30 = vpop.permute.xlu0 %547  ;;  %3190 = vmatprep.subr.bf16.mxu1 %v3897_v5  ;;  %v2018_v3 = vor.u32 %v2017_v58, %v2016_v39  ;;  %v1420_v10 = vor.u32 %v1419_v56, %v1416_v55  ;;  %v670_v15 = vrot.slane %v4328_v63, 1  ;;  %v2025_v13 = vrot.slane %v4328_v63, 3  ;;  %v3820_v39 = vld [vmem:[%s4898_s4 + $0x188] sm:$0xff]  }
  0xa4   : > { %585 = vst [vmem:[#allocation2 + $0x30] sm:$0xff] %v4282_v25  ;;  %v570_v32 = vmul.f32 %v553_v29, %v458_v19  ;;  %v569_v33 = vmul.f32 %v548_v30, %v457_v22  ;;  %3363 = vmatpush3.bf16.msra.mxu0 %v3807_v23  ;;  %v2022_v7 = vor.u32 %v2021_v2, %v2020_v1  ;;  %v1432_v17 = vshrl.u32 %v4282_v25, 16  ;;  %v1605_v30 = vld [vmem:[#allocation2] sm:$0xc0]  ;;  %v3822_v2 = vld [vmem:[%s4898_s4 + $0x190] sm:$0xff]  }
  0xa5   : > { %3364 = vmatprep.subr.bf16.mxu0 %v3897_v5  ;;  %v4343_v6 = vsel %vm2003_vm3, %v4323_v52, %v2018_v3  ;;  %v1435_v19 = vshll.u32 %v4282_v25, 16  ;;  %v666_v21 = vor.u32 %v1414_v47, %v662_v8  ;;  %v2026_v22 = vor.u32 %v2025_v13, %v2024_v9  ;;  %v3828_v13 = vld [vmem:[%s4898_s4 + $0x1a8] sm:$0xff]  }
  0xa6   : > { %v578_v38 = vpack.c.bf16 %v570_v32, %v569_v33  ;;  %3191 = vmatpush3.bf16.msra.mxu1 %v3817_v28  ;;  %v4355_v16 = vsel %vm2003_vm3, %v2018_v3, %v2022_v7  ;;  %v2028_v23 = vrot.slane %v1432_v17, 2  ;;  %v1421_v26 = vsel %vm1377_vm2, %v1411_v46, %v1420_v10  ;;  %v3816_v33 = vld [vmem:[%s4898_s4 + $0x178] sm:$0xff]  }
  0xa7   : > { %3337 = vmatmul.mubr.bf16.gmra.mrb[4].mxu0 %v1403_v40  ;;  %3165 = vmatmul.mubr.bf16.gmra.mrb[8].mxu1 %v655_v41  ;;  %v2029_v24 = vrot.slane %v1435_v19, 3  ;;  %v671_v27 = vsel %vm627_vm1, %v666_v21, %v670_v15  ;;  %v4367_v29 = vsel %vm2003_vm3, %v2022_v7, %v2026_v22  ;;  %v1625_v35 = vrot.slane %v1605_v30, 6  ;;  %v3825_v7 = vld [vmem:[%s4898_s4 + $0x198] sm:$0xff]  }
  0xa8   : > { %586 = vst [vmem:[#allocation2 + $0x38] sm:$0xff] %v578_v38  ;;  %3365 = vmatpush3.bf16.msra.mxu0 %v3809_v34  ;;  %3340 = vmatprep.mubr.msk.bf16.mxu0 %vm3898_vm0, %v3897_v5  ;;  %v1425_v40 = vrot.slane %v4321_v57, 5  ;;  %v1428_v41 = vrot.slane %v4328_v63, 6  ;;  %v1626_v42 = vrot.slane %v4207_v60, 6  ;;  %v1434_v46 = vrot.slane %v1432_v17, 5  ;;  %v3829_v17 = vld [vmem:[%s4898_s4 + $0x88] sm:$0xff]  }
  0xa9   : > { %3366 = vmatprep.subr.bf16.mxu0 %v3897_v5  ;;  %3168 = vmatprep.mubr.msk.bf16.mxu1 %vm3898_vm0, %v3897_v5  ;;  %v4372_v32 = vor.u32 %v2029_v24, %v2028_v23  ;;  %v1437_v47 = vrot.slane %v1435_v19, 6  ;;  %v1628_v63 = vrot.slane %v4220_v18, 6  ;;  %v1630_v9 = vrot.slane %v4232_v36, 6  ;;  %v3833_v23 = vld [vmem:[%s4898_s4 + $0x98] sm:$0xff]  }
  0xaa   : > { %3192 = vmatprep.subr.bf16.mxu1 %v3897_v5  ;;  %v1429_v8 = vor.u32 %v1428_v41, %v1425_v40  ;;  %v1632_v19 = vrot.slane %v4252_v53, 6  ;;  %v1634_v24 = vrot.slane %v4263_v11, 6  ;;  %v1636_v30 = vrot.slane %v4282_v25, 6  ;;  %v4514_v41 = vld [vmem:[#allocation2 + $0x8] sm:$0xfc] }
  0xab   : > { %3193 = vmatpush3.bf16.msra.mxu1 %v3819_v43  ;;  %v4351_v14 = vld [vmem:[#allocation2 + $0x30] sm:$0x1f]  ;;  %v4384_v34 = vsel %vm2003_vm3, %v2026_v22, %v4372_v32  ;;  %v3818_v43 = vld [vmem:[%s4898_s4 + $0x180] sm:$0xff]   ;;  %v1438_v54 = vor.u32 %v1437_v47, %v1434_v46  ;;  %v3832_v22 = vld [vmem:[%s4898_s4 + $0x1b8] sm:$0xff]   ;;  %v1820_v47 = vrot.slane %v4232_v36, 2 }
  0xac   : > { %3367 = vmatpush3.bf16.msra.mxu0 %v3810_v45  ;;  %3194 = vmatprep.subr.bf16.mxu1 %v3897_v5  ;;  %v676_v28 = vshll.u32 %v4351_v14, 16  ;;  %v674_v45 = vor.u32 %v4321_v57, %v670_v15  ;;  %v4403_v55 = vsel %vm1377_vm2, %v1420_v10, %v1429_v8  ;;  %v3826_v10 = vld [vmem:[%s4898_s4 + $0x1a0] sm:$0xff]   ;;  %v1633_v21 = vsel %vm1624_vm4, %v1630_v9, %v1632_v19  ;;  %v3836_v46 = vld [vmem:[%s4898_s4 + $0x1c8] sm:$0xff]  }
  0xad   : > { %3368 = vmatprep.subr.bf16.mxu0 %v3897_v5  ;;  %v4411_v58 = vsel %vm1377_vm2, %v1429_v8, %v1438_v54  ;;  %v3827_v15 = vld [vmem:[%s4898_s4 + $0x80] sm:$0xff]   ;;  %v3838_v8 = vld [vmem:[%s4898_s4 + $0x1d0] sm:$0xff]  }
  0xae   : > { %v678_v37 = vrot.slane %v676_v28, 1  ;;  %v3837_v28 = vld [vmem:[%s4898_s4 + $0xa8] sm:$0xff]  }
  0xaf   : > { %3341 = vmatmul.mubr.bf16.gmra.mrb[8].mxu0 %v1412_v50  ;;  %3169 = vmatmul.mubr.bf16.gmra.mrb[12].mxu1 %v663_v59  ;;  %v4387_v38 = vld [vmem:[#allocation2 + $0x38] sm:$0x3]  ;;  %v1627_v50 = vsel %vm1624_vm4, %v1625_v35, %v1626_v42 }
  0xb0   : > { %3369 = vmatpush3.bf16.msra.mxu0 %v3812_v51  ;;  %3344 = vmatprep.mubr.msk.bf16.mxu0 %vm3898_vm0, %v3897_v5  ;;  %v1441_v48 = vshrl.u32 %v4387_v38, 16  ;;  %v1444_v49 = vshll.u32 %v4387_v38, 16  ;;  %v679_v51 = vsel %vm627_vm1, %v674_v45, %v678_v37  ;;  %v3840_v35 = vld [vmem:[%s4898_s4 + $0xb8] sm:$0xff]  }
  0xb1   : > { %3370 = vmatprep.subr.bf16.mxu0 %v3897_v5  ;;  %3172 = vmatprep.mubr.msk.bf16.mxu1 %vm3898_vm0, %v3897_v5 }
  0xb2   : > { %3195 = vmatpush3.bf16.msra.mxu1 %v3821_v0  ;;  %v1443_v56 = vrot.slane %v1441_v48, 5  ;;  %v1446_v57 = vrot.slane %v1444_v49, 6  ;;  %v680_v0 = vshrl.u32 %v4351_v14, 16  ;;  %v593_v49 = vld [vmem:[#allocation2 + $0x30] sm:$0xf] }
  0xb3   : > { %3196 = vmatprep.subr.bf16.mxu1 %v3897_v5 }
  0xb4   : > { %3371 = vmatpush3.bf16.msra.mxu0 %v3813_v4  ;;  %v1447_v59 = vor.u32 %v1446_v57, %v1443_v56  ;;  %v682_v3 = vor.u32 %v680_v0, %v678_v37  ;;  %v1629_v4 = vsel %vm1624_vm4, %v1626_v42, %v1628_v63  ;;  %v1638_v37 = vrot.slane %v4387_v38, 6 }
  0xb5   : > { %3372 = vmatprep.subr.bf16.mxu0 %v3897_v5  ;;  %v1817_v38 = vrot.slane %v4514_v41, 2  ;;  %v1818_v42 = vrot.slane %v4220_v18, 2  ;;  %v988_v57 = vrot.slane %v4207_v60, 1 }
  0xb6   : > { %3197 = vmatpush3.bf16.msra.mxu1 %v3823_v12  ;;  %v4419_v1 = vsel %vm1377_vm2, %v1438_v54, %v1447_v59  ;;  %v1631_v12 = vsel %vm1624_vm4, %v1628_v63, %v1630_v9  ;;  %v1639_v40 = vsel %vm1624_vm4, %v1636_v30, %v1638_v37  ;;  %v1822_v54 = vrot.slane %v4252_v53, 2  ;;  %v3843_v59 = vld [vmem:[%s4898_s4 + $0xc0] sm:$0xff]   ;;  %v3846_v9 = vld [vmem:[%s4898_s4 + $0x1f0] sm:$0xff]  }
  0xb7   : > { %3345 = vmatmul.mubr.bf16.gmra.mrb[12].mxu0 %v1421_v26  ;;  %3173 = vmatmul.mubr.bf16.gmra.mrb[16].mxu1 %v671_v27  ;;  %v3835_v26 = vld [vmem:[%s4898_s4 + $0xa0] sm:$0xff]   ;;  %v1635_v27 = vsel %vm1624_vm4, %v1632_v19, %v1634_v24  ;;  %v1819_v45 = vsel %vm1816_vm5, %v1817_v38, %v1818_v42  ;;  %v1821_v48 = vsel %vm1816_vm5, %v1818_v42, %v1820_v47  ;;  %v1826_v19 = vrot.slane %v4282_v25, 2 }
  0xb8   : > { %3373 = vmatpush3.bf16.msra.mxu0 %v3815_v20  ;;  %3376 = vmatprep.mubr.msk.bf16.mxu0 %vm3898_vm0, %v3897_v5  ;;  %v3831_v20 = vld [vmem:[%s4898_s4 + $0x90] sm:$0xff]   ;;  %v1823_v63 = vsel %vm1816_vm5, %v1820_v47, %v1822_v54  ;;  %v2005_v37 = vshrl.u32 %v4514_v41, 16 }
  0xb9   : > { %3374 = vmatprep.subr.bf16.mxu0 %v3897_v5  ;;  %3176 = vmatprep.mubr.msk.bf16.mxu1 %vm3898_vm0, %v3897_v5 }
  0xba   : > { %3198 = vmatprep.subr.bf16.mxu1 %v3897_v5  ;;  %v2007_v42 = vrot.slane %v2005_v37, 2 }
  0xbb   : > { %3199 = vmatpush3.bf16.msra.mxu1 %v3824_v31  ;;  %v3839_v31 = vld [vmem:[%s4898_s4 + $0xb0] sm:$0xff]  }
  0xbc   : > { %3375 = vmatpush3.bf16.msra.mxu0 %v3816_v33  ;;  %3228 = vmatprep.subr.bf16.mxu1 %v3897_v5  ;;  %v1637_v33 = vsel %vm1624_vm4, %v1634_v24, %v1636_v30  ;;  %v3853_v24 = vld [vmem:[%s4898_s4 + $0xe8] sm:$0xff]  }
  0xbd   : > { %3404 = vmatprep.subr.bf16.mxu0 %v3897_v5 }
  0xbf   : > { %3377 = vmatmul.mubr.bf16.vlgmr.msra.gmra.mrb[0].mxu0 %v1627_v50  ;;  %3177 = vmatmul.mubr.bf16.gmra.mrb[20].mxu1 %v679_v51  ;;  %v962_v50 = vld [vmem:[#allocation2] sm:$0xfe]  ;;  %v3841_v51 = vld [vmem:[%s4898_s4 + $0x1d8] sm:$0xff]  }
  0xc0   : > { %3405 = vmatpush3.bf16.msra.mxu0 %v3818_v43  ;;  %3380 = vmatprep.mubr.msk.bf16.mxu0 %vm3898_vm0, %v3897_v5  ;;  %v3834_v43 = vld [vmem:[%s4898_s4 + $0x1c0] sm:$0xff]   ;;  %v987_v56 = vrot.slane %v962_v50, 1  ;;  %v1190_v50 = vrot.slane %v4207_v60, 5 }
  0xc1   : > { %3406 = vmatprep.subr.bf16.mxu0 %v3897_v5  ;;  %3180 = vmatprep.mubr.msk.bf16.mxu1 %vm3898_vm0, %v3897_v5 }
  0xc2   : > { %v989_v0 = vsel %vm986_vm6, %v987_v56, %v988_v57  ;;  %v3860_v56 = vld [vmem:[%s4898_s4 + $0x230] sm:$0xff]  }
  0xc4   : > { %3407 = vmatpush3.bf16.msra.mxu0 %v3820_v39  ;;  %v3842_v39 = vld [vmem:[%s4898_s4 + $0x1e0] sm:$0xff]  }
  0xc5   : > { %3408 = vmatprep.subr.bf16.mxu0 %v3897_v5 }
  0xc7   : > { %3381 = vmatmul.mubr.bf16.gmra.mrb[4].mxu0 %v1629_v4  ;;  %3181 = vmatmul.mubr.bf16.gmra.mrb[24].mxu1 %v682_v3  ;;  %v3845_v3 = vld [vmem:[%s4898_s4 + $0xc8] sm:$0xff]   ;;  %v1824_v4 = vrot.slane %v4263_v11, 2 }
  0xc8   : > { %3409 = vmatpush3.bf16.msra.mxu0 %v3822_v2  ;;  %3384 = vmatprep.mubr.msk.bf16.mxu0 %vm3898_vm0, %v3897_v5  ;;  %v3844_v2 = vld [vmem:[%s4898_s4 + $0x1e8] sm:$0xff]  }
  0xc9   : > { %3410 = vmatprep.subr.bf16.mxu0 %v3897_v5  ;;  %3200 = vmatprep.mubr.msk.bf16.mxu1 %vm3898_vm0, %v3897_v5 }
  0xcc   : > { %3411 = vmatpush3.bf16.msra.mxu0 %v3825_v7  ;;  %v990_v7 = vrot.slane %v4220_v18, 1 }
  0xcd   : > { %3412 = vmatprep.subr.bf16.mxu0 %v3897_v5 }
  0xcf   : > { %3385 = vmatmul.mubr.bf16.gmra.mrb[8].mxu0 %v1631_v12  ;;  %3201 = vmatmul.mubr.bf16.vlgmr.msra.gmra.mrb[0].mxu1 %v4209_v61  ;;  %v3830_v61 = vld [vmem:[%s4898_s4 + $0x1b0] sm:$0xff]   ;;  %v991_v12 = vsel %vm986_vm6, %v988_v57, %v990_v7 }
  0xd0   : > { %3388 = vmatprep.mubr.msk.bf16.mxu0 %vm3898_vm0, %v3897_v5  ;;  %3413 = vmatpush3.bf16.msra.mxu0 %v3826_v10  ;;  %v3847_v10 = vld [vmem:[%s4898_s4 + $0xd0] sm:$0xff]  }
  0xd1   : > { %3204 = vmatprep.mubr.msk.bf16.mxu1 %vm3898_vm0, %v3897_v5  ;;  %3229 = vmatpush3.bf16.msra.mxu1 %v3827_v15  ;;  %v1825_v15 = vsel %vm1816_vm5, %v1822_v54, %v1824_v4  ;;  %v1192_v54 = vrot.slane %v4220_v18, 5 }
  0xd2   : > { %3414 = vmatprep.subr.bf16.mxu0 %v3897_v5  ;;  %3230 = vmatprep.subr.bf16.mxu1 %v3897_v5 }
  0xd3   : > { %v1193_v57 = vsel %vm1188_vm7, %v1190_v50, %v1192_v54 }
  0xd4   : > { %3415 = vmatpush3.bf16.msra.mxu0 %v3828_v13  ;;  %v3848_v13 = vld [vmem:[%s4898_s4 + $0x1f8] sm:$0xff]  }
  0xd5   : > { %3231 = vmatpush3.bf16.msra.mxu1 %v3829_v17  ;;  %3416 = vmatprep.subr.bf16.mxu0 %v3897_v5  ;;  %v3849_v17 = vld [vmem:[%s4898_s4 + $0xd8] sm:$0xff]  }
  0xd6   : > { %3232 = vmatprep.subr.bf16.mxu1 %v3897_v5 }
  0xd7   : > { %3389 = vmatmul.mubr.bf16.gmra.mrb[12].mxu0 %v1633_v21  ;;  %3205 = vmatmul.mubr.bf16.gmra.mrb[4].mxu1 %v4207_v60  ;;  %v1827_v21 = vsel %vm1816_vm5, %v1824_v4, %v1826_v19  ;;  %v3859_v60 = vld [vmem:[%s4898_s4 + $0x228] sm:$0xff]  }
  0xd8   : > { %3392 = vmatprep.mubr.msk.bf16.mxu0 %vm3898_vm0, %v3897_v5  ;;  %3208 = vmatprep.mubr.msk.bf16.mxu1 %vm3898_vm0, %v3897_v5 }
  0xd9   : > { %3417 = vmatpush3.bf16.msra.mxu0 %v3830_v61  ;;  %3233 = vmatpush3.bf16.msra.mxu1 %v3831_v20  ;;  %v992_v61 = vrot.slane %v4232_v36, 1  ;;  %v3851_v20 = vld [vmem:[%s4898_s4 + $0xe0] sm:$0xff]  }
  0xda   : > { %3418 = vmatprep.subr.bf16.mxu0 %v3897_v5  ;;  %3234 = vmatprep.subr.bf16.mxu1 %v3897_v5 }
  0xdd   : > { %3419 = vmatpush3.bf16.msra.mxu0 %v3832_v22  ;;  %3235 = vmatpush3.bf16.msra.mxu1 %v3833_v23  ;;  %v993_v22 = vsel %vm986_vm6, %v990_v7, %v992_v61  ;;  %v1797_v23 = vld [vmem:[#allocation2 + $0x38] sm:$0x3f] }
  0xde   : > { %3448 = vmatprep.subr.bf16.mxu0 %v3897_v5  ;;  %3236 = vmatprep.subr.bf16.mxu1 %v3897_v5 }
  0xdf   : > { %3393 = vmatmul.mubr.bf16.gmra.mrb[16].mxu0 %v1635_v27  ;;  %3209 = vmatmul.mubr.bf16.gmra.mrb[8].mxu1 %v4220_v18  ;;  %v994_v27 = vrot.slane %v4252_v53, 1 }
  0xe0   : > { %3396 = vmatprep.mubr.msk.bf16.mxu0 %vm3898_vm0, %v3897_v5  ;;  %3212 = vmatprep.mubr.msk.bf16.mxu1 %vm3898_vm0, %v3897_v5 }
  0xe1   : > { %3237 = vmatpush3.bf16.msra.mxu1 %v3835_v26  ;;  %v1828_v26 = vrot.slane %v1797_v23, 2  ;;  %v1200_v23 = vrot.slane %v4282_v25, 5 }
  0xe2   : > { %3238 = vmatprep.subr.bf16.mxu1 %v3897_v5 }
  0xe3   : > { %v1829_v30 = vsel %vm1816_vm5, %v1826_v19, %v1828_v26  ;;  %v3870_v19 = vld [vmem:[%s4898_s4 + $0x130] sm:$0xff]  }
  0xe5   : > { %3239 = vmatpush3.bf16.msra.mxu1 %v3837_v28  ;;  %v3855_v28 = vld [vmem:[%s4898_s4 + $0xf0] sm:$0xff]  }
  0xe6   : > { %3240 = vmatprep.subr.bf16.mxu1 %v3897_v5 }
  0xe7   : > { %3397 = vmatmul.mubr.bf16.gmra.mrb[20].mxu0 %v1637_v33  ;;  %3213 = vmatmul.mubr.bf16.gmra.mrb[12].mxu1 %v4232_v36  ;;  %v3856_v33 = vld [vmem:[%s4898_s4 + $0xf8] sm:$0xff]  }
  0xe8   : > { %3400 = vmatprep.mubr.msk.bf16.mxu0 %vm3898_vm0, %v3897_v5  ;;  %3216 = vmatprep.mubr.msk.bf16.mxu1 %vm3898_vm0, %v3897_v5 }
  0xe9   : > { %3241 = vmatpush3.bf16.msra.mxu1 %v3839_v31  ;;  %v995_v31 = vsel %vm986_vm6, %v992_v61, %v994_v27  ;;  %v1198_v61 = vrot.slane %v4263_v11, 5 }
  0xea   : > { %3242 = vmatprep.subr.bf16.mxu1 %v3897_v5 }
  0xed   : > { %3243 = vmatpush3.bf16.msra.mxu1 %v3840_v35  ;;  %v996_v35 = vrot.slane %v4263_v11, 1 }
  0xee   : > { %3272 = vmatprep.subr.bf16.mxu1 %v3897_v5 }
  0xef   : > { %3401 = vmatmul.mubr.bf16.gmra.mrb[24].mxu0 %v1639_v40  ;;  %3217 = vmatmul.mubr.bf16.gmra.mrb[16].mxu1 %v4252_v53  ;;  %v2008_v40 = vshll.u32 %v4514_v41, 16  ;;  %v997_v38 = vsel %vm986_vm6, %v994_v27, %v996_v35  ;;  %v998_v41 = vrot.slane %v4351_v14, 1  ;;  %v3857_v14 = vld [vmem:[%s4898_s4 + $0x218] sm:$0xff]   ;;  %v1201_v27 = vsel %vm1188_vm7, %v1198_v61, %v1200_v23 }
  0xf0   : > { %3420 = vmatprep.mubr.msk.bf16.mxu0 %vm3898_vm0, %v3897_v5  ;;  %3220 = vmatprep.mubr.msk.bf16.mxu1 %vm3898_vm0, %v3897_v5 }
  0xf7   : > { %3421 = vmatmul.mubr.bf16.vlgmr.msra.gmra.mrb[0].mxu0 %v1819_v45  ;;  %3221 = vmatmul.mubr.bf16.gmra.mrb[20].mxu1 %v4263_v11 }
  0xf8   : > { %3449 = vmatpush3.bf16.msra.mxu0 %v3834_v43  ;;  %3424 = vmatprep.mubr.msk.bf16.mxu0 %vm3898_vm0, %v3897_v5  ;;  %v2010_v43 = vrot.slane %v2008_v40, 3 }
  0xf9   : > { %3450 = vmatprep.subr.bf16.mxu0 %v3897_v5  ;;  %3224 = vmatprep.mubr.msk.bf16.mxu1 %vm3898_vm0, %v3897_v5 }
  0xfa   : > { %v2011_v45 = vor.u32 %v2010_v43, %v2007_v42 }
  0xfc   : > { %3451 = vmatpush3.bf16.msra.mxu0 %v3836_v46  ;;  %v3850_v46 = vld [vmem:[%s4898_s4 + $0x200] sm:$0xff]   ;;  %v2015_v47 = vsel %vm2003_vm3, %v2011_v45, %v4323_v52  ;;  %v3854_v52 = vld [vmem:[%s4898_s4 + $0x210] sm:$0xff]  }
  0xfd   : > { %3452 = vmatprep.subr.bf16.mxu0 %v3897_v5 }
  0xff   : > { %3425 = vmatmul.mubr.bf16.gmra.mrb[4].mxu0 %v1821_v48  ;;  %3225 = vmatmul.mubr.bf16.gmra.mrb[24].mxu1 %v593_v49  ;;  %v3852_v48 = vld [vmem:[%s4898_s4 + $0x208] sm:$0xff]   ;;  %v1189_v49 = vrot.slane %v4239_v44, 5  ;;  %v3864_v44 = vld [vmem:[%s4898_s4 + $0x100] sm:$0xff]  }
 0x100   : > { %3453 = vmatpush3.bf16.msra.mxu0 %v3838_v8  ;;  %3428 = vmatprep.mubr.msk.bf16.mxu0 %vm3898_vm0, %v3897_v5  ;;  %v999_v8 = vsel %vm986_vm6, %v996_v35, %v998_v41  ;;  %v2222_v35 = vrot.slane %v4252_v53, 3 }
 0x101   : > { %3454 = vmatprep.subr.bf16.mxu0 %v3897_v5  ;;  %3244 = vmatprep.mubr.msk.bf16.mxu1 %vm3898_vm0, %v3897_v5 }
 0x104   : > { %3455 = vmatpush3.bf16.msra.mxu0 %v3841_v51  ;;  %v1191_v51 = vsel %vm1188_vm7, %v1189_v49, %v1190_v50 }
 0x105   : > { %3456 = vmatprep.subr.bf16.mxu0 %v3897_v5 }
 0x107   : > { %3429 = vmatmul.mubr.bf16.gmra.mrb[8].mxu0 %v1823_v63  ;;  %3245 = vmatmul.mubr.bf16.vlgmr.msra.gmra.mrb[0].mxu1 %v989_v0  ;;  %v3861_v63 = vld [vmem:[%s4898_s4 + $0x238] sm:$0xff]  }
 0x108   : > { %3432 = vmatprep.mubr.msk.bf16.mxu0 %vm3898_vm0, %v3897_v5  ;;  %3457 = vmatpush3.bf16.msra.mxu0 %v3842_v39  ;;  %v4696_v39 = vld [vmem:[#allocation2 + $0x38] sm:$0x7f] }
 0x109   : > { %3248 = vmatprep.mubr.msk.bf16.mxu1 %vm3898_vm0, %v3897_v5  ;;  %3273 = vmatpush3.bf16.msra.mxu1 %v3843_v59  ;;  %v3866_v59 = vld [vmem:[%s4898_s4 + $0x110] sm:$0xff]   ;;  %v2033_v0 = vshrl.u32 %v4696_v39, 16 }
 0x10a   : > { %3458 = vmatprep.subr.bf16.mxu0 %v3897_v5  ;;  %3274 = vmatprep.subr.bf16.mxu1 %v3897_v5 }
 0x10b   : > { %v2035_v7 = vrot.slane %v2033_v0, 2 }
 0x10c   : > { %3459 = vmatpush3.bf16.msra.mxu0 %v3844_v2  ;;  %v2036_v2 = vshll.u32 %v4696_v39, 16 }
 0x10d   : > { %3275 = vmatpush3.bf16.msra.mxu1 %v3845_v3  ;;  %3460 = vmatprep.subr.bf16.mxu0 %v3897_v5  ;;  %v3867_v3 = vld [vmem:[%s4898_s4 + $0x118] sm:$0xff]  }
 0x10e   : > { %3276 = vmatprep.subr.bf16.mxu1 %v3897_v5 }
 0x10f   : > { %3433 = vmatmul.mubr.bf16.gmra.mrb[12].mxu0 %v1825_v15  ;;  %3249 = vmatmul.mubr.bf16.gmra.mrb[4].mxu1 %v991_v12  ;;  %v1196_v12 = vrot.slane %v4252_v53, 5  ;;  %v2226_v53 = vrot.slane %v4282_v25, 3 }
 0x110   : > { %3436 = vmatprep.mubr.msk.bf16.mxu0 %vm3898_vm0, %v3897_v5  ;;  %3252 = vmatprep.mubr.msk.bf16.mxu1 %vm3898_vm0, %v3897_v5 }
 0x111   : > { %3461 = vmatpush3.bf16.msra.mxu0 %v3846_v9  ;;  %3277 = vmatpush3.bf16.msra.mxu1 %v3847_v10  ;;  %v2038_v9 = vrot.slane %v2036_v2, 3  ;;  %v3868_v10 = vld [vmem:[%s4898_s4 + $0x120] sm:$0xff]  }
 0x112   : > { %3462 = vmatprep.subr.bf16.mxu0 %v3897_v5  ;;  %3278 = vmatprep.subr.bf16.mxu1 %v3897_v5 }
 0x113   : > { %v2039_v15 = vor.u32 %v2038_v9, %v2035_v7 }
 0x115   : > { %3463 = vmatpush3.bf16.msra.mxu0 %v3848_v13  ;;  %3279 = vmatpush3.bf16.msra.mxu1 %v3849_v17  ;;  %v2040_v13 = vsel %vm2003_vm3, %v4372_v32, %v2039_v15  ;;  %v3871_v32 = vld [vmem:[%s4898_s4 + $0x138] sm:$0xff]  }
 0x116   : > { %3492 = vmatprep.subr.bf16.mxu0 %v3897_v5  ;;  %3280 = vmatprep.subr.bf16.mxu1 %v3897_v5 }
 0x117   : > { %3437 = vmatmul.mubr.bf16.gmra.mrb[16].mxu0 %v1827_v21  ;;  %3253 = vmatmul.mubr.bf16.gmra.mrb[8].mxu1 %v993_v22  ;;  %v2197_v21 = vld [vmem:[#allocation2 + $0x8] sm:$0xf8] }
 0x118   : > { %3440 = vmatprep.mubr.msk.bf16.mxu0 %vm3898_vm0, %v3897_v5  ;;  %3256 = vmatprep.mubr.msk.bf16.mxu1 %vm3898_vm0, %v3897_v5  ;;  %v2217_v22 = vrot.slane %v2197_v21, 3 }
 0x119   : > { %3281 = vmatpush3.bf16.msra.mxu1 %v3851_v20  ;;  %v1199_v20 = vsel %vm1188_vm7, %v1196_v12, %v1198_v61  ;;  %v2682_v61 = vld [vmem:[%s3987_s21 + $0x4] sm:$0xe] }
 0x11a   : > { %3282 = vmatprep.subr.bf16.mxu1 %v3897_v5 }
 0x11d   : > { %3283 = vmatpush3.bf16.msra.mxu1 %v3853_v24  ;;  %v2218_v24 = vrot.slane %v4220_v18, 3 }
 0x11e   : > { %3284 = vmatprep.subr.bf16.mxu1 %v3897_v5 }
 0x11f   : > { %3441 = vmatmul.mubr.bf16.gmra.mrb[20].mxu0 %v1829_v30  ;;  %3257 = vmatmul.mubr.bf16.gmra.mrb[12].mxu1 %v995_v31  ;;  %v2220_v30 = vrot.slane %v4232_v36, 3 }
 0x120   : > { %3444 = vmatprep.mubr.msk.bf16.mxu0 %vm3898_vm0, %v3897_v5  ;;  %3260 = vmatprep.mubr.msk.bf16.mxu1 %vm3898_vm0, %v3897_v5 }
 0x121   : > { %3285 = vmatpush3.bf16.msra.mxu1 %v3855_v28  ;;  %v1163_v28 = vld [vmem:[#allocation2 + $0x38] sm:$0x1]  ;;  %v2223_v37 = vsel %vm2216_vm8, %v2220_v30, %v2222_v35 }
 0x122   : > { %3286 = vmatprep.subr.bf16.mxu1 %v3897_v5  ;;  %v1202_v31 = vrot.slane %v1163_v28, 5 }
 0x124   : > { %v1203_v18 = vsel %vm1188_vm7, %v1200_v23, %v1202_v31 }
 0x125   : > { %3287 = vmatpush3.bf16.msra.mxu1 %v3856_v33  ;;  %v2221_v33 = vsel %vm2216_vm8, %v2218_v24, %v2220_v30 }
 0x126   : > { %3536 = vmatprep.subr.bf16.mxu1 %v3897_v5 }
 0x127   : > { %3445 = vmatmul.mubr.bf16.gmra.mrb[24].mxu0 %v1828_v26  ;;  %3261 = vmatmul.mubr.bf16.gmra.mrb[16].mxu1 %v997_v38  ;;  %v2219_v26 = vsel %vm2216_vm8, %v2217_v22, %v2218_v24 }
 0x128   : > { %3464 = vmatprep.mubr.msk.bf16.mxu0 %vm3898_vm0, %v3897_v5  ;;  %3264 = vmatprep.mubr.msk.bf16.mxu1 %vm3898_vm0, %v3897_v5 }
 0x12f   : > { %3465 = vmatmul.mubr.bf16.vlgmr.msra.gmra.mrb[0].mxu0 %v2015_v47  ;;  %3265 = vmatmul.mubr.bf16.gmra.mrb[20].mxu1 %v999_v8 }
 0x130   : > { %3493 = vmatpush3.bf16.msra.mxu0 %v3850_v46  ;;  %3468 = vmatprep.mubr.msk.bf16.mxu0 %vm3898_vm0, %v3897_v5 }
 0x131   : > { %3494 = vmatprep.subr.bf16.mxu0 %v3897_v5  ;;  %3268 = vmatprep.mubr.msk.bf16.mxu1 %vm3898_vm0, %v3897_v5 }
 0x134   : > { %3495 = vmatpush3.bf16.msra.mxu0 %v3852_v48 }
 0x135   : > { %3496 = vmatprep.subr.bf16.mxu0 %v3897_v5 }
 0x137   : > { %3469 = vmatmul.mubr.bf16.gmra.mrb[4].mxu0 %v4343_v6  ;;  %3269 = vmatmul.mubr.bf16.gmra.mrb[24].mxu1 %v998_v41  ;;  %v3858_v6 = vld [vmem:[%s4898_s4 + $0x220] sm:$0xff]  }
 0x138   : > { %3497 = vmatpush3.bf16.msra.mxu0 %v3854_v52  ;;  %3472 = vmatprep.mubr.msk.bf16.mxu0 %vm3898_vm0, %v3897_v5 }
 0x139   : > { %3498 = vmatprep.subr.bf16.mxu0 %v3897_v5  ;;  %3288 = vmatprep.mubr.msk.bf16.mxu1 %vm3898_vm0, %v3897_v5 }
 0x13c   : > { %3499 = vmatpush3.bf16.msra.mxu0 %v3857_v14 }
 0x13d   : > { %3500 = vmatprep.subr.bf16.mxu0 %v3897_v5 }
 0x13f   : > { %3473 = vmatmul.mubr.bf16.gmra.mrb[8].mxu0 %v4355_v16  ;;  %3289 = vmatmul.mubr.bf16.vlgmr.msra.gmra.mrb[0].mxu1 %v1191_v51  ;;  %v3865_v16 = vld [vmem:[%s4898_s4 + $0x108] sm:$0xff]  }
 0x140   : > { %3476 = vmatprep.mubr.msk.bf16.mxu0 %vm3898_vm0, %v3897_v5  ;;  %3501 = vmatpush3.bf16.msra.mxu0 %v3858_v6 }
 0x141   : > { %3292 = vmatprep.mubr.msk.bf16.mxu1 %vm3898_vm0, %v3897_v5  ;;  %3544 = vmatpush3.bf16.msra.mxu1 %v3864_v44  ;;  %v2402_v44 = vpop.permute.xlu0 %2401 }
 0x142   : > { %3502 = vmatprep.subr.bf16.mxu0 %v3897_v5  ;;  %3537 = vmatprep.subr.bf16.mxu1 %v3897_v5 }
 0x144   : > { %3503 = vmatpush3.bf16.msra.mxu0 %v3859_v60 }
 0x145   : > { %3545 = vmatpush3.bf16.msra.mxu1 %v3865_v16  ;;  %3504 = vmatprep.subr.bf16.mxu0 %v3897_v5 }
 0x146   : > { %3538 = vmatprep.subr.bf16.mxu1 %v3897_v5 }
 0x147   : > { %3477 = vmatmul.mubr.bf16.gmra.mrb[12].mxu0 %v4367_v29  ;;  %3293 = vmatmul.mubr.bf16.gmra.mrb[4].mxu1 %v1193_v57  ;;  %v1194_v29 = vrot.slane %v4232_v36, 5  ;;  %v2224_v36 = vrot.slane %v4263_v11, 3  ;;  %v2228_v11 = vrot.slane %v4696_v39, 3  ;;  %v2407_v39 = vpop.permute.xlu1 %2406 }
 0x148   : > { %3480 = vmatprep.mubr.msk.bf16.mxu0 %vm3898_vm0, %v3897_v5  ;;  %3296 = vmatprep.mubr.msk.bf16.mxu1 %vm3898_vm0, %v3897_v5 }
 0x149   : > { %3505 = vmatpush3.bf16.msra.mxu0 %v3860_v56  ;;  %3546 = vmatpush3.bf16.msra.mxu1 %v3866_v59  ;;  %v1195_v4 = vsel %vm1188_vm7, %v1192_v54, %v1194_v29  ;;  %v1197_v17 = vsel %vm1188_vm7, %v1194_v29, %v1196_v12  ;;  %v2225_v40 = vsel %vm2216_vm8, %v2222_v35, %v2224_v36 }
 0x14a   : > { %3506 = vmatprep.subr.bf16.mxu0 %v3897_v5  ;;  %3539 = vmatprep.subr.bf16.mxu1 %v3897_v5 }
 0x14b   : > { %v2417_v28 = vpop.permute.xlu1 %2416 }
 0x14d   : > { %3507 = vmatpush3.bf16.msra.mxu0 %v3861_v63  ;;  %3547 = vmatpush3.bf16.msra.mxu1 %v3867_v3 }
 0x14e   : > { %3540 = vmatprep.subr.bf16.mxu1 %v3897_v5 }
 0x14f   : > { %3481 = vmatmul.mubr.bf16.gmra.mrb[16].mxu0 %v4384_v34  ;;  %3297 = vmatmul.mubr.bf16.gmra.mrb[8].mxu1 %v1195_v4  ;;  %v3869_v34 = vld [vmem:[%s4898_s4 + $0x128] sm:$0xff]  }
 0x150   : > { %3484 = vmatprep.mubr.msk.bf16.mxu0 %vm3898_vm0, %v3897_v5  ;;  %3300 = vmatprep.mubr.msk.bf16.mxu1 %vm3898_vm0, %v3897_v5 }
 0x151   : > { %3548 = vmatpush3.bf16.msra.mxu1 %v3868_v10  ;;  %v2412_v10 = vpop.permute.xlu0 %2411 }
 0x152   : > { %3541 = vmatprep.subr.bf16.mxu1 %v3897_v5 }
 0x155   : > { %3549 = vmatpush3.bf16.msra.mxu1 %v3869_v34 }
 0x156   : > { %3542 = vmatprep.subr.bf16.mxu1 %v3897_v5 }
 0x157   : > { %3485 = vmatmul.mubr.bf16.gmra.mrb[20].mxu0 %v2040_v13  ;;  %3301 = vmatmul.mubr.bf16.gmra.mrb[12].mxu1 %v1197_v17 }
 0x158   : > { %3488 = vmatprep.mubr.msk.bf16.mxu0 %vm3898_vm0, %v3897_v5  ;;  %3304 = vmatprep.mubr.msk.bf16.mxu1 %vm3898_vm0, %v3897_v5 }
 0x159   : > { %3550 = vmatpush3.bf16.msra.mxu1 %v3870_v19 }
 0x15a   : > { %3543 = vmatprep.subr.bf16.mxu1 %v3897_v5 }
 0x15d   : > { %3551 = vmatpush3.bf16.msra.mxu1 %v3871_v32 }
 0x15f   : > { %3489 = vmatmul.mubr.bf16.gmra.mrb[24].mxu0 %v2039_v15  ;;  %3305 = vmatmul.mubr.bf16.gmra.mrb[16].mxu1 %v1199_v20 }
 0x160   : > { %3508 = vmatprep.mubr.msk.bf16.mxu0 %vm3898_vm0, %v3897_v5  ;;  %3308 = vmatprep.mubr.msk.bf16.mxu1 %vm3898_vm0, %v3897_v5 }
 0x167   : > { %3509 = vmatmul.mubr.bf16.vlgmr.msra.gmra.mrb[0].mxu0 %v2219_v26  ;;  %3309 = vmatmul.mubr.bf16.gmra.mrb[20].mxu1 %v1201_v27 }
 0x168   : > { %3512 = vmatprep.mubr.msk.bf16.mxu0 %vm3898_vm0, %v3897_v5  ;;  %3312 = vmatprep.mubr.msk.bf16.mxu1 %vm3898_vm0, %v3897_v5 }
 0x16f   : > { %3513 = vmatmul.mubr.bf16.gmra.mrb[4].mxu0 %v2221_v33  ;;  %3313 = vmatmul.mubr.bf16.gmra.mrb[24].mxu1 %v1203_v18 }
 0x170   : > { %3516 = vmatprep.mubr.msk.bf16.mxu0 %vm3898_vm0, %v3897_v5  ;;  %3348 = vmatprep.mubr.msk.bf16.mxu1 %vm3898_vm0, %v3897_v5 }
 0x177   : > { %3517 = vmatmul.mubr.bf16.gmra.mrb[8].mxu0 %v2223_v37  ;;  %3349 = vmatmul.mubr.bf16.vlgmr.msra.gmra.mrb[16].mxu1 %v4403_v55  ;;  %v2227_v55 = vsel %vm2216_vm8, %v2224_v36, %v2226_v53 }
 0x178   : > { %3520 = vmatprep.mubr.msk.bf16.mxu0 %vm3898_vm0, %v3897_v5  ;;  %3352 = vmatprep.mubr.msk.bf16.mxu1 %vm3898_vm0, %v3897_v5 }
 0x17f   : > { %3521 = vmatmul.mubr.bf16.gmra.mrb[12].mxu0 %v2225_v40  ;;  %3353 = vmatmul.mubr.bf16.gmra.mrb[20].mxu1 %v4411_v58  ;;  %v2229_v58 = vsel %vm2216_vm8, %v2226_v53, %v2228_v11 }
 0x180   : > { %3524 = vmatprep.mubr.msk.bf16.mxu0 %vm3898_vm0, %v3897_v5  ;;  %3356 = vmatprep.mubr.msk.bf16.mxu1 %vm3898_vm0, %v3897_v5 }
 0x187   : > { %3525 = vmatmul.mubr.bf16.gmra.mrb[16].mxu0 %v2227_v55  ;;  %3357 = vmatmul.mubr.bf16.gmra.mrb[24].mxu1 %v4419_v1  ;;  %v2422_v55 = vpop.permute.xlu0 %2421 }
 0x188   : > { %3528 = vmatprep.mubr.msk.bf16.mxu0 %vm3898_vm0, %v3897_v5 }
 0x18f   : > { %3529 = vmatmul.mubr.bf16.gmra.mrb[20].mxu0 %v2229_v58 }
 0x190   : > { %3532 = vmatprep.mubr.msk.bf16.mxu0 %vm3898_vm0, %v3897_v5  ;;  %vm2753_vm0 = vcmp.eq.s32.totalorder %v4163_v62, 0 }
 0x197   : > { %3533 = vmatmul.mubr.bf16.gmra.mrb[24].mxu0 %v2228_v11 }
 0x212   : > { %v1293_v25 = vpop.f32.mrb[0].mxu1 }
 0x213   : > { %v3290_v1 = vpop.f32.mrb[1].mxu1 }
 0x214   : > { %v1296_v38 = vpop.f32.mrb[2].mxu1 }
 0x215   : > { %v3291_v42 = vpop.f32.mrb[3].mxu1 }
 0x21a   : > { %v1301_v43 = vpop.f32.mrb[4].mxu1 }
 0x21b   : > { %v3294_v45 = vpop.f32.mrb[5].mxu1 }
 0x21c   : > { %v1304_v41 = vpop.f32.mrb[6].mxu1 }
 0x21d   : > { %v3295_v46 = vpop.f32.mrb[7].mxu1 }
 0x222   : > { %v4799_v47 = vpop.f32.mrb[8].mxu1 }
 0x223   : > { %v3298_v8 = vpop.f32.mrb[9].mxu1 }
 0x224   : > { %v4801_v48 = vpop.f32.mrb[10].mxu1 }
 0x225   : > { %v3299_v52 = vpop.f32.mrb[11].mxu1 }
 0x22a   : > { %v4803_v14 = vpop.f32.mrb[12].mxu1 }
 0x22b   : > { %v3302_v49 = vpop.f32.mrb[13].mxu1 }
 0x22c   : > { %v4805_v50 = vpop.f32.mrb[14].mxu1 }
 0x22d   : > { %v3303_v5 = vpop.f32.mrb[15].mxu1 }
 0x23a   : > { %v2319_v6 = vpop.f32.mrb[0].mxu0 }
 0x23b   : > { %v3552_v51 = vadd.f32 %v2319_v6, %v1293_v25  ;;  %v3510_v60 = vpop.f32.mrb[1].mxu0 }
 0x23c   : > { %v2322_v54 = vpop.f32.mrb[2].mxu0 }
 0x23d   : > { %v2464_v16 = vmul.f32 %v3552_v51, %v2402_v44  ;;  %v3553_v56 = vadd.f32 %v2322_v54, %v1296_v38  ;;  %v3511_v57 = vpop.f32.mrb[3].mxu0 }
 0x23f   : > { %v2953_v59 = vpack.c.bf16 %v2464_v16, %v2464_v16  ;;  %v2465_v63 = vmul.f32 %v3553_v56, %v2407_v39  ;;  %v2720_v4 = vmul.f32 %v2464_v16, %v2464_v16 }
 0x241   : > { %v2537_v29 = vshrl.u32 %v2953_v59, 16  ;;  %v2540_v0 = vshll.u32 %v2953_v59, 16  ;;  %v2954_v2 = vpack.c.bf16 %v2465_v63, %v2465_v63  ;;  %v2702_v3 = vadd.f32 %v2465_v63, %v2464_v16 }
 0x242   : > { %v2721_v7 = vmul.f32 %v2465_v63, %v2465_v63  ;;  %v2327_v9 = vpop.f32.mrb[4].mxu0 }
 0x243   : > { %v2539_v15 = vrot.slane %v2537_v29, 6  ;;  %v2542_v12 = vrot.slane %v2540_v0, 7  ;;  %v2546_v34 = vshrl.u32 %v2954_v2, 16  ;;  %v2549_v13 = vshll.u32 %v2954_v2, 16  ;;  %v3514_v17 = vpop.f32.mrb[5].mxu0  ;;  %v2427_v2 = vpop.permute.xlu1 %2426 }
 0x244   : > { %v2733_v32 = vadd.f32 %v2721_v7, %v2720_v4  ;;  %v3554_v20 = vadd.f32 %v2327_v9, %v1301_v43  ;;  %v2330_v21 = vpop.f32.mrb[6].mxu0 }
 0x245   : > { %v2543_v22 = vor.u32 %v2542_v12, %v2539_v15  ;;  %v2548_v23 = vrot.slane %v2546_v34, 6  ;;  %v2551_v24 = vrot.slane %v2549_v13, 7  ;;  %v3555_v26 = vadd.f32 %v2330_v21, %v1304_v41  ;;  %v3515_v27 = vpop.f32.mrb[7].mxu0  ;;  %v2432_v12 = vpop.permute.xlu0 %2431 }
 0x246   : > { %v2466_v31 = vmul.f32 %v3554_v20, %v2412_v10 }
 0x247   : > { %v2544_v33 = vrot.slane %v2543_v22, 4  ;;  %v2683_v18 = vsel %vm4809_vm13, %v2543_v22, %v2682_v61  ;;  %v2552_v35 = vor.u32 %v2551_v24, %v2548_v23  ;;  %v2467_v37 = vmul.f32 %v3555_v26, %v2417_v28 }
 0x248   : > { %2684 = vst [vmem:[%s3987_s21 + $0x4] sm:$0xe] %v2683_v18  ;;  %v2955_v36 = vpack.c.bf16 %v2466_v31, %v2466_v31  ;;  %v2703_v40 = vadd.f32 %v2702_v3, %v2466_v31  ;;  %v2722_v53 = vmul.f32 %v2466_v31, %v2466_v31 }
 0x249   : > { %v2553_v11 = vsel %vm4816_vm14, %v2544_v33, %v2552_v35  ;;  %v2956_v58 = vpack.c.bf16 %v2467_v37, %v2467_v37  ;;  %v2723_v25 = vmul.f32 %v2467_v37, %v2467_v37  ;;  %v2554_v29 = vrot.slane %v2552_v35, 4 }
 0x24a   : > { %2685 = vst [vmem:[%s3987_s21 + $0x8] sm:$0xf] %v2553_v11  ;;  %v2556_v1 = vshrl.u32 %v2955_v36, 16  ;;  %v2559_v38 = vshll.u32 %v2955_v36, 16  ;;  %v2734_v42 = vadd.f32 %v2733_v32, %v2722_v53  ;;  %v2704_v43 = vadd.f32 %v2703_v40, %v2467_v37  ;;  %v2335_v45 = vpop.f32.mrb[8].mxu0  ;;  %v4826_v41 = vpop.f32.mrb[16].mxu1 }
 0x24b   : > { %v2566_v46 = vshrl.u32 %v2956_v58, 16  ;;  %v2569_v8 = vshll.u32 %v2956_v58, 16  ;;  %v3556_v52 = vadd.f32 %v2335_v45, %v4799_v47  ;;  %v3518_v49 = vpop.f32.mrb[9].mxu0  ;;  %v3350_v5 = vpop.f32.mrb[17].mxu1 }
 0x24c   : > { %v2558_v6 = vrot.slane %v2556_v1, 6  ;;  %v2561_v51 = vrot.slane %v2559_v38, 7  ;;  %v2735_v60 = vadd.f32 %v2734_v42, %v2723_v25  ;;  %v2338_v44 = vpop.f32.mrb[10].mxu0  ;;  %v4829_v54 = vpop.f32.mrb[18].mxu1 }
 0x24d   : > { %v2568_v16 = vrot.slane %v2566_v46, 6  ;;  %v2571_v56 = vrot.slane %v2569_v8, 7  ;;  %v2468_v57 = vmul.f32 %v3556_v52, %v2422_v55  ;;  %v3557_v39 = vadd.f32 %v2338_v44, %v4801_v48  ;;  %v3519_v59 = vpop.f32.mrb[11].mxu0  ;;  %v3351_v63 = vpop.f32.mrb[19].mxu1 }
 0x24e   : > { %v2562_v0 = vor.u32 %v2561_v51, %v2558_v6  ;;  %v2437_v1 = vpop.permute.xlu1 %2436  ;;  %v2442_v52 = vpop.permute.xlu0 %2441 }
 0x24f   : > { %v2572_v47 = vor.u32 %v2571_v56, %v2568_v16  ;;  %v2957_v3 = vpack.c.bf16 %v2468_v57, %v2468_v57  ;;  %v2705_v4 = vadd.f32 %v2704_v43, %v2468_v57  ;;  %v2724_v7 = vmul.f32 %v2468_v57, %v2468_v57 }
 0x250   : > { %v2563_v9 = vsel %vm4816_vm14, %v2554_v29, %v2562_v0  ;;  %v2564_v10 = vrot.slane %v2562_v0, 4  ;;  %v2469_v15 = vmul.f32 %v3557_v39, %v2427_v2 }
 0x251   : > { %2686 = vst [vmem:[%s3987_s21 + $0xc] sm:$0xf] %v2563_v9  ;;  %v2576_v34 = vshrl.u32 %v2957_v3, 16  ;;  %v2579_v13 = vshll.u32 %v2957_v3, 16  ;;  %v2736_v48 = vadd.f32 %v2735_v60, %v2724_v7  ;;  %v2574_v37 = vrot.slane %v2572_v47, 4 }
 0x252   : > { %v2573_v17 = vsel %vm4816_vm14, %v2564_v10, %v2572_v47  ;;  %v2958_v19 = vpack.c.bf16 %v2469_v15, %v2469_v15  ;;  %v2706_v61 = vadd.f32 %v2705_v4, %v2469_v15  ;;  %v2725_v32 = vmul.f32 %v2469_v15, %v2469_v15  ;;  %v2343_v20 = vpop.f32.mrb[12].mxu0  ;;  %v4837_v21 = vpop.f32.mrb[20].mxu1 }
 0x253   : > { %2687 = vst [vmem:[%s3987_s21 + $0x10] sm:$0xf] %v2573_v17  ;;  %v2578_v22 = vrot.slane %v2576_v34, 6  ;;  %v2581_v23 = vrot.slane %v2579_v13, 7  ;;  %v3558_v24 = vadd.f32 %v2343_v20, %v4803_v14  ;;  %v3522_v26 = vpop.f32.mrb[13].mxu0  ;;  %v3354_v27 = vpop.f32.mrb[21].mxu1 }
 0x254   : > { %v2586_v28 = vshrl.u32 %v2958_v19, 16  ;;  %v2589_v31 = vshll.u32 %v2958_v19, 16  ;;  %v2737_v33 = vadd.f32 %v2736_v48, %v2725_v32  ;;  %v2346_v18 = vpop.f32.mrb[14].mxu0  ;;  %v4841_v35 = vpop.f32.mrb[22].mxu1 }
 0x255   : > { %v2582_v36 = vor.u32 %v2581_v23, %v2578_v22  ;;  %v2470_v40 = vmul.f32 %v3558_v24, %v2432_v12  ;;  %v3559_v53 = vadd.f32 %v2346_v18, %v4805_v50  ;;  %v3523_v55 = vpop.f32.mrb[15].mxu0  ;;  %v3355_v11 = vpop.f32.mrb[23].mxu1 }
 0x256   : > { %v2588_v58 = vrot.slane %v2586_v28, 6  ;;  %v2591_v25 = vrot.slane %v2589_v31, 7  ;;  %v2447_v34 = vpop.permute.xlu1 %2446 }
 0x257   : > { %v2583_v14 = vsel %vm4816_vm14, %v2574_v37, %v2582_v36  ;;  %v2584_v38 = vrot.slane %v2582_v36, 4  ;;  %v2959_v42 = vpack.c.bf16 %v2470_v40, %v2470_v40  ;;  %v2707_v43 = vadd.f32 %v2706_v61, %v2470_v40 }
 0x258   : > { %2688 = vst [vmem:[%s3987_s21 + $0x14] sm:$0xf] %v2583_v14  ;;  %v2592_v45 = vor.u32 %v2591_v25, %v2588_v58  ;;  %v2726_v46 = vmul.f32 %v2470_v40, %v2470_v40  ;;  %v2471_v8 = vmul.f32 %v3559_v53, %v2437_v1  ;;  %v2452_v25 = vpop.permute.xlu0 %2451 }
 0x259   : > { %v2596_v49 = vshrl.u32 %v2959_v42, 16  ;;  %v2599_v5 = vshll.u32 %v2959_v42, 16 }
 0x25a   : > { %v2593_v50 = vsel %vm4816_vm14, %v2584_v38, %v2592_v45  ;;  %v2738_v6 = vadd.f32 %v2737_v33, %v2726_v46  ;;  %v2960_v51 = vpack.c.bf16 %v2471_v8, %v2471_v8  ;;  %v2351_v60 = vpop.f32.mrb[16].mxu0  ;;  %v4849_v44 = vpop.f32.mrb[24].mxu1  ;;  %v2708_v57 = vadd.f32 %v2707_v43, %v2471_v8 }
 0x25b   : > { %2689 = vst [vmem:[%s3987_s21 + $0x18] sm:$0xf] %v2593_v50  ;;  %v2598_v16 = vrot.slane %v2596_v49, 6  ;;  %v2601_v56 = vrot.slane %v2599_v5, 7  ;;  %v2727_v39 = vmul.f32 %v2471_v8, %v2471_v8  ;;  %v3526_v59 = vpop.f32.mrb[17].mxu0  ;;  %v3358_v63 = vpop.f32.mrb[25].mxu1  ;;  %v3560_v2 = vadd.f32 %v2351_v60, %v4826_v41 }
 0x25c   : > { %v2606_v29 = vshrl.u32 %v2960_v51, 16  ;;  %v2609_v0 = vshll.u32 %v2960_v51, 16  ;;  %v2354_v47 = vpop.f32.mrb[18].mxu0  ;;  %v1589_v3 = vpop.f32.mrb[26].mxu1  ;;  %v2594_v4 = vrot.slane %v2592_v45, 4 }
 0x25d   : > { %v2602_v7 = vor.u32 %v2601_v56, %v2598_v16  ;;  %v2739_v9 = vadd.f32 %v2738_v6, %v2727_v39  ;;  %v3561_v10 = vadd.f32 %v2354_v47, %v4829_v54  ;;  %v3527_v15 = vpop.f32.mrb[19].mxu0  ;;  %v3359_v12 = vpop.f32.mrb[27].mxu1  ;;  %v2472_v17 = vmul.f32 %v3560_v2, %v2442_v52 }
 0x25e   : > { %v2608_v13 = vrot.slane %v2606_v29, 6  ;;  %v2611_v48 = vrot.slane %v2609_v0, 7  ;;  %v2457_v45 = vpop.permute.xlu1 %2456 }
 0x25f   : > { %v2603_v19 = vsel %vm4816_vm14, %v2594_v4, %v2602_v7  ;;  %v2604_v61 = vrot.slane %v2602_v7, 4  ;;  %v2473_v41 = vmul.f32 %v3561_v10, %v2447_v34  ;;  %v2961_v20 = vpack.c.bf16 %v2472_v17, %v2472_v17  ;;  %v2462_v4 = vpop.permute.xlu0 %2461 }
 0x260   : > { %2690 = vst [vmem:[%s3987_s21 + $0x1c] sm:$0xf] %v2603_v19  ;;  %v2612_v32 = vor.u32 %v2611_v48, %v2608_v13  ;;  %v2709_v22 = vadd.f32 %v2708_v57, %v2472_v17  ;;  %v2728_v23 = vmul.f32 %v2472_v17, %v2472_v17 }
 0x261   : > { %v2962_v24 = vpack.c.bf16 %v2473_v41, %v2473_v41  ;;  %v2729_v26 = vmul.f32 %v2473_v41, %v2473_v41  ;;  %v2616_v27 = vshrl.u32 %v2961_v20, 16  ;;  %v2619_v28 = vshll.u32 %v2961_v20, 16 }
 0x262   : > { %v2613_v54 = vsel %vm4816_vm14, %v2604_v61, %v2612_v32  ;;  %v2359_v31 = vpop.f32.mrb[20].mxu0  ;;  %v2740_v33 = vadd.f32 %v2739_v9, %v2728_v23  ;;  %v2710_v36 = vadd.f32 %v2709_v22, %v2473_v41  ;;  %v2614_v46 = vrot.slane %v2612_v32, 4 }
 0x263   : > { %2691 = vst [vmem:[%s3987_s21 + $0x20] sm:$0xf] %v2613_v54  ;;  %v2626_v18 = vshrl.u32 %v2962_v24, 16  ;;  %v2629_v37 = vshll.u32 %v2962_v24, 16  ;;  %v3530_v40 = vpop.f32.mrb[21].mxu0  ;;  %v2618_v53 = vrot.slane %v2616_v27, 6  ;;  %v3562_v11 = vadd.f32 %v2359_v31, %v4837_v21 }
 0x264   : > { %v2621_v55 = vrot.slane %v2619_v28, 7  ;;  %v2362_v58 = vpop.f32.mrb[22].mxu0  ;;  %v2741_v38 = vadd.f32 %v2740_v33, %v2729_v26 }
 0x265   : > { %v2628_v1 = vrot.slane %v2626_v18, 6  ;;  %v2631_v14 = vrot.slane %v2629_v37, 7  ;;  %v3563_v42 = vadd.f32 %v2362_v58, %v4841_v35  ;;  %v3531_v43 = vpop.f32.mrb[23].mxu0  ;;  %v2474_v52 = vmul.f32 %v3562_v11, %v2452_v25 }
 0x266   : > { %v2622_v8 = vor.u32 %v2621_v55, %v2618_v53  ;;  %v2698_v53 = vld [vmem:[%s3987_s21 + $0x38] sm:$0x3] }
 0x267   : > { %v2632_v49 = vor.u32 %v2631_v14, %v2628_v1  ;;  %v2475_v5 = vmul.f32 %v3563_v42, %v2457_v45  ;;  %v2963_v6 = vpack.c.bf16 %v2474_v52, %v2474_v52  ;;  %v2711_v51 = vadd.f32 %v2710_v36, %v2474_v52  ;;  %v2701_v45 = vld [vmem:[%s4795_s24] sm:$0x3] }
 0x268   : > { %v2623_v50 = vsel %vm4816_vm14, %v2614_v46, %v2622_v8  ;;  %v2624_v21 = vrot.slane %v2622_v8, 4  ;;  %v2730_v60 = vmul.f32 %v2474_v52, %v2474_v52 }
 0x269   : > { %2692 = vst [vmem:[%s3987_s21 + $0x24] sm:$0xf] %v2623_v50  ;;  %v2964_v16 = vpack.c.bf16 %v2475_v5, %v2475_v5  ;;  %v2731_v56 = vmul.f32 %v2475_v5, %v2475_v5  ;;  %v2636_v57 = vshrl.u32 %v2963_v6, 16  ;;  %v2639_v39 = vshll.u32 %v2963_v6, 16 }
 0x26a   : > { %v2633_v35 = vsel %vm4816_vm14, %v2624_v21, %v2632_v49  ;;  %v2712_v59 = vadd.f32 %v2711_v51, %v2475_v5  ;;  %v2367_v63 = vpop.f32.mrb[24].mxu0  ;;  %v2742_v29 = vadd.f32 %v2741_v38, %v2730_v60  ;;  %v2634_v17 = vrot.slane %v2632_v49, 4 }
 0x26b   : > { %2693 = vst [vmem:[%s3987_s21 + $0x28] sm:$0xf] %v2633_v35  ;;  %v2646_v0 = vshrl.u32 %v2964_v16, 16  ;;  %v2649_v2 = vshll.u32 %v2964_v16, 16  ;;  %v3564_v47 = vadd.f32 %v2367_v63, %v4849_v44  ;;  %v3534_v3 = vpop.f32.mrb[25].mxu0  ;;  %v2638_v7 = vrot.slane %v2636_v57, 6 }
 0x26c   : > { %v2641_v9 = vrot.slane %v2639_v39, 7  ;;  %v2370_v10 = vpop.f32.mrb[26].mxu0  ;;  %v2743_v34 = vadd.f32 %v2742_v29, %v2731_v56 }
 0x26d   : > { %v2648_v15 = vrot.slane %v2646_v0, 6  ;;  %v2651_v12 = vrot.slane %v2649_v2, 7  ;;  %v2476_v13 = vmul.f32 %v3564_v47, %v2462_v4  ;;  %v3535_v48 = vpop.f32.mrb[27].mxu0 }
 0x26e   : > { %v2642_v19 = vor.u32 %v2641_v9, %v2638_v7 }
 0x26f   : > { %v2652_v61 = vor.u32 %v2651_v12, %v2648_v15  ;;  %v2965_v41 = vpack.c.bf16 %v2476_v13, %v2476_v13  ;;  %v2713_v32 = vadd.f32 %v2712_v59, %v2476_v13  ;;  %v2732_v20 = vmul.f32 %v2476_v13, %v2476_v13 }
 0x270   : > { %v2643_v44 = vsel %vm4816_vm14, %v2634_v17, %v2642_v19  ;;  %v2644_v22 = vrot.slane %v2642_v19, 4 }
 0x271   : > { %2694 = vst [vmem:[%s3987_s21 + $0x2c] sm:$0xf] %v2643_v44  ;;  %v2656_v23 = vshrl.u32 %v2965_v41, 16  ;;  %v2659_v24 = vshll.u32 %v2965_v41, 16  ;;  %v2714_v26 = vrot.slane %v2713_v32, 4  ;;  %v2744_v27 = vadd.f32 %v2743_v34, %v2732_v20 }
 0x272   : > { %v2653_v54 = vsel %vm4816_vm14, %v2644_v22, %v2652_v61  ;;  %v2654_v37 = vrot.slane %v2652_v61, 4 }
 0x273   : > { %2695 = vst [vmem:[%s3987_s21 + $0x30] sm:$0xf] %v2653_v54  ;;  %v2658_v28 = vrot.slane %v2656_v23, 6  ;;  %v2661_v31 = vrot.slane %v2659_v24, 7  ;;  %v2715_v33 = vadd.f32 %v2714_v26, %v2713_v32  ;;  %v2745_v18 = vrot.slane %v2744_v27, 4 }
 0x275   : > { %v2662_v36 = vor.u32 %v2661_v31, %v2658_v28  ;;  %v2716_v40 = vrot.slane %v2715_v33, 2  ;;  %v2746_v55 = vadd.f32 %v2745_v18, %v2744_v27 }
 0x277   : > { %v2663_v11 = vsel %vm4816_vm14, %v2654_v37, %v2662_v36  ;;  %v2664_v58 = vrot.slane %v2662_v36, 4  ;;  %v2717_v25 = vadd.f32 %v2716_v40, %v2715_v33  ;;  %v2747_v1 = vrot.slane %v2746_v55, 2 }
 0x278   : > { %2696 = vst [vmem:[%s3987_s21 + $0x34] sm:$0xf] %v2663_v11 }
 0x279   : > { %v2699_v14 = vsel %vm2697_vm15, %v2664_v58, %v2698_v53  ;;  %v2718_v38 = vrot.slane %v2717_v25, 1  ;;  %v2748_v42 = vadd.f32 %v2747_v1, %v2746_v55 }
 0x27a   : > { %2700 = vst [vmem:[%s3987_s21 + $0x38] sm:$0x3] %v2699_v14 }
 0x27b   : > { %v2749_v43 = vrot.slane %v2748_v42, 1  ;;  %v2719_v46 = vadd.f32 %v2718_v38, %v2717_v25 }
 0x27d   : > { %v2750_v8 = vadd.f32 %v2749_v43, %v2748_v42 }
 0x27f   : > { %v2754_v52 = vsel %vm2753_vm0, %v2719_v46, %v2750_v8 }
 0x280   : > { %v2755_v49 = vadd.f32 %v2754_v52, %v2701_v45 }
 0x282   : > { %2756 = vst [vmem:[%s4795_s24] sm:$0x3] %v2755_v49 }
 0x283 PF: > { %s19_s29 = sadd.s32 1, %s3894_s29   ;;  %s4907_s27 = smov %s3890_s28 }
 0x284   : > { %p16_p6 = scmp.ge.s32.totalorder %s19_s29, 4   ;;  %s4908_s28 = smov %s4910_s30 }
 0x286   :  { %18 = sbr.rel (!%p16_p6) target bundleno = 2 (0x2), region = 94 }

</bundles_post_ra>
